<compile_context>
chip_gen: v5e
topology: v5e:2x2
jax: 0.10.0
libtpu: 0.0.40
codegen_flags: <defaults>
</compile_context>

<pallas_src>
import functools

import jax
import jax.numpy as jnp
from jax.experimental import pallas as pl
from jax.experimental.pallas import tpu as pltpu


def _round_up(n, m):
    return ((n + m - 1) // m) * m


def _default_vmem_limit():
    # ~3/4 of physical VMEM (96 MiB on v5e/v6e's 128 MiB, 48 MiB on v7x's 64 MiB),
    # with a conservative fallback if the query is unavailable.
    try:
        cap = int(pltpu.get_tpu_info().vmem_capacity_bytes)
        return max(min((cap * 3) // 4, 100 * 1024 * 1024), 32 * 1024 * 1024)
    except Exception:
        return 32 * 1024 * 1024


_VMEM_LIMIT = _default_vmem_limit()
_LSTM_K_CHUNK = 2048        # contraction tile for the classifier head


def _pick_tile_rows(H, W, cin, cout):
    """Largest even row tile dividing H whose f32 matmul block stays ~<=128 KiB
    and whose bf16 im2col patch stays vreg/VMEM friendly."""
    for cand in (64, 32, 16, 8, 4, 2):
        if H % cand:
            continue
        acc_bytes = cand * W * cout * 4
        patch_bytes = cand * W * 9 * cin * 2
        if acc_bytes <= 128 * 1024 and patch_bytes <= 256 * 1024:
            return cand
    # TODO(synk): add a column (W) tile axis for images too wide for any row tile.
    return 2


# ----------------------------- Pallas kernels ------------------------------

def _conv_pool_kernel(x_ref, w_ref, b_ref, o_ref):
    """Fused 3x3 conv (stride=1, pad=1) + bias + ReLU + 2x2 max-pool, one row tile.

    x_ref: (H+2, W+2, Cin)      spatially zero-padded NHWC image, real channels, bf16
    w_ref: (9*Cin, Cout)        taps folded into the contraction dim, bf16
    b_ref: (1, Cout)            f32 bias
    o_ref: (th//2, W//2, Cout)  pooled bf16 output tile
    """
    th = o_ref.shape[0] * 2           # conv-output rows in this grid step
    wout = o_ref.shape[1] * 2         # conv-output cols (= W)
    cin = x_ref.shape[2]
    r = pl.program_id(1)
    row0 = pl.multiple_of(r * th, th)

    # Leading-dim (row) slice is cheap; only 3 sublane-offset window slices per
    # tile (hoisted out of the kh loop), instead of 9 slice+reshape relayouts.
    rows = x_ref[pl.ds(row0, th + 2), :, :]                  # (th+2, W+2, Cin)
    cols = [rows[:, kw:kw + wout, :] for kw in range(3)]     # 3 x (th+2, W, Cin)
    cat_kw = jnp.concatenate(cols, axis=-1)                  # (th+2, W, 3*Cin)
    # Fold kh as well: the full im2col patch, contraction order (kh, kw, cin).
    patch = jnp.concatenate([cat_kw[kh:kh + th] for kh in range(3)],
                            axis=-1)                         # (th, W, 9*Cin)
    lhs = patch.reshape(th * wout, 9 * cin)                  # leading-dim merge

    # Single MXU pass per tile: K = 9*Cin, f32 accumulation.
    acc = jnp.dot(lhs, w_ref[...], preferred_element_type=jnp.float32)

    # Bias + ReLU in f32, then cast; 2x2 max-pool in bf16 (bit-identical, monotonic).
    y = jnp.maximum(acc + b_ref[...], 0.0).astype(o_ref.dtype)   # (th*W, Cout)
    cout = y.shape[-1]
    y = y.reshape(th, wout // 2, 2, cout)
    y = jnp.maximum(y[:, :, 0, :], y[:, :, 1, :])                # pool W pairs
    y = y.reshape(th // 2, 2, wout // 2, cout)
    y = jnp.maximum(y[:, 0, :, :], y[:, 1, :, :])                # pool H pairs
    o_ref[...] = y


def _lstm_step_kernel(x_ref, w_ref, b_ref, o_ref, acc_ref):
    """Single LSTM step, zero initial state, K-tiled contraction.

    gates = x @ W_ih^T + (b_ih + b_hh); h0 = c0 = 0 so W_hh contributes nothing
    and the forget gate multiplies c0 == 0 -> only i, g, o gates are packed,
    each in its own 128-lane-aligned block.
    """
    k = pl.program_id(0)

    @pl.when(k == 0)
    def _():
        acc_ref[...] = jnp.zeros_like(acc_ref)

    acc_ref[...] += jnp.dot(x_ref[...], w_ref[...],
                            preferred_element_type=jnp.float32)

    @pl.when(k == pl.num_programs(0) - 1)
    def _():
        hp = o_ref.shape[1]
        gates = acc_ref[...] + b_ref[...]
        i_g = jax.nn.sigmoid(gates[:, 0 * hp:1 * hp])
        g_g = jnp.tanh(gates[:, 1 * hp:2 * hp])
        o_g = jax.nn.sigmoid(gates[:, 2 * hp:3 * hp])
        o_ref[...] = (o_g * jnp.tanh(i_g * g_g)).astype(o_ref.dtype)


# ------------------------------ JAX wrappers --------------------------------

def conv3x3_relu_pool(x_nhwc, wk, bk):
    """x_nhwc: (B, H, W, Cin) bf16 (real channels); wk: (9*Cin, Cout) bf16; bk: (1, Cout) f32."""
    B, H, W, cin = x_nhwc.shape
    k9, cout = wk.shape
    assert k9 == 9 * cin and H % 2 == 0 and W % 2 == 0

    # Spatial-only zero pad (+1 border); no channel padding is materialized in HBM.
    xp = jnp.pad(x_nhwc, ((0, 0), (1, 1), (1, 1), (0, 0)))

    th = _pick_tile_rows(H, W, cin, cout)
    ho, wo = H // 2, W // 2
    grid = (B, H // th)

    flops = 2 * B * H * W * 9 * cin * cout
    bytes_accessed = (xp.size + wk.size + B * ho * wo * cout) * 2 + bk.size * 4

    return pl.pallas_call(
        _conv_pool_kernel,
        out_shape=jax.ShapeDtypeStruct((B, ho, wo, cout), jnp.bfloat16),
        grid=grid,
        in_specs=[
            # Full padded image per batch image, resident across the row-tile axis
            # (<= ~1.7 MiB for real VGG with unpadded channels).
            pl.BlockSpec((None, H + 2, W + 2, cin), lambda bb, r: (bb, 0, 0, 0)),
            pl.BlockSpec((9 * cin, cout), lambda bb, r: (0, 0)),
            pl.BlockSpec((1, cout), lambda bb, r: (0, 0)),
        ],
        out_specs=pl.BlockSpec((None, th // 2, wo, cout),
                               lambda bb, r: (bb, r, 0, 0)),
        compiler_params=pltpu.CompilerParams(
            # Row tiles are independent (no cross-r accumulation) -> both parallel,
            # so v7x can shard either axis across its 2 TensorCores.
            dimension_semantics=("parallel", "parallel"),
            vmem_limit_bytes=_VMEM_LIMIT),
        cost_estimate=pl.CostEstimate(flops=flops, transcendentals=0,
                                      bytes_accessed=bytes_accessed),
    )(xp, wk, bk)


def lstm_classifier(x_flat, wm, bm, num_classes):
    """x_flat: (B, D) -> (B, num_classes); single-step LSTM, batch_first, seq=1."""
    B, D = x_flat.shape
    dp, g3 = wm.shape
    hp = g3 // 3
    bp = _round_up(max(B, 8), 8)
    tk = dp if dp <= _LSTM_K_CHUNK else _LSTM_K_CHUNK
    kt = dp // tk

    xq = jnp.zeros((bp, dp), jnp.bfloat16).at[:B, :D].set(
        x_flat.astype(jnp.bfloat16))

    out = pl.pallas_call(
        _lstm_step_kernel,
        out_shape=jax.ShapeDtypeStruct((bp, hp), jnp.float32),
        grid=(kt,),
        in_specs=[
            pl.BlockSpec((bp, tk), lambda k: (0, k)),
            pl.BlockSpec((tk, g3), lambda k: (k, 0)),
            pl.BlockSpec((1, g3), lambda k: (0, 0)),
        ],
        out_specs=pl.BlockSpec((bp, hp), lambda k: (0, 0)),
        scratch_shapes=[pltpu.VMEM((bp, g3), jnp.float32)],
        compiler_params=pltpu.CompilerParams(
            dimension_semantics=("arbitrary",),
            vmem_limit_bytes=_VMEM_LIMIT),
        cost_estimate=pl.CostEstimate(
            flops=2 * bp * dp * g3,
            transcendentals=4 * bp * hp,
            bytes_accessed=(xq.size + wm.size) * 2 + (bm.size + bp * hp) * 4),
    )(xq, wm, bm)
    return out[:B, :num_classes]


def prepare_params(raw):
    """One-time parameter packing (kept out of the per-call jit path)."""
    convs = []
    for (w, b) in raw["convs"]:
        cout, cin = w.shape[0], w.shape[1]
        # OIHW -> (kh, kw, cin, cout) -> (9*Cin, Cout): taps folded into K.
        wk = jnp.transpose(w, (2, 3, 1, 0)).reshape(9 * cin, cout).astype(jnp.bfloat16)
        bk = b.reshape(1, cout).astype(jnp.float32)
        convs.append((wk, bk))

    w_ih, b_ih, b_hh = raw["w_ih"], raw["b_ih"], raw["b_hh"]
    Hc = w_ih.shape[0] // 4
    D = w_ih.shape[1]
    hp = _round_up(max(Hc, 128), 128)
    dp = _round_up(D, 128) if D <= _LSTM_K_CHUNK else _round_up(D, _LSTM_K_CHUNK)

    bsum = (b_ih + b_hh).astype(jnp.float32)
    wm = jnp.zeros((dp, 3 * hp), jnp.float32)
    bm = jnp.zeros((1, 3 * hp), jnp.float32)
    # PyTorch gate order is (i, f, g, o); the forget gate multiplies c0 == 0 and
    # is dropped entirely -> ~25% less head MXU/VMEM work.
    for dst, g in enumerate((0, 2, 3)):          # i, g, o
        wm = wm.at[:D, dst * hp:dst * hp + Hc].set(w_ih[g * Hc:(g + 1) * Hc, :].T)
        bm = bm.at[0, dst * hp:dst * hp + Hc].set(bsum[g * Hc:(g + 1) * Hc])
    return {"convs": convs, "lstm_w": wm.astype(jnp.bfloat16), "lstm_b": bm}


def vgg_forward(x_nchw, params, *, num_classes):
    """Features: repeated [conv3x3+ReLU, 2x2 maxpool]; flatten (PyTorch order); LSTM head."""
    x = jnp.transpose(x_nchw, (0, 2, 3, 1)).astype(jnp.bfloat16)   # NHWC, real channels
    for (wk, bk) in params["convs"]:
        x = conv3x3_relu_pool(x, wk, bk)
    # torch.flatten(x, start_dim=1) flattens in NCHW order -> transpose at the boundary.
    feats = jnp.transpose(x, (0, 3, 1, 2)).reshape(x.shape[0], -1)
    return lstm_classifier(feats, params["lstm_w"], params["lstm_b"], num_classes)


# ------------------------------ reference -----------------------------------

def vgg_reference(x, raw):
    h = x
    for (w, b) in raw["convs"]:
        h = jax.lax.conv_general_dilated(h, w, (1, 1), ((1, 1), (1, 1)),
                                         dimension_numbers=("NCHW", "OIHW", "NCHW"))
        h = jax.nn.relu(h + b[None, :, None, None])
        B, C, H, W = h.shape
        h = h.reshape(B, C, H // 2, 2, W // 2, 2).max(axis=(3, 5))
    h = h.reshape(h.shape[0], -1)
    gates = h @ raw["w_ih"].T + raw["b_ih"] + raw["b_hh"]
    Hc = raw["w_ih"].shape[0] // 4
    i = jax.nn.sigmoid(gates[:, :Hc])
    g = jnp.tanh(gates[:, 2 * Hc:3 * Hc])
    o = jax.nn.sigmoid(gates[:, 3 * Hc:])
    return o * jnp.tanh(i * g)


# --------------------------------- main --------------------------------------

if __name__ == "__main__":
    key = jax.random.PRNGKey(0)
    ks = jax.random.split(key, 8)

    B, C_in, H, W = 2, 3, 16, 16
    num_classes = 16
    cfg = [8, 16]                                  # small VGG-style feature stack

    x = jax.random.normal(ks[0], (B, C_in, H, W), jnp.float32)

    convs = []
    c_prev = C_in
    for li, c_out in enumerate(cfg):
        w = 0.1 * jax.random.normal(ks[1 + li], (c_out, c_prev, 3, 3), jnp.float32)
        b = 0.05 * jax.random.normal(ks[3 + li], (c_out,), jnp.float32)
        convs.append((w, b))
        c_prev = c_out

    D = cfg[-1] * (H // 4) * (W // 4)              # flattened feature dim
    w_ih = 0.05 * jax.random.normal(ks[5], (4 * num_classes, D), jnp.float32)
    b_ih = 0.05 * jax.random.normal(ks[6], (4 * num_classes,), jnp.float32)
    b_hh = 0.05 * jax.random.normal(ks[7], (4 * num_classes,), jnp.float32)
    raw = {"convs": convs, "w_ih": w_ih, "b_ih": b_ih, "b_hh": b_hh}

    packed = prepare_params(raw)                   # one-time packing, outside jit
    fwd = jax.jit(functools.partial(vgg_forward, num_classes=num_classes))

    out = jax.block_until_ready(fwd(x, packed))
    ref = jax.block_until_ready(vgg_reference(x, raw))

    assert out.shape == (B, num_classes), out.shape
    # bf16 MXU inputs with f32 accumulation -> tolerance relaxed vs the f32 reference.
    out_f32 = out.astype(jnp.float32)
    max_err = float(jnp.max(jnp.abs(out_f32 - ref)))
    assert jnp.allclose(out_f32, ref, atol=2e-2, rtol=2e-2), max_err
    print("KERNEL_OK")
</pallas_src>

<mosaic_0001>
module attributes {stable_mosaic.version = 11 : i64} {
  func.func @_conv_pool_kernel(%arg0: i32, %arg1: i32, %arg2: memref<1x10x10x8xbf16, #tpu.memory_space<vmem>>, %arg3: memref<72x16xbf16, #tpu.memory_space<vmem>>, %arg4: memref<1x16xf32, #tpu.memory_space<vmem>>, %arg5: memref<1x4x4x16xbf16, #tpu.memory_space<vmem>>) attributes {dimension_semantics = [#tpu.dimension_semantics<parallel>, #tpu.dimension_semantics<parallel>], iteration_bounds = array<i64: 2, 1>, scalar_prefetch = 0 : i64, scratch_operands = 0 : i64, tpu.core_type = #tpu.core_type<tc>, window_params = [{transform_indices = @transform_0, window_bounds = array<i64: 1, 10, 10, 8>}, {pipeline_mode = #tpu.pipeline_mode<synchronous>, transform_indices = @transform_1, window_bounds = array<i64: 72, 16>}, {pipeline_mode = #tpu.pipeline_mode<synchronous>, transform_indices = @transform_2, window_bounds = array<i64: 1, 16>}, {transform_indices = @transform_3, window_bounds = array<i64: 1, 4, 4, 16>}]} {
    %c8_i32 = arith.constant 8 : i32
    %0 = arith.muli %arg1, %c8_i32 : i32
    %1 = tpu.assume_multiple %0, 8 : i32
    %c0 = arith.constant 0 : index
    %2 = arith.index_cast %1 : i32 to index
    %c0_0 = arith.constant 0 : index
    %c0_1 = arith.constant 0 : index
    %3 = vector.load %arg2[%c0, %2, %c0_0, %c0_1] : memref<1x10x10x8xbf16, #tpu.memory_space<vmem>>, vector<1x10x10x8xbf16>
    %4 = vector.shape_cast %3 : vector<1x10x10x8xbf16> to vector<10x10x8xbf16>
    %5 = vector.extract_strided_slice %4 {offsets = [0, 0, 0], sizes = [10, 8, 8], strides = [1, 1, 1]} : vector<10x10x8xbf16> to vector<10x8x8xbf16>
    %6 = vector.extract_strided_slice %4 {offsets = [0, 1, 0], sizes = [10, 8, 8], strides = [1, 1, 1]} : vector<10x10x8xbf16> to vector<10x8x8xbf16>
    %7 = vector.extract_strided_slice %4 {offsets = [0, 2, 0], sizes = [10, 8, 8], strides = [1, 1, 1]} : vector<10x10x8xbf16> to vector<10x8x8xbf16>
    %8 = tpu.concatenate %5, %6, %7 in 2 : vector<10x8x8xbf16>, vector<10x8x8xbf16>, vector<10x8x8xbf16> -> vector<10x8x24xbf16>
    %9 = vector.extract_strided_slice %8 {offsets = [0, 0, 0], sizes = [8, 8, 24], strides = [1, 1, 1]} : vector<10x8x24xbf16> to vector<8x8x24xbf16>
    %10 = vector.extract_strided_slice %8 {offsets = [1, 0, 0], sizes = [8, 8, 24], strides = [1, 1, 1]} : vector<10x8x24xbf16> to vector<8x8x24xbf16>
    %11 = vector.extract_strided_slice %8 {offsets = [2, 0, 0], sizes = [8, 8, 24], strides = [1, 1, 1]} : vector<10x8x24xbf16> to vector<8x8x24xbf16>
    %12 = tpu.concatenate %9, %10, %11 in 2 : vector<8x8x24xbf16>, vector<8x8x24xbf16>, vector<8x8x24xbf16> -> vector<8x8x72xbf16>
    %13 = vector.shape_cast %12 : vector<8x8x72xbf16> to vector<64x72xbf16>
    %c0_2 = arith.constant 0 : index
    %c0_3 = arith.constant 0 : index
    %14 = vector.load %arg3[%c0_2, %c0_3] : memref<72x16xbf16, #tpu.memory_space<vmem>>, vector<72x16xbf16>
    %cst = arith.constant dense<0.000000e+00> : vector<64x16xf32>
    %15 = tpu.matmul %13, %14, %cst {dimension_numbers = #tpu.dot_dimension_numbers<[1], [0], [0], [1], [0, 0, 1, 1], [], []>} : vector<64x72xbf16>, vector<72x16xbf16>, vector<64x16xf32> -> vector<64x16xf32>
    %c0_4 = arith.constant 0 : index
    %c0_5 = arith.constant 0 : index
    %16 = vector.load %arg4[%c0_4, %c0_5] : memref<1x16xf32, #tpu.memory_space<vmem>>, vector<1x16xf32>
    %17 = vector.broadcast %16 : vector<1x16xf32> to vector<64x16xf32>
    %18 = arith.addf %15, %17 : vector<64x16xf32>
    %cst_6 = arith.constant 0.000000e+00 : f32
    %19 = vector.broadcast %cst_6 : f32 to vector<64x16xf32>
    %20 = arith.maximumf %18, %19 : vector<64x16xf32>
    %21 = arith.truncf %20 : vector<64x16xf32> to vector<64x16xbf16>
    %22 = vector.shape_cast %21 : vector<64x16xbf16> to vector<8x4x2x16xbf16>
    %23 = vector.extract_strided_slice %22 {offsets = [0, 0, 0, 0], sizes = [8, 4, 1, 16], strides = [1, 1, 1, 1]} : vector<8x4x2x16xbf16> to vector<8x4x1x16xbf16>
    %24 = vector.shape_cast %23 : vector<8x4x1x16xbf16> to vector<8x4x16xbf16>
    %25 = vector.extract_strided_slice %22 {offsets = [0, 0, 1, 0], sizes = [8, 4, 1, 16], strides = [1, 1, 1, 1]} : vector<8x4x2x16xbf16> to vector<8x4x1x16xbf16>
    %26 = vector.shape_cast %25 : vector<8x4x1x16xbf16> to vector<8x4x16xbf16>
    %27 = arith.maximumf %24, %26 : vector<8x4x16xbf16>
    %28 = vector.shape_cast %27 : vector<8x4x16xbf16> to vector<4x2x4x16xbf16>
    %29 = vector.extract_strided_slice %28 {offsets = [0, 0, 0, 0], sizes = [4, 1, 4, 16], strides = [1, 1, 1, 1]} : vector<4x2x4x16xbf16> to vector<4x1x4x16xbf16>
    %30 = vector.shape_cast %29 : vector<4x1x4x16xbf16> to vector<4x4x16xbf16>
    %31 = vector.extract_strided_slice %28 {offsets = [0, 1, 0, 0], sizes = [4, 1, 4, 16], strides = [1, 1, 1, 1]} : vector<4x2x4x16xbf16> to vector<4x1x4x16xbf16>
    %32 = vector.shape_cast %31 : vector<4x1x4x16xbf16> to vector<4x4x16xbf16>
    %33 = arith.maximumf %30, %32 : vector<4x4x16xbf16>
    %c0_7 = arith.constant 0 : index
    %c0_8 = arith.constant 0 : index
    %c0_9 = arith.constant 0 : index
    %c0_10 = arith.constant 0 : index
    %34 = vector.load %arg5[%c0_7, %c0_8, %c0_9, %c0_10] : memref<1x4x4x16xbf16, #tpu.memory_space<vmem>>, vector<1x4x4x16xbf16>
    %35 = vector.shape_cast %34 : vector<1x4x4x16xbf16> to vector<4x4x16xbf16>
    %36 = vector.shape_cast %33 : vector<4x4x16xbf16> to vector<1x4x4x16xbf16>
    tpu.vector_store %arg5[%c0_7, %c0_8, %c0_9, %c0_10], %36 {strides = array<i32>} : memref<1x4x4x16xbf16, #tpu.memory_space<vmem>>, vector<1x4x4x16xbf16>,
    return
  }
  func.func @transform_0(%arg0: i32, %arg1: i32) -> (i32, i32, i32, i32) {
    %c0_i32 = arith.constant 0 : i32
    %c0_i32_0 = arith.constant 0 : i32
    %c0_i32_1 = arith.constant 0 : i32
    %c0_i32_2 = arith.constant 0 : i32
    return %arg0, %c0_i32, %c0_i32_0, %c0_i32_1 : i32, i32, i32, i32
  }
  func.func @transform_1(%arg0: i32, %arg1: i32) -> (i32, i32) {
    %c0_i32 = arith.constant 0 : i32
    %c0_i32_0 = arith.constant 0 : i32
    %c0_i32_1 = arith.constant 0 : i32
    return %c0_i32, %c0_i32_0 : i32, i32
  }
  func.func @transform_2(%arg0: i32, %arg1: i32) -> (i32, i32) {
    %c0_i32 = arith.constant 0 : i32
    %c0_i32_0 = arith.constant 0 : i32
    %c0_i32_1 = arith.constant 0 : i32
    return %c0_i32, %c0_i32_0 : i32, i32
  }
  func.func @transform_3(%arg0: i32, %arg1: i32) -> (i32, i32, i32, i32) {
    %c0_i32 = arith.constant 0 : i32
    %c0_i32_0 = arith.constant 0 : i32
    %c0_i32_1 = arith.constant 0 : i32
    return %arg0, %arg1, %c0_i32, %c0_i32_0 : i32, i32, i32, i32
  }
}

module attributes {stable_mosaic.version = 11 : i64} {
  func.func @_conv_pool_kernel(%arg0: i32, %arg1: i32, %arg2: memref<1x18x18x3xbf16, #tpu.memory_space<vmem>>, %arg3: memref<27x8xbf16, #tpu.memory_space<vmem>>, %arg4: memref<1x8xf32, #tpu.memory_space<vmem>>, %arg5: memref<1x8x8x8xbf16, #tpu.memory_space<vmem>>) attributes {dimension_semantics = [#tpu.dimension_semantics<parallel>, #tpu.dimension_semantics<parallel>], iteration_bounds = array<i64: 2, 1>, scalar_prefetch = 0 : i64, scratch_operands = 0 : i64, tpu.core_type = #tpu.core_type<tc>, window_params = [{transform_indices = @transform_0, window_bounds = array<i64: 1, 18, 18, 3>}, {pipeline_mode = #tpu.pipeline_mode<synchronous>, transform_indices = @transform_1, window_bounds = array<i64: 27, 8>}, {pipeline_mode = #tpu.pipeline_mode<synchronous>, transform_indices = @transform_2, window_bounds = array<i64: 1, 8>}, {transform_indices = @transform_3, window_bounds = array<i64: 1, 8, 8, 8>}]} {
    %c16_i32 = arith.constant 16 : i32
    %0 = arith.muli %arg1, %c16_i32 : i32
    %1 = tpu.assume_multiple %0, 16 : i32
    %c0 = arith.constant 0 : index
    %2 = arith.index_cast %1 : i32 to index
    %c0_0 = arith.constant 0 : index
    %c0_1 = arith.constant 0 : index
    %3 = vector.load %arg2[%c0, %2, %c0_0, %c0_1] : memref<1x18x18x3xbf16, #tpu.memory_space<vmem>>, vector<1x18x18x3xbf16>
    %4 = vector.shape_cast %3 : vector<1x18x18x3xbf16> to vector<18x18x3xbf16>
    %5 = vector.extract_strided_slice %4 {offsets = [0, 0, 0], sizes = [18, 16, 3], strides = [1, 1, 1]} : vector<18x18x3xbf16> to vector<18x16x3xbf16>
    %6 = vector.extract_strided_slice %4 {offsets = [0, 1, 0], sizes = [18, 16, 3], strides = [1, 1, 1]} : vector<18x18x3xbf16> to vector<18x16x3xbf16>
    %7 = vector.extract_strided_slice %4 {offsets = [0, 2, 0], sizes = [18, 16, 3], strides = [1, 1, 1]} : vector<18x18x3xbf16> to vector<18x16x3xbf16>
    %8 = tpu.concatenate %5, %6, %7 in 2 : vector<18x16x3xbf16>, vector<18x16x3xbf16>, vector<18x16x3xbf16> -> vector<18x16x9xbf16>
    %9 = vector.extract_strided_slice %8 {offsets = [0, 0, 0], sizes = [16, 16, 9], strides = [1, 1, 1]} : vector<18x16x9xbf16> to vector<16x16x9xbf16>
    %10 = vector.extract_strided_slice %8 {offsets = [1, 0, 0], sizes = [16, 16, 9], strides = [1, 1, 1]} : vector<18x16x9xbf16> to vector<16x16x9xbf16>
    %11 = vector.extract_strided_slice %8 {offsets = [2, 0, 0], sizes = [16, 16, 9], strides = [1, 1, 1]} : vector<18x16x9xbf16> to vector<16x16x9xbf16>
    %12 = tpu.concatenate %9, %10, %11 in 2 : vector<16x16x9xbf16>, vector<16x16x9xbf16>, vector<16x16x9xbf16> -> vector<16x16x27xbf16>
    %13 = vector.shape_cast %12 : vector<16x16x27xbf16> to vector<256x27xbf16>
    %c0_2 = arith.constant 0 : index
    %c0_3 = arith.constant 0 : index
    %14 = vector.load %arg3[%c0_2, %c0_3] : memref<27x8xbf16, #tpu.memory_space<vmem>>, vector<27x8xbf16>
    %cst = arith.constant dense<0.000000e+00> : vector<256x8xf32>
    %15 = tpu.matmul %13, %14, %cst {dimension_numbers = #tpu.dot_dimension_numbers<[1], [0], [0], [1], [0, 0, 1, 1], [], []>} : vector<256x27xbf16>, vector<27x8xbf16>, vector<256x8xf32> -> vector<256x8xf32>
    %c0_4 = arith.constant 0 : index
    %c0_5 = arith.constant 0 : index
    %16 = vector.load %arg4[%c0_4, %c0_5] : memref<1x8xf32, #tpu.memory_space<vmem>>, vector<1x8xf32>
    %17 = vector.broadcast %16 : vector<1x8xf32> to vector<256x8xf32>
    %18 = arith.addf %15, %17 : vector<256x8xf32>
    %cst_6 = arith.constant 0.000000e+00 : f32
    %19 = vector.broadcast %cst_6 : f32 to vector<256x8xf32>
    %20 = arith.maximumf %18, %19 : vector<256x8xf32>
    %21 = arith.truncf %20 : vector<256x8xf32> to vector<256x8xbf16>
    %22 = vector.shape_cast %21 : vector<256x8xbf16> to vector<16x8x2x8xbf16>
    %23 = vector.extract_strided_slice %22 {offsets = [0, 0, 0, 0], sizes = [16, 8, 1, 8], strides = [1, 1, 1, 1]} : vector<16x8x2x8xbf16> to vector<16x8x1x8xbf16>
    %24 = vector.shape_cast %23 : vector<16x8x1x8xbf16> to vector<16x8x8xbf16>
    %25 = vector.extract_strided_slice %22 {offsets = [0, 0, 1, 0], sizes = [16, 8, 1, 8], strides = [1, 1, 1, 1]} : vector<16x8x2x8xbf16> to vector<16x8x1x8xbf16>
    %26 = vector.shape_cast %25 : vector<16x8x1x8xbf16> to vector<16x8x8xbf16>
    %27 = arith.maximumf %24, %26 : vector<16x8x8xbf16>
    %28 = vector.shape_cast %27 : vector<16x8x8xbf16> to vector<8x2x8x8xbf16>
    %29 = vector.extract_strided_slice %28 {offsets = [0, 0, 0, 0], sizes = [8, 1, 8, 8], strides = [1, 1, 1, 1]} : vector<8x2x8x8xbf16> to vector<8x1x8x8xbf16>
    %30 = vector.shape_cast %29 : vector<8x1x8x8xbf16> to vector<8x8x8xbf16>
    %31 = vector.extract_strided_slice %28 {offsets = [0, 1, 0, 0], sizes = [8, 1, 8, 8], strides = [1, 1, 1, 1]} : vector<8x2x8x8xbf16> to vector<8x1x8x8xbf16>
    %32 = vector.shape_cast %31 : vector<8x1x8x8xbf16> to vector<8x8x8xbf16>
    %33 = arith.maximumf %30, %32 : vector<8x8x8xbf16>
    %c0_7 = arith.constant 0 : index
    %c0_8 = arith.constant 0 : index
    %c0_9 = arith.constant 0 : index
    %c0_10 = arith.constant 0 : index
    %34 = vector.load %arg5[%c0_7, %c0_8, %c0_9, %c0_10] : memref<1x8x8x8xbf16, #tpu.memory_space<vmem>>, vector<1x8x8x8xbf16>
    %35 = vector.shape_cast %34 : vector<1x8x8x8xbf16> to vector<8x8x8xbf16>
    %36 = vector.shape_cast %33 : vector<8x8x8xbf16> to vector<1x8x8x8xbf16>
    tpu.vector_store %arg5[%c0_7, %c0_8, %c0_9, %c0_10], %36 {strides = array<i32>} : memref<1x8x8x8xbf16, #tpu.memory_space<vmem>>, vector<1x8x8x8xbf16>,
    return
  }
  func.func @transform_0(%arg0: i32, %arg1: i32) -> (i32, i32, i32, i32) {
    %c0_i32 = arith.constant 0 : i32
    %c0_i32_0 = arith.constant 0 : i32
    %c0_i32_1 = arith.constant 0 : i32
    %c0_i32_2 = arith.constant 0 : i32
    return %arg0, %c0_i32, %c0_i32_0, %c0_i32_1 : i32, i32, i32, i32
  }
  func.func @transform_1(%arg0: i32, %arg1: i32) -> (i32, i32) {
    %c0_i32 = arith.constant 0 : i32
    %c0_i32_0 = arith.constant 0 : i32
    %c0_i32_1 = arith.constant 0 : i32
    return %c0_i32, %c0_i32_0 : i32, i32
  }
  func.func @transform_2(%arg0: i32, %arg1: i32) -> (i32, i32) {
    %c0_i32 = arith.constant 0 : i32
    %c0_i32_0 = arith.constant 0 : i32
    %c0_i32_1 = arith.constant 0 : i32
    return %c0_i32, %c0_i32_0 : i32, i32
  }
  func.func @transform_3(%arg0: i32, %arg1: i32) -> (i32, i32, i32, i32) {
    %c0_i32 = arith.constant 0 : i32
    %c0_i32_0 = arith.constant 0 : i32
    %c0_i32_1 = arith.constant 0 : i32
    return %arg0, %arg1, %c0_i32, %c0_i32_0 : i32, i32, i32, i32
  }
}

module attributes {stable_mosaic.version = 11 : i64} {
  func.func @_lstm_step_kernel(%arg0: i32, %arg1: memref<8x256xbf16, #tpu.memory_space<vmem>>, %arg2: memref<256x384xbf16, #tpu.memory_space<vmem>>, %arg3: memref<1x384xf32, #tpu.memory_space<vmem>>, %arg4: memref<8x128xf32, #tpu.memory_space<vmem>>, %arg5: memref<8x384xf32, #tpu.memory_space<vmem>>) attributes {dimension_semantics = [#tpu.dimension_semantics<arbitrary>], iteration_bounds = array<i64: 1>, scalar_prefetch = 0 : i64, scratch_operands = 1 : i64, tpu.core_type = #tpu.core_type<tc>, window_params = [{transform_indices = @transform_0, window_bounds = array<i64: 8, 256>}, {transform_indices = @transform_1, window_bounds = array<i64: 256, 384>}, {pipeline_mode = #tpu.pipeline_mode<synchronous>, transform_indices = @transform_2, window_bounds = array<i64: 1, 384>}, {pipeline_mode = #tpu.pipeline_mode<synchronous>, transform_indices = @transform_3, window_bounds = array<i64: 8, 128>}]} {
    %c0_i32 = arith.constant 0 : i32
    %0 = arith.cmpi eq, %arg0, %c0_i32 : i32
    %1 = arith.extui %0 : i1 to i32
    %c0_i32_0 = arith.constant 0 : i32
    %2 = arith.cmpi ne, %1, %c0_i32_0 : i32
    scf.if %2 {
      %cst_10 = arith.constant 0.000000e+00 : f32
      %12 = vector.broadcast %cst_10 : f32 to vector<8x384xf32>
      %c0_11 = arith.constant 0 : index
      %c0_12 = arith.constant 0 : index
      %13 = vector.load %arg5[%c0_11, %c0_12] : memref<8x384xf32, #tpu.memory_space<vmem>>, vector<8x384xf32>
      tpu.vector_store %arg5[%c0_11, %c0_12], %12 {strides = array<i32>} : memref<8x384xf32, #tpu.memory_space<vmem>>, vector<8x384xf32>,
    } else {
    }
    %c0 = arith.constant 0 : index
    %c0_1 = arith.constant 0 : index
    %3 = vector.load %arg5[%c0, %c0_1] : memref<8x384xf32, #tpu.memory_space<vmem>>, vector<8x384xf32>
    %c0_2 = arith.constant 0 : index
    %c0_3 = arith.constant 0 : index
    %4 = vector.load %arg1[%c0_2, %c0_3] : memref<8x256xbf16, #tpu.memory_space<vmem>>, vector<8x256xbf16>
    %c0_4 = arith.constant 0 : index
    %c0_5 = arith.constant 0 : index
    %5 = vector.load %arg2[%c0_4, %c0_5] : memref<256x384xbf16, #tpu.memory_space<vmem>>, vector<256x384xbf16>
    %cst = arith.constant dense<0.000000e+00> : vector<8x384xf32>
    %6 = tpu.matmul %4, %5, %cst {dimension_numbers = #tpu.dot_dimension_numbers<[1], [0], [0], [1], [0, 0, 1, 1], [], []>} : vector<8x256xbf16>, vector<256x384xbf16>, vector<8x384xf32> -> vector<8x384xf32>
    %7 = arith.addf %3, %6 : vector<8x384xf32>
    %c0_6 = arith.constant 0 : index
    %c0_7 = arith.constant 0 : index
    %8 = vector.load %arg5[%c0_6, %c0_7] : memref<8x384xf32, #tpu.memory_space<vmem>>, vector<8x384xf32>
    tpu.vector_store %arg5[%c0_6, %c0_7], %7 {strides = array<i32>} : memref<8x384xf32, #tpu.memory_space<vmem>>, vector<8x384xf32>,
    %c0_i32_8 = arith.constant 0 : i32
    %9 = arith.cmpi eq, %arg0, %c0_i32_8 : i32
    %10 = arith.extui %9 : i1 to i32
    %c0_i32_9 = arith.constant 0 : i32
    %11 = arith.cmpi ne, %10, %c0_i32_9 : i32
    scf.if %11 {
      %c0_10 = arith.constant 0 : index
      %c0_11 = arith.constant 0 : index
      %12 = vector.load %arg5[%c0_10, %c0_11] : memref<8x384xf32, #tpu.memory_space<vmem>>, vector<8x384xf32>
      %c0_12 = arith.constant 0 : index
      %c0_13 = arith.constant 0 : index
      %13 = vector.load %arg3[%c0_12, %c0_13] : memref<1x384xf32, #tpu.memory_space<vmem>>, vector<1x384xf32>
      %14 = vector.broadcast %13 : vector<1x384xf32> to vector<8x384xf32>
      %15 = arith.addf %12, %14 : vector<8x384xf32>
      %16 = vector.extract_strided_slice %15 {offsets = [0, 0], sizes = [8, 128], strides = [1, 1]} : vector<8x384xf32> to vector<8x128xf32>
      %17 = arith.negf %16 : vector<8x128xf32>
      %18 = math.exp %17 : vector<8x128xf32>
      %cst_14 = arith.constant 1.000000e+00 : f32
      %19 = vector.broadcast %cst_14 : f32 to vector<8x128xf32>
      %20 = arith.addf %19, %18 : vector<8x128xf32>
      %21 = arith.divf %19, %20 : vector<8x128xf32>
      %22 = vector.extract_strided_slice %15 {offsets = [0, 128], sizes = [8, 128], strides = [1, 1]} : vector<8x384xf32> to vector<8x128xf32>
      %23 = math.tanh %22 : vector<8x128xf32>
      %24 = vector.extract_strided_slice %15 {offsets = [0, 256], sizes = [8, 128], strides = [1, 1]} : vector<8x384xf32> to vector<8x128xf32>
      %25 = arith.negf %24 : vector<8x128xf32>
      %26 = math.exp %25 : vector<8x128xf32>
      %cst_15 = arith.constant 1.000000e+00 : f32
      %27 = vector.broadcast %cst_15 : f32 to vector<8x128xf32>
      %28 = arith.addf %27, %26 : vector<8x128xf32>
      %29 = arith.divf %27, %28 : vector<8x128xf32>
      %30 = arith.mulf %21, %23 : vector<8x128xf32>
      %31 = math.tanh %30 : vector<8x128xf32>
      %32 = arith.mulf %29, %31 : vector<8x128xf32>
      %c0_16 = arith.constant 0 : index
      %c0_17 = arith.constant 0 : index
      %33 = vector.load %arg4[%c0_16, %c0_17] : memref<8x128xf32, #tpu.memory_space<vmem>>, vector<8x128xf32>
      tpu.vector_store %arg4[%c0_16, %c0_17], %32 {strides = array<i32>} : memref<8x128xf32, #tpu.memory_space<vmem>>, vector<8x128xf32>,
    } else {
    }
    return
  }
  func.func @transform_0(%arg0: i32) -> (i32, i32) {
    %c0_i32 = arith.constant 0 : i32
    %c0_i32_0 = arith.constant 0 : i32
    return %c0_i32, %arg0 : i32, i32
  }
  func.func @transform_1(%arg0: i32) -> (i32, i32) {
    %c0_i32 = arith.constant 0 : i32
    %c0_i32_0 = arith.constant 0 : i32
    return %arg0, %c0_i32 : i32, i32
  }
  func.func @transform_2(%arg0: i32) -> (i32, i32) {
    %c0_i32 = arith.constant 0 : i32
    %c0_i32_0 = arith.constant 0 : i32
    %c0_i32_1 = arith.constant 0 : i32
    return %c0_i32, %c0_i32_0 : i32, i32
  }
  func.func @transform_3(%arg0: i32) -> (i32, i32) {
    %c0_i32 = arith.constant 0 : i32
    %c0_i32_0 = arith.constant 0 : i32
    %c0_i32_1 = arith.constant 0 : i32
    return %c0_i32, %c0_i32_0 : i32, i32
  }
}

</mosaic_0001>

<bundles_post_ra>
// kernel: vgg_forward.5
= control target key start
LH: loop header
LB: loop body
LE: loop exit
PB: predicated region body
PF: predicated region fallthrough
CT: control target
= control target key end

     0   :  { %s1081_s1 = inlined_call_operand.vmem [shape: bf16[256,384], index: 1, kind: input, shape index: {}]   ;;  %s1082_s0 = inlined_call_operand.vmem [shape: bf16[8,256], index: 0, kind: input, shape index: {}]   ;;  %s1083_s2 = inlined_call_operand.vmem [shape: f32[1,384], index: 2, kind: input, shape index: {}]   ;;  %s1084_s3 = inlined_call_operand.vmem [shape: f32[8,128], index: 3, kind: output, shape index: {}]  }
   0x1   :  { %v586_v0 = vld [vmem:[%s1081_s1 + $0xa8] sm:$0xf]  ;;  %v716_v1 = vld [vmem:[%s1081_s1 + $0xb0] sm:$0xf0]  ;;  %v574_v5 = vld [vmem:[%s1081_s1 + $0x90] sm:$0xf] }
   0x2   :  { %v682_v2 = vld [vmem:[%s1081_s1 + $0x168] sm:$0xf]  ;;  %v587_v3 = vor.u32 %v716_v1, %v586_v0  ;;  %v740_v4 = vld [vmem:[%s1081_s1 + $0x170] sm:$0xf0]  ;;  %v713_v6 = vld [vmem:[%s1081_s1 + $0x98] sm:$0xf0] }
   0x3   :  { %v683_v7 = vor.u32 %v740_v4, %v682_v2  ;;  %v670_v8 = vld [vmem:[%s1081_s1 + $0x150] sm:$0xf]  ;;  %v737_v9 = vld [vmem:[%s1081_s1 + $0x158] sm:$0xf0]  ;;  %v575_v10 = vor.u32 %v713_v6, %v574_v5  ;;  %v562_v12 = vld [vmem:[%s1081_s1 + $0x78] sm:$0xf] }
   0x4   :  { %352 = vmatpush.bf16.msra.mxu0 %v587_v3  ;;  %v671_v11 = vor.u32 %v737_v9, %v670_v8  ;;  %v710_v13 = vld [vmem:[%s1081_s1 + $0x80] sm:$0xf0]  ;;  %v658_v14 = vld [vmem:[%s1081_s1 + $0x138] sm:$0xf]  ;;  %v715_v16 = vld [vmem:[%s1081_s1 + $0xac] sm:$0xf] }
   0x5   :  { %365 = vmatpush.bf16.msra.mxu1 %v683_v7  ;;  %v734_v15 = vld [vmem:[%s1081_s1 + $0x140] sm:$0xf0]  ;;  %v588_v17 = vld [vmem:[%s1081_s1 + $0xb4] sm:$0xf0]  ;;  %v739_v19 = vld [vmem:[%s1081_s1 + $0x16c] sm:$0xf]  ;;  %v563_v21 = vor.u32 %v710_v13, %v562_v12 }
   0x6   :  { %v591_v18 = vor.u32 %v715_v16, %v588_v17  ;;  %v684_v20 = vld [vmem:[%s1081_s1 + $0x174] sm:$0xf0]  ;;  %v550_v22 = vld [vmem:[%s1081_s1 + $0x60] sm:$0xf]  ;;  %v707_v23 = vld [vmem:[%s1081_s1 + $0x68] sm:$0xf0]  ;;  %v659_v25 = vor.u32 %v734_v15, %v658_v14 }
   0x7   :  { %v687_v24 = vor.u32 %v739_v19, %v684_v20  ;;  %v712_v26 = vld [vmem:[%s1081_s1 + $0x94] sm:$0xf]  ;;  %v576_v27 = vld [vmem:[%s1081_s1 + $0x9c] sm:$0xf0]  ;;  %v731_v30 = vld [vmem:[%s1081_s1 + $0x128] sm:$0xf0]  ;;  %v551_v35 = vor.u32 %v707_v23, %v550_v22 }
   0x8   :  { %353 = vmatpush.bf16.msra.mxu0 %v575_v10  ;;  %378 = vmatpush.bf16.msra.mxu2 %v591_v18  ;;  %v736_v28 = vld [vmem:[%s1081_s1 + $0x154] sm:$0xf]  ;;  %v646_v29 = vld [vmem:[%s1081_s1 + $0x120] sm:$0xf]  ;;  %v579_v31 = vor.u32 %v712_v26, %v576_v27  ;;  %v709_v34 = vld [vmem:[%s1081_s1 + $0x7c] sm:$0xf] }
   0x9   :  { %366 = vmatpush.bf16.msra.mxu1 %v671_v11  ;;  %391 = vmatpush.bf16.msra.mxu3 %v687_v24  ;;  %v672_v32 = vld [vmem:[%s1081_s1 + $0x15c] sm:$0xf0]  ;;  %v564_v36 = vld [vmem:[%s1081_s1 + $0x84] sm:$0xf0]  ;;  %v733_v37 = vld [vmem:[%s1081_s1 + $0x13c] sm:$0xf]  ;;  %v647_v39 = vor.u32 %v731_v30, %v646_v29 }
   0xa   :  { %v675_v33 = vor.u32 %v736_v28, %v672_v32  ;;  %v660_v38 = vld [vmem:[%s1081_s1 + $0x144] sm:$0xf0]  ;;  %v704_v41 = vld [vmem:[%s1081_s1 + $0x50] sm:$0xf0]  ;;  %v567_v43 = vor.u32 %v709_v34, %v564_v36  ;;  %v706_v46 = vld [vmem:[%s1081_s1 + $0x64] sm:$0xf] }
   0xb   :  { %v538_v40 = vld [vmem:[%s1081_s1 + $0x48] sm:$0xf]  ;;  %v728_v44 = vld [vmem:[%s1081_s1 + $0x110] sm:$0xf0]  ;;  %v663_v45 = vor.u32 %v733_v37, %v660_v38  ;;  %v552_v47 = vld [vmem:[%s1081_s1 + $0x6c] sm:$0xf0] }
   0xc   :  { %354 = vmatpush.bf16.msra.mxu0 %v563_v21  ;;  %v634_v42 = vld [vmem:[%s1081_s1 + $0x108] sm:$0xf]  ;;  %379 = vmatpush.bf16.msra.mxu2 %v579_v31  ;;  %v730_v48 = vld [vmem:[%s1081_s1 + $0x124] sm:$0xf]  ;;  %v648_v49 = vld [vmem:[%s1081_s1 + $0x12c] sm:$0xf0]  ;;  %v539_v50 = vor.u32 %v704_v41, %v538_v40  ;;  %v555_v54 = vor.u32 %v706_v46, %v552_v47 }
   0xd   :  { %367 = vmatpush.bf16.msra.mxu1 %v659_v25  ;;  %392 = vmatpush.bf16.msra.mxu3 %v675_v33  ;;  %v635_v51 = vor.u32 %v728_v44, %v634_v42  ;;  %v526_v52 = vld [vmem:[%s1081_s1 + $0x30] sm:$0xf]  ;;  %v701_v53 = vld [vmem:[%s1081_s1 + $0x38] sm:$0xf0]  ;;  %v651_v57 = vor.u32 %v730_v48, %v648_v49  ;;  %v703_v58 = vld [vmem:[%s1081_s1 + $0x4c] sm:$0xf] }
   0xe   :  { %v622_v55 = vld [vmem:[%s1081_s1 + $0xf0] sm:$0xf]  ;;  %v725_v56 = vld [vmem:[%s1081_s1 + $0xf8] sm:$0xf0]  ;;  %v540_v59 = vld [vmem:[%s1081_s1 + $0x54] sm:$0xf0]  ;;  %v527_v62 = vor.u32 %v701_v53, %v526_v52 }
   0xf   :  { %v727_v60 = vld [vmem:[%s1081_s1 + $0x10c] sm:$0xf]  ;;  %v636_v61 = vld [vmem:[%s1081_s1 + $0x114] sm:$0xf0]  ;;  %v623_v63 = vor.u32 %v725_v56, %v622_v55  ;;  %v698_v1 = vld [vmem:[%s1081_s1 + $0x20] sm:$0xf0]  ;;  %v543_v3 = vor.u32 %v703_v58, %v540_v59 }
  0x10   :  { %355 = vmatpush.bf16.msra.mxu0 %v551_v35  ;;  %380 = vmatpush.bf16.msra.mxu2 %v567_v43  ;;  %v514_v0 = vld [vmem:[%s1081_s1 + $0x18] sm:$0xf]  ;;  %v722_v4 = vld [vmem:[%s1081_s1 + $0xe0] sm:$0xf0]  ;;  %v639_v5 = vor.u32 %v727_v60, %v636_v61  ;;  %v700_v6 = vld [vmem:[%s1081_s1 + $0x34] sm:$0xf] }
  0x11   :  { %368 = vmatpush.bf16.msra.mxu1 %v647_v39  ;;  %393 = vmatpush.bf16.msra.mxu3 %v663_v45  ;;  %v610_v2 = vld [vmem:[%s1081_s1 + $0xd8] sm:$0xf]  ;;  %v528_v7 = vld [vmem:[%s1081_s1 + $0x3c] sm:$0xf0]  ;;  %v724_v8 = vld [vmem:[%s1081_s1 + $0xf4] sm:$0xf]  ;;  %v515_v10 = vor.u32 %v698_v1, %v514_v0 }
  0x12   :  { %v624_v9 = vld [vmem:[%s1081_s1 + $0xfc] sm:$0xf0]  ;;  %v611_v13 = vor.u32 %v722_v4, %v610_v2  ;;  %v695_v14 = vld [vmem:[%s1081_s1 + $0x8] sm:$0xf0]  ;;  %v531_v17 = vor.u32 %v700_v6, %v528_v7  ;;  %v594_v18 = vld [vmem:[%s1081_s1 + $0xb0] sm:$0xf] }
  0x13   :  { %v502_v11 = vld [vmem:[%s1081_s1] sm:$0xf]  ;;  %v719_v16 = vld [vmem:[%s1081_s1 + $0xc8] sm:$0xf0]  ;;  %v717_v19 = vld [vmem:[%s1081_s1 + $0xb8] sm:$0xf0]  ;;  %v627_v21 = vor.u32 %v724_v8, %v624_v9 }
  0x14   :  { %356 = vmatpush.bf16.msra.mxu0 %v539_v50  ;;  %381 = vmatpush.bf16.msra.mxu2 %v555_v54  ;;  %v24_v12 = vld [vmem:[%s1082_s0] sm:$0xff]  ;;  %v690_v20 = vld [vmem:[%s1081_s1 + $0x170] sm:$0xf]  ;;  %v741_v22 = vld [vmem:[%s1081_s1 + $0x178] sm:$0xf0]  ;;  %v503_v26 = vor.u32 %v695_v14, %v502_v11  ;;  %v595_v31 = vor.u32 %v717_v19, %v594_v18 }
  0x15   :  { %369 = vmatpush.bf16.msra.mxu1 %v635_v51  ;;  %394 = vmatpush.bf16.msra.mxu3 %v651_v57  ;;  %v598_v15 = vld [vmem:[%s1081_s1 + $0xc0] sm:$0xf]  ;;  %v90_v23 = vunpack.c.l.b16 %v24_v12  ;;  %v697_v24 = vld [vmem:[%s1081_s1 + $0x1c] sm:$0xf]  ;;  %v516_v25 = vld [vmem:[%s1081_s1 + $0x24] sm:$0xf0]  ;;  %v91_v27 = vunpack.c.h.b16 %v24_v12  ;;  %v691_v32 = vor.u32 %v741_v22, %v690_v20 }
  0x16   :  { %v721_v28 = vld [vmem:[%s1081_s1 + $0xdc] sm:$0xf]  ;;  %v612_v29 = vld [vmem:[%s1081_s1 + $0xe4] sm:$0xf0]  ;;  %v599_v30 = vor.u32 %v719_v16, %v598_v15  ;;  %v582_v33 = vld [vmem:[%s1081_s1 + $0x98] sm:$0xf]  ;;  %v519_v36 = vor.u32 %v697_v24, %v516_v25 }
  0x17   :  { %v714_v34 = vld [vmem:[%s1081_s1 + $0xa0] sm:$0xf0]  ;;  %v678_v35 = vld [vmem:[%s1081_s1 + $0x158] sm:$0xf]  ;;  %v978_v37 = vpack.c.b16 %v90_v23, %v90_v23  ;;  %v615_v39 = vor.u32 %v721_v28, %v612_v29  ;;  %v504_v41 = vld [vmem:[%s1081_s1 + $0xc] sm:$0xf0]  ;;  %v989_v42 = vpack.c.b16 %v91_v27, %v91_v27 }
  0x18   :  { %357 = vmatpush.bf16.msra.mxu0 %v527_v62  ;;  %382 = vmatpush.bf16.msra.mxu2 %v543_v3  ;;  %v738_v38 = vld [vmem:[%s1081_s1 + $0x160] sm:$0xf0]  ;;  %v600_v44 = vld [vmem:[%s1081_s1 + $0xcc] sm:$0xf0]  ;;  %v583_v45 = vor.u32 %v714_v34, %v582_v33  ;;  %v570_v47 = vld [vmem:[%s1081_s1 + $0x80] sm:$0xf] }
  0x19   :  { %370 = vmatpush.bf16.msra.mxu1 %v623_v63  ;;  %395 = vmatpush.bf16.msra.mxu3 %v639_v5  ;;  %v694_v40 = vld [vmem:[%s1081_s1 + $0x4] sm:$0xf]  ;;  %v679_v46 = vor.u32 %v738_v38, %v678_v35  ;;  %v711_v48 = vld [vmem:[%s1081_s1 + $0x88] sm:$0xf0]  ;;  %v666_v50 = vld [vmem:[%s1081_s1 + $0x140] sm:$0xf] }
  0x1a   :  { %v718_v43 = vld [vmem:[%s1081_s1 + $0xc4] sm:$0xf]  ;;  %v507_v49 = vor.u32 %v694_v40, %v504_v41  ;;  %v735_v51 = vld [vmem:[%s1081_s1 + $0x148] sm:$0xf0]  ;;  %v571_v53 = vor.u32 %v711_v48, %v570_v47  ;;  %v558_v55 = vld [vmem:[%s1081_s1 + $0x68] sm:$0xf] }
  0x1b   :  { %v603_v52 = vor.u32 %v718_v43, %v600_v44  ;;  %v667_v54 = vor.u32 %v735_v51, %v666_v50  ;;  %v708_v56 = vld [vmem:[%s1081_s1 + $0x70] sm:$0xf0]  ;;  %v654_v57 = vld [vmem:[%s1081_s1 + $0x128] sm:$0xf]  ;;  %v546_v61 = vld [vmem:[%s1081_s1 + $0x50] sm:$0xf] }
  0x1c   :  { %358 = vmatpush.bf16.msra.mxu0 %v515_v10  ;;  %383 = vmatpush.bf16.msra.mxu2 %v531_v17  ;;  %v732_v58 = vld [vmem:[%s1081_s1 + $0x130] sm:$0xf0]  ;;  %v559_v59 = vor.u32 %v708_v56, %v558_v55  ;;  %v705_v62 = vld [vmem:[%s1081_s1 + $0x58] sm:$0xf0]  ;;  %v642_v63 = vld [vmem:[%s1081_s1 + $0x110] sm:$0xf] }
  0x1d   :  { %371 = vmatpush.bf16.msra.mxu1 %v611_v13  ;;  %396 = vmatpush.bf16.msra.mxu3 %v627_v21  ;;  %v655_v60 = vor.u32 %v732_v58, %v654_v57  ;;  %v729_v0 = vld [vmem:[%s1081_s1 + $0x118] sm:$0xf0]  ;;  %v547_v1 = vor.u32 %v705_v62, %v546_v61  ;;  %v534_v3 = vld [vmem:[%s1081_s1 + $0x38] sm:$0xf]  ;;  %v702_v4 = vld [vmem:[%s1081_s1 + $0x40] sm:$0xf0] }
  0x1e   :  { %v643_v2 = vor.u32 %v729_v0, %v642_v63  ;;  %v630_v5 = vld [vmem:[%s1081_s1 + $0xf8] sm:$0xf]  ;;  %v726_v6 = vld [vmem:[%s1081_s1 + $0x100] sm:$0xf0]  ;;  %v535_v7 = vor.u32 %v702_v4, %v534_v3  ;;  %v522_v9 = vld [vmem:[%s1081_s1 + $0x20] sm:$0xf] }
  0x1f   :  { %v631_v8 = vor.u32 %v726_v6, %v630_v5  ;;  %v699_v10 = vld [vmem:[%s1081_s1 + $0x28] sm:$0xf0]  ;;  %v618_v11 = vld [vmem:[%s1081_s1 + $0xe0] sm:$0xf]  ;;  %v510_v15 = vld [vmem:[%s1081_s1 + $0x8] sm:$0xf] }
  0x20   :  { %359 = vmatpush.bf16.msra.mxu0 %v503_v26  ;;  %384 = vmatpush.bf16.msra.mxu2 %v519_v36  ;;  %v723_v12 = vld [vmem:[%s1081_s1 + $0xe8] sm:$0xf0]  ;;  %v523_v13 = vor.u32 %v699_v10, %v522_v9  ;;  %v696_v16 = vld [vmem:[%s1081_s1 + $0x10] sm:$0xf0]  ;;  %v606_v17 = vld [vmem:[%s1081_s1 + $0xc8] sm:$0xf] }
  0x21   :  { %372 = vmatpush.bf16.msra.mxu1 %v599_v30  ;;  %397 = vmatpush.bf16.msra.mxu3 %v615_v39  ;;  %v619_v14 = vor.u32 %v723_v12, %v618_v11  ;;  %v720_v18 = vld [vmem:[%s1081_s1 + $0xd0] sm:$0xf0]  ;;  %v511_v19 = vor.u32 %v696_v16, %v510_v15  ;;  %v442_v21 = vld [vmem:[%s1083_s2] sm:$0x7] }
  0x22   :  { %v607_v20 = vor.u32 %v720_v18, %v606_v17  ;;  %v444_v23 = vperm.slane %v442_v21, 0  ;;  %v446_v38 = vperm.slane %v442_v21, 2 }
  0x23   :  { %360 = vmatmul.bf16.vlgmr.msra.gmra.mxu0 %v978_v37 }
  0x24   :  { %404 = vmatpush.bf16.msrb.mxu0 %v595_v31  ;;  %373 = vmatmul.bf16.vlgmr.msra.gmra.mxu1 %v989_v42 }
  0x25   :  { %417 = vmatpush.bf16.msrb.mxu1 %v691_v32  ;;  %385 = vmatpush.bf16.msra.mxu2 %v507_v49 }
  0x26   :  { %398 = vmatpush.bf16.msra.mxu3 %v603_v52 }
  0x28   :  { %405 = vmatpush.bf16.msrb.mxu0 %v583_v45  ;;  %386 = vmatmul.bf16.vlgmr.msra.gmra.mxu2 %v978_v37  ;;  %v445_v45 = vperm.slane %v442_v21, 1 }
  0x29   :  { %418 = vmatpush.bf16.msrb.mxu1 %v679_v46  ;;  %399 = vmatmul.bf16.vlgmr.msra.gmra.mxu3 %v989_v42 }
  0x2c   :  { %406 = vmatpush.bf16.msrb.mxu0 %v571_v53 }
  0x2d   :  { %419 = vmatpush.bf16.msrb.mxu1 %v667_v54 }
  0x30   :  { %407 = vmatpush.bf16.msrb.mxu0 %v559_v59 }
  0x31   :  { %420 = vmatpush.bf16.msrb.mxu1 %v655_v60 }
  0x34   :  { %408 = vmatpush.bf16.msrb.mxu0 %v547_v1 }
  0x35   :  { %421 = vmatpush.bf16.msrb.mxu1 %v643_v2 }
  0x38   :  { %409 = vmatpush.bf16.msrb.mxu0 %v535_v7 }
  0x39   :  { %422 = vmatpush.bf16.msrb.mxu1 %v631_v8 }
  0x3c   :  { %410 = vmatpush.bf16.msrb.mxu0 %v523_v13 }
  0x3d   :  { %423 = vmatpush.bf16.msrb.mxu1 %v619_v14 }
  0x40   :  { %411 = vmatpush.bf16.msrb.mxu0 %v511_v19 }
  0x41   :  { %424 = vmatpush.bf16.msrb.mxu1 %v607_v20 }
  0x43   :  { %412 = vmatmul.bf16.vlgmr.msrb.gmra.mxu0 %v978_v37 }
  0x44   :  { %425 = vmatmul.bf16.vlgmr.msrb.gmra.mxu1 %v989_v42 }
  0xa0   :  { %v361_v22 = vpop.f32.mrf.mxu0 }
  0xa1   :  { %v374_v24 = vpop.f32.mrf.mxu1 }
  0xa2   :  { %v375_v25 = vadd.f32 %v374_v24, %v361_v22 }
  0xa4   :  { %v450_v26 = vadd.f32 %v444_v23, %v375_v25 }
  0xa6   :  { %v692_v27 = vmul.f32 -1.442695, %v450_v26 }
  0xa8   :  { %742 = vpow2.f32 %v692_v27  ;;  %v363_v28 = vpop.f32.mrf.mxu0 }
  0xa9   :  { %v376_v29 = vpop.f32.mrf.mxu1 }
  0xab   :  { %v387_v30 = vpop.f32.mrf.mxu2 }
  0xac   :  { %v400_v31 = vpop.f32.mrf.mxu3 }
  0xad   :  { %v401_v44 = vadd.f32 %v400_v31, %v387_v30 }
  0xae   :  { %v743_v32 = vpop.eup %742 }
  0xaf   :  { %v456_v33 = vadd.f32 1.0, %v743_v32  ;;  %v451_v50 = vadd.f32 %v445_v45, %v401_v44 }
  0xb1   :  { %744 = vrcp.f32 %v456_v33  ;;  %vm462_vm0 = vweird.f32 %v456_v33  ;;  %v468_v51 = vand.u32 2147483648, %v456_v33  ;;  %v466_v53 = vand.u32 2147483647, %v456_v33 }
  0xb3   :  { %v389_v34 = vpop.f32.mrf.mxu2  ;;  %v469_v56 = vor.u32 1.1754944e-38, %v468_v51  ;;  %vm467_vm3 = vcmp.eq.f32.partialorder %v466_v53, 8.507059e+37 }
  0xb4   :  { %v402_v35 = vpop.f32.mrf.mxu3 }
  0xb7   :  { %v745_v36 = vpop.eup %744 }
  0xb8   :  { %v458_v39 = vmul.f32 %v745_v36, %v456_v33  ;;  %vm463_vm1 = vweird.f32 %v745_v36 }
  0xb9   :  { %vm464_vm2 = vmor %vm462_vm0, %vm463_vm1 }
  0xba   :  { %v459_v43 = vsub.f32 1.0, %v458_v39 }
  0xbc   :  { %v460_v48 = vmul.f32 %v745_v36, %v459_v43 }
  0xbe   :  { %v461_v52 = vadd.f32 %v745_v36, %v460_v48 }
  0xc0   :  { %v413_v37 = vpop.f32.mrf.mxu0  ;;  %v465_v57 = vsel %vm464_vm2, %v745_v36, %v461_v52 }
  0xc1   :  { %v426_v40 = vpop.f32.mrf.mxu1  ;;  %v470_v59 = vsel %vm467_vm3, %v469_v56, %v465_v57 }
  0xc2   :  { %v427_v41 = vadd.f32 %v426_v40, %v413_v37 }
  0xc4   :  { %v452_v42 = vadd.f32 %v446_v38, %v427_v41 }
  0xc6   :  { %v693_v46 = vmul.f32 -1.442695, %v452_v42 }
  0xc8   :  { %746 = vpow2.f32 %v693_v46  ;;  %v415_v47 = vpop.f32.mrf.mxu0 }
  0xc9   :  { %v428_v49 = vpop.f32.mrf.mxu1  ;;  %748 = vtanh.f32 %v451_v50 }
  0xce   :  { %v747_v54 = vpop.eup %746 }
  0xcf   :  { %v476_v55 = vadd.f32 1.0, %v747_v54  ;;  %v749_v58 = vpop.eup %748 }
  0xd0   :  { %v492_v61 = vmul.f32 %v749_v58, %v470_v59 }
  0xd1   :  { %750 = vrcp.f32 %v476_v55  ;;  %v488_v0 = vand.u32 2147483648, %v476_v55  ;;  %v486_v2 = vand.u32 2147483647, %v476_v55  ;;  %vm482_vm5 = vweird.f32 %v476_v55 }
  0xd2   :  { %752 = vtanh.f32 %v492_v61 }
  0xd3   :  { %v489_v4 = vor.u32 1.1754944e-38, %v488_v0  ;;  %vm487_vm7 = vcmp.eq.f32.partialorder %v486_v2, 8.507059e+37 }
  0xd7   :  { %v751_v60 = vpop.eup %750 }
  0xd8   :  { %v478_v62 = vmul.f32 %v751_v60, %v476_v55  ;;  %vm483_vm4 = vweird.f32 %v751_v60  ;;  %v753_v6 = vpop.eup %752 }
  0xd9   :  { %vm484_vm6 = vmor %vm482_vm5, %vm483_vm4 }
  0xda   :  { %v479_v63 = vsub.f32 1.0, %v478_v62 }
  0xdc   :  { %v480_v1 = vmul.f32 %v751_v60, %v479_v63 }
  0xde   :  { %v481_v3 = vadd.f32 %v751_v60, %v480_v1 }
  0xe0   :  { %v485_v5 = vsel %vm484_vm6, %v751_v60, %v481_v3 }
  0xe1   :  { %v490_v7 = vsel %vm487_vm7, %v489_v4, %v485_v5 }
  0xe2   :  { %v494_v8 = vmul.f32 %v753_v6, %v490_v7 }
  0xe4   :  { %495 = vst [vmem:[%s1084_s3] sm:$0xff] %v494_v8 }

// kernel: vgg_forward.4
= control target key start
LH: loop header
LB: loop body
LE: loop exit
PB: predicated region body
PF: predicated region fallthrough
CT: control target
= control target key end

     0   :  { %s1568_s12 = smov 0   ;;  %s1570_s13 = smov 0   ;;  %s1852_s0 = inlined_call_operand.vmem [shape: bf16[2,10,10,8], index: 0, kind: input, shape index: {}]   ;;  %s1853_s1 = inlined_call_operand.vmem [shape: bf16[72,16], index: 1, kind: input, shape index: {}]   ;;  %s1854_s2 = inlined_call_operand.vmem [shape: f32[1,16], index: 2, kind: input, shape index: {}]   ;;  %s1855_s3 = inlined_call_operand.vmem [shape: bf16[2,4,4,16], index: 3, kind: output, shape index: {}]  }
   0x1   :  { %s1572_s14 = smov 0  }
   0x2 LB: > { %s25_s15 = sadd.s32 1, %s1538_s13  ;;  %p1362_p0 = scmp.ge.s32.totalorder %s1542_s14, 1  ;;  %s1542_s14 = sphi %s1572_s14, %s13_s14   ;;  %s1538_s13 = sphi %s1570_s13, %s1857_s13   ;;  %s1534_s12 = sphi %s1568_s12, %s1856_s12  }
   0x3   : > { %p27_p1 = scmp.ge.s32.totalorder %s25_s15, 2  ;;  %p151_p2 = scmp.lt.s32.totalorder %s1542_s14, 3 }
   0x5   : > { %s1859_s15 = smov (%p27_p1, %s25_s15), 0  ;;  %p152_p3 = pnand %p1362_p0, %p151_p2 }
   0x6   : > { %p179_p4 = scmp.lt.s32.totalorder (!%p152_p3), %s1534_s12, 1  ;;  %s1544_s20 = smov (!%p152_p3), 16  }
   0x7   : > { %155 = sbr.rel (%p152_p3) target bundleno = 506 (0x1fa), region = 32  ;;  %s1545_s21 = smov (!%p152_p3), 8  }
   0x8   : > { %s1546_s22 = smov (!%p152_p3), 24   ;;  %s1547_s23 = smov (!%p152_p3), 48  }
   0xc   : > { %s1861_s12 = smov (!%p179_p4, %s1534_s12), 1  ;;  %vm389_vm0 = vcmask 64512   ;;  %vm420_vm1 = vcmask 130048   ;;  %vm589_vm2 = vcmask 1043456   ;;  %vm482_vm3 = vcmask 195584  }
   0xd   : > { %s1490_s16 = smul.u32 80, %s1861_s12  ;;  %vm499_vm4 = vcmask 392192   ;;  %vm576_vm5 = vcmask 588800   ;;  %vm658_vm6 = vcmask 1041409   ;;  %vm662_vm7 = vcmask 1042434   ;;  %s1460_s9 = sshll.u32 %s1861_s12, 3 }
   0xe   : > { %vm666_vm8 = vcmask 1043459   ;;  %vm654_vm9 = vcmask 1040384   ;;  %vm1106_vm10 = vcmask 1041408   ;;  %s1799_s12 = scalar_lea.vmem %s1855_s3, %s1460_s9  ;;  %vm1270_vm11 = vcmask 123904  }
   0xf   : > { %s1592_s19 = scalar_lea.vmem %s1852_s0, %s1490_s16 }
  0x10   : > { %v1372_v0 = vld [vmem:[%s1592_s19 + $0x8] sm:$0xf]  ;;  %v1462_v1 = vld [vmem:[%s1592_s19 + $0x8] sm:$0x10]  ;;  %v1380_v2 = vld [vmem:[%s1592_s19 + $0x18] sm:$0xf] }
  0x11   : > { %v1373_v3 = vor.u32 %v1462_v1, %v1372_v0  ;;  %v1464_v4 = vld [vmem:[%s1592_s19 + $0x18] sm:$0x10]  ;;  %v1376_v5 = vld [vmem:[%s1592_s19 + $0x10] sm:$0xf]  ;;  %v1463_v6 = vld [vmem:[%s1592_s19 + $0x10] sm:$0x10] }
  0x12   : > { %v1381_v7 = vor.u32 %v1464_v4, %v1380_v2  ;;  %v1377_v8 = vor.u32 %v1463_v6, %v1376_v5  ;;  %v1388_v9 = vld [vmem:[%s1592_s19 + $0x28] sm:$0xf]  ;;  %v1466_v10 = vld [vmem:[%s1592_s19 + $0x28] sm:$0x10]  ;;  %v1384_v20 = vld [vmem:[%s1592_s19 + $0x20] sm:$0xf] }
  0x13   : > { %v360_v11 = vrot.slane %v1373_v3, 1  ;;  %v277_v12 = vshrl.u32 %v1373_v3, 16  ;;  %v279_v13 = vshll.u32 %v1373_v3, 16  ;;  %v1389_v15 = vor.u32 %v1466_v10, %v1388_v9  ;;  %v1465_v21 = vld [vmem:[%s1592_s19 + $0x20] sm:$0x10] }
  0x14   : > { %v293_v14 = vshll.u32 %v1381_v7, 16  ;;  %v291_v17 = vshrl.u32 %v1381_v7, 16  ;;  %v286_v18 = vshll.u32 %v1377_v8, 16  ;;  %v284_v23 = vshrl.u32 %v1377_v8, 16  ;;  %v1392_v33 = vld [vmem:[%s1592_s19 + $0x30] sm:$0xf] }
  0x15   : > { %371 = vrot.lane.b32.xlu1 %v360_v11, %s1544_s20  ;;  %v281_v16 = vrot.slane %v279_v13, 1  ;;  %v307_v24 = vshll.u32 %v1389_v15, 16  ;;  %v1385_v27 = vor.u32 %v1465_v21, %v1384_v20  ;;  %v361_v28 = vrot.slane %v1377_v8, 1  ;;  %v1467_v34 = vld [vmem:[%s1592_s19 + $0x30] sm:$0x10] }
  0x16   : > { %v295_v19 = vrot.slane %v293_v14, 1  ;;  %v288_v26 = vrot.slane %v286_v18, 1  ;;  %v305_v30 = vshrl.u32 %v1389_v15, 16  ;;  %v362_v35 = vrot.slane %v1381_v7, 1  ;;  %v1396_v40 = vld [vmem:[%s1592_s19 + $0x38] sm:$0xf] }
  0x17   : > { %v282_v22 = vor.u32 %v281_v16, %v277_v12  ;;  %373 = vrot.lane.b32.xlu2 %v361_v28, %s1544_s20  ;;  %v309_v31 = vrot.slane %v307_v24, 1  ;;  %v300_v32 = vshll.u32 %v1385_v27, 16  ;;  %v298_v37 = vshrl.u32 %v1385_v27, 16  ;;  %v1468_v41 = vld [vmem:[%s1592_s19 + $0x38] sm:$0x10] }
  0x18   : > { %v296_v25 = vor.u32 %v295_v19, %v291_v17  ;;  %v289_v29 = vor.u32 %v288_v26, %v284_v23  ;;  %v1393_v39 = vor.u32 %v1467_v34, %v1392_v33  ;;  %v1397_v44 = vor.u32 %v1468_v41, %v1396_v40  ;;  %v1400_v50 = vld [vmem:[%s1592_s19 + $0x40] sm:$0xf]  ;;  %v1469_v51 = vld [vmem:[%s1592_s19 + $0x40] sm:$0x10]  ;;  %v1404_v56 = vld [vmem:[%s1592_s19 + $0x48] sm:$0xf] }
  0x19   : > { %341 = vrot.lane.b32.xlu0 %v282_v22, %s1545_s21  ;;  %v310_v36 = vor.u32 %v309_v31, %v305_v30  ;;  %v302_v38 = vrot.slane %v300_v32, 1  ;;  %v363_v45 = vrot.slane %v1385_v27, 1  ;;  %v364_v47 = vrot.slane %v1389_v15, 1  ;;  %v1470_v57 = vld [vmem:[%s1592_s19 + $0x48] sm:$0x10] }
  0x1a   : > { %v314_v43 = vshll.u32 %v1393_v39, 16  ;;  %v321_v46 = vshll.u32 %v1397_v44, 16  ;;  %v312_v48 = vshrl.u32 %v1393_v39, 16  ;;  %v319_v52 = vshrl.u32 %v1397_v44, 16  ;;  %v1368_v2 = vld [vmem:[%s1592_s19] sm:$0xf] }
  0x1b   : > { %v303_v42 = vor.u32 %v302_v38, %v298_v37  ;;  %v1401_v55 = vor.u32 %v1469_v51, %v1400_v50  ;;  %v366_v60 = vrot.slane %v1397_v44, 1  ;;  %v1405_v61 = vor.u32 %v1470_v57, %v1404_v56  ;;  %v1461_v3 = vld [vmem:[%s1592_s19] sm:$0x10]  ;;  %v201_v18 = vld [vmem:[%s1592_s19 + $0x8] sm:$0xf] }
  0x1c   : > { %v316_v49 = vrot.slane %v314_v43, 1  ;;  %v323_v53 = vrot.slane %v321_v46, 1  ;;  %v365_v0 = vrot.slane %v1393_v39, 1  ;;  %v1369_v8 = vor.u32 %v1461_v3, %v1368_v2  ;;  %v205_v22 = vld [vmem:[%s1592_s19 + $0x18] sm:$0xf] }
  0x1d   : > { %345 = vrot.lane.b32.xlu1 %v296_v25, %s1545_s21  ;;  %v328_v59 = vshll.u32 %v1401_v55, 16  ;;  %v326_v62 = vshrl.u32 %v1401_v55, 16  ;;  %v335_v1 = vshll.u32 %v1405_v61, 16  ;;  %v367_v5 = vrot.slane %v1401_v55, 1  ;;  %v203_v26 = vld [vmem:[%s1592_s19 + $0x10] sm:$0xf] }
  0x1e   : > { %v317_v54 = vor.u32 %v316_v49, %v312_v48  ;;  %v324_v58 = vor.u32 %v323_v53, %v319_v52  ;;  %v333_v6 = vshrl.u32 %v1405_v61, 16  ;;  %v272_v10 = vshll.u32 %v1369_v8, 16  ;;  %v207_v32 = vld [vmem:[%s1592_s19 + $0x20] sm:$0xf]  ;;  %v209_v38 = vld [vmem:[%s1592_s19 + $0x28] sm:$0xf] }
  0x1f   : > { %375 = vrot.lane.b32.xlu2 %v362_v35, %s1544_s20  ;;  %v330_v63 = vrot.slane %v328_v59, 1  ;;  %v337_v7 = vrot.slane %v335_v1, 1  ;;  %v368_v11 = vrot.slane %v1405_v61, 1  ;;  %v270_v12 = vshrl.u32 %v1369_v8, 16  ;;  %v213_v43 = vld [vmem:[%s1592_s19 + $0x38] sm:$0xf] }
  0x20   : > { %v274_v13 = vrot.slane %v272_v10, 1  ;;  %v359_v14 = vrot.slane %v1369_v8, 1  ;;  %v215_v51 = vld [vmem:[%s1592_s19 + $0x40] sm:$0xf]  ;;  %v217_v57 = vld [vmem:[%s1592_s19 + $0x48] sm:$0xf] }
  0x21   : > { %343 = vrot.lane.b32.xlu0 %v289_v29, %s1545_s21  ;;  %v331_v4 = vor.u32 %v330_v63, %v326_v62  ;;  %v338_v9 = vor.u32 %v337_v7, %v333_v6  ;;  %v524_v2 = vld [vmem:[%s1853_s1 + $0x20] sm:$0xf]  ;;  %v1474_v6 = vld [vmem:[%s1853_s1 + $0x18] sm:$0xff]  ;;  %v1473_v7 = vld [vmem:[%s1853_s1 + $0x10] sm:$0xff] }
  0x22   : > { %v275_v15 = vor.u32 %v274_v13, %v270_v12  ;;  %v566_v3 = vunpack.c.l.b16 %v524_v2  ;;  %v1472_v8 = vld [vmem:[%s1853_s1 + $0x8] sm:$0xff] }
  0x25   : > { %349 = vrot.lane.b32.xlu1 %v310_v36, %s1545_s21 }
  0x27   : > { %377 = vrot.lane.b32.xlu2 %v363_v45, %s1544_s20  ;;  %v211_v45 = vld [vmem:[%s1592_s19 + $0x30] sm:$0xf] }
  0x29   : > { %347 = vrot.lane.b32.xlu0 %v303_v42, %s1545_s21 }
  0x2d   : > { %379 = vrot.lane.b32.xlu1 %v364_v47, %s1544_s20 }
  0x2f   : > { %353 = vrot.lane.b32.xlu2 %v324_v58, %s1545_s21 }
  0x31   : > { %351 = vrot.lane.b32.xlu0 %v317_v54, %s1545_s21 }
  0x35   : > { %383 = vrot.lane.b32.xlu1 %v366_v60, %s1544_s20  ;;  %v199_v60 = vld [vmem:[%s1592_s19] sm:$0xf] }
  0x37   : > { %355 = vrot.lane.b32.xlu2 %v331_v4, %s1545_s21  ;;  %v571_v4 = vpack.c.b16 %v566_v3, %v566_v3 }
  0x39   : > { %381 = vrot.lane.b32.xlu0 %v365_v0, %s1544_s20 }
  0x3d   : > { %385 = vrot.lane.b32.xlu1 %v367_v5, %s1544_s20  ;;  %v591_v5 = vsel %vm589_vm2, %v571_v4, 0 }
  0x3e   : > { %596 = vmatpush.bf16.msra.mxu0 %v591_v5  ;;  %1475 = vmatpush.bf16.msra.mxu1 %v591_v5 }
  0x3f   : > { %387 = vrot.lane.b32.xlu2 %v368_v11, %s1544_s20  ;;  %1476 = vmatpush.bf16.msra.mxu2 %v591_v5 }
  0x40   : > { %1477 = vmatpush.bf16.msra.mxu3 %v591_v5 }
  0x41   : > { %357 = vrot.lane.b32.xlu0 %v338_v9, %s1545_s21  ;;  %v1471_v9 = vld [vmem:[%s1853_s1] sm:$0xff] }
  0x42   : > { %597 = vmatpush.bf16.msra.mxu0 %v1474_v6  ;;  %1478 = vmatpush.bf16.msra.mxu1 %v1474_v6 }
  0x43   : > { %1479 = vmatpush.bf16.msra.mxu2 %v1474_v6 }
  0x44   : > { %1480 = vmatpush.bf16.msra.mxu3 %v1474_v6 }
  0x45   : > { %369 = vrot.lane.b32.xlu1 %v359_v14, %s1544_s20 }
  0x46   : > { %598 = vmatpush.bf16.msra.mxu0 %v1473_v7  ;;  %1481 = vmatpush.bf16.msra.mxu1 %v1473_v7 }
  0x47   : > { %1482 = vmatpush.bf16.msra.mxu2 %v1473_v7 }
  0x48   : > { %1483 = vmatpush.bf16.msra.mxu3 %v1473_v7 }
  0x49   : > { %339 = vrot.lane.b32.xlu0 %v275_v15, %s1545_s21 }
  0x4a   : > { %599 = vmatpush.bf16.msra.mxu0 %v1472_v8  ;;  %1484 = vmatpush.bf16.msra.mxu1 %v1472_v8 }
  0x4b   : > { %1485 = vmatpush.bf16.msra.mxu2 %v1472_v8 }
  0x4c   : > { %1486 = vmatpush.bf16.msra.mxu3 %v1472_v8 }
  0x4e   : > { %600 = vmatpush.bf16.msra.mxu0 %v1471_v9  ;;  %1487 = vmatpush.bf16.msra.mxu1 %v1471_v9 }
  0x4f   : > { %1488 = vmatpush.bf16.msra.mxu2 %v1471_v9 }
  0x50   : > { %1489 = vmatpush.bf16.msra.mxu3 %v1471_v9 }
  0x71   : > { %v374_v16 = vpop.permute.xlu2 %373 }
  0x79   : > { %v376_v24 = vpop.permute.xlu2 %375 }
  0x81   : > { %v378_v33 = vpop.permute.xlu2 %377 }
  0x87   : > { %v372_v17 = vpop.permute.xlu1 %371 }
  0x89   : > { %v354_v40 = vpop.permute.xlu2 %353 }
  0x8a   : > { %v413_v46 = vsel %vm389_vm0, %v213_v43, %v354_v40 }
  0x8b   : > { %v342_v19 = vpop.permute.xlu0 %341 }
  0x8c   : > { %v395_v20 = vsel %vm389_vm0, %v201_v18, %v342_v19 }
  0x8d   : > { %v1637_v21 = vsel %vm420_vm1, %v395_v20, %v372_v17 }
  0x8e   : > { %449 = vrot.lane.b32.xlu2 %v1637_v21, %s1546_s22 }
  0x8f   : > { %v346_v23 = vpop.permute.xlu1 %345 }
  0x90   : > { %v401_v25 = vsel %vm389_vm0, %v205_v22, %v346_v23 }
  0x91   : > { %v1646_v29 = vsel %vm420_vm1, %v401_v25, %v376_v24  ;;  %v356_v52 = vpop.permute.xlu2 %355 }
  0x92   : > { %v416_v53 = vsel %vm389_vm0, %v215_v51, %v356_v52 }
  0x93   : > { %v344_v27 = vpop.permute.xlu0 %343 }
  0x94   : > { %v398_v28 = vsel %vm389_vm0, %v203_v26, %v344_v27 }
  0x95   : > { %v1649_v30 = vsel %vm420_vm1, %v398_v28, %v374_v16 }
  0x96   : > { %466 = vrot.lane.b32.xlu1 %v1649_v30, %s1547_s23  ;;  %451 = vrot.lane.b32.xlu0 %v1649_v30, %s1546_s22 }
  0x97   : > { %v350_v31 = vpop.permute.xlu1 %349  ;;  %468 = vrot.lane.b32.xlu2 %v1646_v29, %s1547_s23 }
  0x98   : > { %v407_v41 = vsel %vm389_vm0, %v209_v38, %v350_v31 }
  0x99   : > { %v388_v59 = vpop.permute.xlu2 %387 }
  0x9b   : > { %v348_v34 = vpop.permute.xlu0 %347 }
  0x9c   : > { %v404_v35 = vsel %vm389_vm0, %v207_v32, %v348_v34 }
  0x9d   : > { %v1660_v36 = vsel %vm420_vm1, %v404_v35, %v378_v33 }
  0x9e   : > { %455 = vrot.lane.b32.xlu1 %v1660_v36, %s1546_s22  ;;  %453 = vrot.lane.b32.xlu0 %v1646_v29, %s1546_s22 }
  0x9f   : > { %v380_v37 = vpop.permute.xlu1 %379  ;;  %470 = vrot.lane.b32.xlu2 %v1660_v36, %s1547_s23 }
  0xa0   : > { %v1671_v42 = vsel %vm420_vm1, %v407_v41, %v380_v37 }
  0xa3   : > { %v352_v39 = vpop.permute.xlu0 %351 }
  0xa4   : > { %v410_v47 = vsel %vm389_vm0, %v211_v45, %v352_v39 }
  0xa6   : > { %457 = vrot.lane.b32.xlu1 %v1671_v42, %s1546_s22  ;;  %472 = vrot.lane.b32.xlu0 %v1671_v42, %s1547_s23 }
  0xa7   : > { %v384_v44 = vpop.permute.xlu1 %383 }
  0xa8   : > { %v1682_v49 = vsel %vm420_vm1, %v413_v46, %v384_v44 }
  0xab   : > { %v382_v48 = vpop.permute.xlu0 %381 }
  0xac   : > { %v1685_v50 = vsel %vm420_vm1, %v410_v47, %v382_v48 }
  0xad   : > { %459 = vrot.lane.b32.xlu2 %v1685_v50, %s1546_s22 }
  0xae   : > { %476 = vrot.lane.b32.xlu1 %v1682_v49, %s1547_s23  ;;  %474 = vrot.lane.b32.xlu0 %v1685_v50, %s1547_s23 }
  0xaf   : > { %v386_v54 = vpop.permute.xlu1 %385 }
  0xb0   : > { %v438_v55 = vsel %vm420_vm1, %v416_v53, %v386_v54 }
  0xb3   : > { %v358_v56 = vpop.permute.xlu0 %357 }
  0xb4   : > { %v419_v58 = vsel %vm389_vm0, %v217_v57, %v358_v56  ;;  %v1752_v56 = vld [vmem:[%s1854_s2] ss:$0 sm:$0xff] }
  0xb5   : > { %461 = vrot.lane.b32.xlu2 %v1682_v49, %s1546_s22  ;;  %v440_v61 = vsel %vm420_vm1, %v419_v58, %v388_v59 }
  0xb6   : > { %478 = vrot.lane.b32.xlu1 %v438_v55, %s1547_s23  ;;  %463 = vrot.lane.b32.xlu0 %v438_v55, %s1546_s22 }
  0xb7   : > { %v370_v62 = vpop.permute.xlu1 %369 }
  0xbb   : > { %v340_v63 = vpop.permute.xlu0 %339 }
  0xbc   : > { %v392_v0 = vsel %vm389_vm0, %v199_v60, %v340_v63 }
  0xbd   : > { %480 = vrot.lane.b32.xlu2 %v440_v61, %s1547_s23  ;;  %v422_v1 = vsel %vm420_vm1, %v392_v0, %v370_v62 }
  0xe8   : > { %v450_v10 = vpop.permute.xlu2 %449 }
  0xe9   : > { %v484_v12 = vsel %vm482_vm3, %v422_v1, %v450_v10 }
  0xf1   : > { %v469_v11 = vpop.permute.xlu2 %468 }
  0xf9   : > { %v471_v20 = vpop.permute.xlu2 %470 }
 0x107   : > { %v460_v26 = vpop.permute.xlu2 %459 }
 0x108   : > { %v467_v13 = vpop.permute.xlu1 %466  ;;  %v452_v14 = vpop.permute.xlu0 %451  ;;  %v494_v38 = vsel %vm482_vm3, %v1671_v42, %v460_v26 }
 0x109   : > { %v501_v15 = vsel %vm499_vm4, %v484_v12, %v467_v13  ;;  %v486_v16 = vsel %vm482_vm3, %v1637_v21, %v452_v14 }
 0x10a   : > { %v537_v17 = vunpack.c.l.b16 %v501_v15  ;;  %v503_v18 = vsel %vm499_vm4, %v486_v16, %v469_v11 }
 0x10b   : > { %v538_v19 = vunpack.c.l.b16 %v503_v18 }
 0x10d   : > { %v545_v22 = vpack.c.b16 %v538_v19, %v537_v17 }
 0x10f   : > { %1422 = vmatmul.msk.bf16.vlgmr.msra.gmra.mxu0 %vm576_vm5, %v545_v22  ;;  %v462_v37 = vpop.permute.xlu2 %461 }
 0x110   : > { %v456_v23 = vpop.permute.xlu1 %455  ;;  %v454_v24 = vpop.permute.xlu0 %453  ;;  %v496_v47 = vsel %vm482_vm3, %v1685_v50, %v462_v37 }
 0x111   : > { %v488_v25 = vsel %vm482_vm3, %v1649_v30, %v454_v24  ;;  %v490_v21 = vsel %vm482_vm3, %v1646_v29, %v456_v23 }
 0x112   : > { %v505_v27 = vsel %vm499_vm4, %v488_v25, %v471_v20 }
 0x113   : > { %v539_v33 = vunpack.c.l.b16 %v505_v27 }
 0x117   : > { %v481_v46 = vpop.permute.xlu2 %480 }
 0x118   : > { %v458_v28 = vpop.permute.xlu1 %457  ;;  %v473_v31 = vpop.permute.xlu0 %472 }
 0x119   : > { %v507_v32 = vsel %vm499_vm4, %v490_v21, %v473_v31  ;;  %v492_v30 = vsel %vm482_vm3, %v1660_v36, %v458_v28 }
 0x11a   : > { %v540_v34 = vunpack.c.l.b16 %v507_v32 }
 0x11c   : > { %v546_v35 = vpack.c.b16 %v540_v34, %v539_v33 }
 0x11e   : > { %1423 = vmatmul.msk.bf16.vlgmr.msra.gmra.mxu1 %vm576_vm5, %v546_v35 }
 0x120   : > { %v477_v39 = vpop.permute.xlu1 %476  ;;  %v475_v40 = vpop.permute.xlu0 %474 }
 0x121   : > { %v511_v29 = vsel %vm499_vm4, %v494_v38, %v477_v39  ;;  %v509_v41 = vsel %vm499_vm4, %v492_v30, %v475_v40 }
 0x122   : > { %v542_v43 = vunpack.c.l.b16 %v511_v29  ;;  %v541_v44 = vunpack.c.l.b16 %v509_v41 }
 0x124   : > { %v547_v45 = vpack.c.b16 %v542_v43, %v541_v44 }
 0x126   : > { %1424 = vmatmul.msk.bf16.vlgmr.msra.gmra.mxu2 %vm576_vm5, %v547_v45 }
 0x128   : > { %v479_v48 = vpop.permute.xlu1 %478  ;;  %v464_v42 = vpop.permute.xlu0 %463 }
 0x129   : > { %v513_v51 = vsel %vm499_vm4, %v496_v47, %v479_v48  ;;  %v498_v36 = vsel %vm482_vm3, %v1682_v49, %v464_v42 }
 0x12a   : > { %v543_v52 = vunpack.c.l.b16 %v513_v51  ;;  %v515_v53 = vsel %vm499_vm4, %v498_v36, %v481_v46 }
 0x12b   : > { %v544_v54 = vunpack.c.l.b16 %v515_v53 }
 0x12d   : > { %v548_v55 = vpack.c.b16 %v544_v54, %v543_v52 }
 0x12f   : > { %1425 = vmatmul.msk.bf16.vlgmr.msra.gmra.mxu3 %vm576_vm5, %v548_v55 }
 0x18c   : > { %v602_v50 = vpop.f32.mrf.mxu0 }
 0x18d   : > { %v603_v57 = vadd.f32 %v1752_v56, %v602_v50 }
 0x18f   : > { %v622_v58 = vmax.f32 %v603_v57, 0.0 }
 0x191   : > { %v630_v59 = vpack.c.bf16 %v622_v58, %v622_v58 }
 0x193   : > { %v646_v49 = vrot.slane %v630_v59, 3 }
 0x194   : > { %v604_v60 = vpop.f32.mrf.mxu0 }
 0x195   : > { %v659_v61 = vsel %vm658_vm6, %v630_v59, %v646_v49  ;;  %v663_v62 = vsel %vm662_vm7, %v630_v59, %v646_v49  ;;  %v667_v1 = vsel %vm666_vm8, %v630_v59, %v646_v49  ;;  %v657_v2 = vsel %vm654_vm9, %v630_v59, %v646_v49 }
 0x196   : > { %v661_v63 = vrot.slane %v659_v61, 1  ;;  %v665_v0 = vrot.slane %v663_v62, 2  ;;  %v605_v3 = vadd.f32 %v1752_v56, %v604_v60  ;;  %v669_v4 = vrot.slane %v667_v1, 3 }
 0x197   : > { %v786_v6 = vunpack.c.l.bf16 %v657_v2 }
 0x198   : > { %v623_v5 = vmax.f32 %v605_v3, 0.0  ;;  %v787_v7 = vunpack.c.l.bf16 %v661_v63  ;;  %v788_v8 = vunpack.c.l.bf16 %v665_v0  ;;  %v789_v12 = vunpack.c.l.bf16 %v669_v4 }
 0x199   : > { %v1426_v14 = vrot.slane %v786_v6, 9 }
 0x19a   : > { %v631_v9 = vpack.c.bf16 %v623_v5, %v623_v5  ;;  %v1427_v15 = vrot.slane %v787_v7, 9  ;;  %v1428_v16 = vrot.slane %v788_v8, 9  ;;  %v1429_v27 = vrot.slane %v789_v12, 9 }
 0x19b   : > { %v607_v10 = vpop.f32.mrf.mxu1  ;;  %v946_v34 = vmax.f32 %v786_v6, %v1426_v14 }
 0x19c   : > { %v608_v11 = vadd.f32 %v1752_v56, %v607_v10  ;;  %v647_v13 = vrot.slane %v631_v9, 3  ;;  %v947_v35 = vmax.f32 %v787_v7, %v1427_v15  ;;  %v948_v37 = vmax.f32 %v788_v8, %v1428_v16 }
 0x19d   : > { %v949_v41 = vmax.f32 %v789_v12, %v1429_v27 }
 0x19e   : > { %v624_v17 = vmax.f32 %v608_v11, 0.0  ;;  %v672_v18 = vsel %vm654_vm9, %v631_v9, %v647_v13  ;;  %v673_v19 = vsel %vm658_vm6, %v631_v9, %v647_v13  ;;  %v676_v20 = vsel %vm662_vm7, %v631_v9, %v647_v13 }
 0x19f   : > { %v679_v22 = vsel %vm666_vm8, %v631_v9, %v647_v13  ;;  %v675_v23 = vrot.slane %v673_v19, 1  ;;  %v678_v24 = vrot.slane %v676_v20, 2  ;;  %v790_v26 = vunpack.c.l.bf16 %v672_v18 }
 0x1a0   : > { %v681_v25 = vrot.slane %v679_v22, 3  ;;  %v632_v21 = vpack.c.bf16 %v624_v17, %v624_v17 }
 0x1a1   : > { %v791_v28 = vunpack.c.l.bf16 %v675_v23  ;;  %v792_v31 = vunpack.c.l.bf16 %v678_v24  ;;  %v1430_v33 = vrot.slane %v790_v26, 9 }
 0x1a2   : > { %v793_v32 = vunpack.c.l.bf16 %v681_v25  ;;  %v648_v38 = vrot.slane %v632_v21, 3 }
 0x1a3   : > { %v1431_v30 = vrot.slane %v791_v28, 9  ;;  %v1432_v39 = vrot.slane %v792_v31, 9  ;;  %v950_v29 = vmax.f32 %v790_v26, %v1430_v33  ;;  %v609_v62 = vpop.f32.mrf.mxu1 }
 0x1a4   : > { %v1433_v40 = vrot.slane %v793_v32, 9  ;;  %v685_v43 = vsel %vm658_vm6, %v632_v21, %v648_v38  ;;  %v688_v44 = vsel %vm662_vm7, %v632_v21, %v648_v38  ;;  %v691_v45 = vsel %vm666_vm8, %v632_v21, %v648_v38 }
 0x1a5   : > { %v951_v46 = vmax.f32 %v791_v28, %v1431_v30  ;;  %v952_v47 = vmax.f32 %v792_v31, %v1432_v39  ;;  %v1042_v42 = vmax.f32 %v946_v34, %v950_v29  ;;  %v684_v51 = vsel %vm654_vm9, %v632_v21, %v648_v38 }
 0x1a6   : > { %v953_v48 = vmax.f32 %v793_v32, %v1433_v40  ;;  %v687_v36 = vrot.slane %v685_v43, 1  ;;  %v690_v52 = vrot.slane %v688_v44, 2  ;;  %v693_v53 = vrot.slane %v691_v45, 3 }
 0x1a7   : > { %v1043_v54 = vmax.f32 %v947_v35, %v951_v46  ;;  %v1044_v55 = vmax.f32 %v948_v37, %v952_v47  ;;  %v1058_v57 = vpack.c.bf16 %v1042_v42, %v1042_v42  ;;  %v794_v63 = vunpack.c.l.bf16 %v684_v51 }
 0x1a8   : > { %v1045_v50 = vmax.f32 %v949_v41, %v953_v48  ;;  %v795_v0 = vunpack.c.l.bf16 %v687_v36  ;;  %v796_v1 = vunpack.c.l.bf16 %v690_v52  ;;  %v797_v2 = vunpack.c.l.bf16 %v693_v53 }
 0x1a9   : > { %v612_v58 = vpop.f32.mrf.mxu2  ;;  %v1059_v59 = vpack.c.bf16 %v1043_v54, %v1043_v54  ;;  %v1060_v49 = vpack.c.bf16 %v1044_v55, %v1044_v55  ;;  %v1090_v61 = vrot.slane %v1058_v57, 2  ;;  %v610_v7 = vadd.f32 %v1752_v56, %v609_v62 }
 0x1aa   : > { %v1061_v60 = vpack.c.bf16 %v1045_v50, %v1045_v50  ;;  %v613_v12 = vadd.f32 %v1752_v56, %v612_v58  ;;  %v1434_v13 = vrot.slane %v794_v63, 9  ;;  %v1435_v14 = vrot.slane %v795_v0, 9 }
 0x1ab   : > { %v1091_v3 = vrot.slane %v1059_v59, 2  ;;  %v1092_v4 = vrot.slane %v1060_v49, 2  ;;  %v1109_v6 = vsel %vm1106_vm10, %v1058_v57, %v1090_v61  ;;  %v625_v11 = vmax.f32 %v610_v7, 0.0 }
 0x1ac   : > { %v1093_v5 = vrot.slane %v1061_v60, 2  ;;  %1155 = vst [vmem:[#allocation1] ss:$2 sm:$0xff] %v1109_v6  ;;  %v1436_v15 = vrot.slane %v796_v1, 9  ;;  %v1437_v16 = vrot.slane %v797_v2, 9  ;;  %v626_v18 = vmax.f32 %v613_v12, 0.0 }
 0x1ad   : > { %v1112_v8 = vsel %vm1106_vm10, %v1059_v59, %v1091_v3  ;;  %v1115_v9 = vsel %vm1106_vm10, %v1060_v49, %v1092_v4  ;;  %v633_v17 = vpack.c.bf16 %v625_v11, %v625_v11  ;;  %v954_v24 = vmax.f32 %v794_v63, %v1434_v13 }
 0x1ae   : > { %v1118_v10 = vsel %vm1106_vm10, %v1061_v60, %v1093_v5  ;;  %1159 = vst [vmem:[#allocation1 + $0x10] ss:$2 sm:$0xff] %v1112_v8  ;;  %v634_v22 = vpack.c.bf16 %v626_v18, %v626_v18  ;;  %v955_v25 = vmax.f32 %v795_v0, %v1435_v14  ;;  %v956_v26 = vmax.f32 %v796_v1, %v1436_v15 }
 0x1af   : > { %1163 = vst [vmem:[#allocation1 + $0x20] ss:$2 sm:$0xff] %v1115_v9  ;;  %v649_v20 = vrot.slane %v633_v17, 3  ;;  %v957_v27 = vmax.f32 %v797_v2, %v1437_v16 }
 0x1b0   : > { %1167 = vst [vmem:[#allocation1 + $0x30] ss:$2 sm:$0xff] %v1118_v10  ;;  %v650_v41 = vrot.slane %v634_v22, 3 }
 0x1b1   : > { %v614_v19 = vpop.f32.mrf.mxu2  ;;  %v696_v28 = vsel %vm654_vm9, %v633_v17, %v649_v20  ;;  %v697_v31 = vsel %vm658_vm6, %v633_v17, %v649_v20  ;;  %v700_v32 = vsel %vm662_vm7, %v633_v17, %v649_v20  ;;  %v703_v33 = vsel %vm666_vm8, %v633_v17, %v649_v20 }
 0x1b2   : > { %v615_v23 = vadd.f32 %v1752_v56, %v614_v19  ;;  %v699_v34 = vrot.slane %v697_v31, 1  ;;  %v702_v35 = vrot.slane %v700_v32, 2  ;;  %v705_v37 = vrot.slane %v703_v33, 3  ;;  %v617_v53 = vpop.f32.mrf.mxu3 }
 0x1b3   : > { %v1156_v21 = vld.sshfl [vmem:[#allocation1] sm:$0xff pattern:$0x75643120]  ;;  %v798_v38 = vunpack.c.l.bf16 %v696_v28  ;;  %v1781_v52 = vsel %vm654_vm9, %v634_v22, %v650_v41  ;;  %v709_v60 = vsel %vm658_vm6, %v634_v22, %v650_v41  ;;  %v712_v3 = vsel %vm662_vm7, %v634_v22, %v650_v41 }
 0x1b4   : > { %v1206_v40 = vunpack.c.l.b16 %v1156_v21  ;;  %v627_v43 = vmax.f32 %v615_v23, 0.0  ;;  %v799_v44 = vunpack.c.l.bf16 %v699_v34  ;;  %v800_v45 = vunpack.c.l.bf16 %v702_v35 }
 0x1b5   : > { %v1160_v30 = vld.sshfl [vmem:[#allocation1 + $0x10] sm:$0xff pattern:$0x75643120]  ;;  %v801_v46 = vunpack.c.l.bf16 %v705_v37  ;;  %v1438_v47 = vrot.slane %v798_v38, 9  ;;  %v711_v2 = vrot.slane %v709_v60, 1  ;;  %v715_v4 = vsel %vm666_vm8, %v634_v22, %v650_v41 }
 0x1b6   : > { %v1164_v39 = vld.sshfl [vmem:[#allocation1 + $0x20] sm:$0xff pattern:$0x75643120]  ;;  %v1207_v29 = vunpack.c.l.b16 %v1160_v30  ;;  %v1439_v54 = vrot.slane %v799_v44, 9  ;;  %v1440_v55 = vrot.slane %v800_v45, 9  ;;  %v714_v10 = vrot.slane %v712_v3, 2 }
 0x1b7   : > { %v1168_v48 = vld.sshfl [vmem:[#allocation1 + $0x30] sm:$0xff pattern:$0x75643120]  ;;  %v1208_v42 = vunpack.c.l.b16 %v1164_v39  ;;  %v1441_v50 = vrot.slane %v801_v46, 9  ;;  %v958_v57 = vmax.f32 %v798_v38, %v1438_v47  ;;  %v717_v11 = vrot.slane %v715_v4, 3 }
 0x1b8   : > { %v1209_v51 = vunpack.c.l.b16 %v1168_v48  ;;  %v1222_v36 = vrot.slane %v1207_v29, 7  ;;  %v959_v61 = vmax.f32 %v799_v44, %v1439_v54  ;;  %v960_v62 = vmax.f32 %v800_v45, %v1440_v55 }
 0x1b9   : > { %v1224_v59 = vrot.slane %v1208_v42, 6  ;;  %v961_v63 = vmax.f32 %v801_v46, %v1441_v50  ;;  %v1046_v0 = vmax.f32 %v954_v24, %v958_v57  ;;  %v618_v12 = vadd.f32 %v1752_v56, %v617_v53 }
 0x1ba   : > { %v1223_v58 = vsel %vm658_vm6, %v1222_v36, %v1206_v40  ;;  %v1226_v49 = vrot.slane %v1209_v51, 5  ;;  %v1047_v5 = vmax.f32 %v955_v25, %v959_v61  ;;  %v1048_v6 = vmax.f32 %v956_v26, %v960_v62  ;;  %v619_v28 = vpop.f32.mrf.mxu3 }
 0x1bb   : > { %v1225_v1 = vsel %vm662_vm7, %v1224_v59, %v1223_v58  ;;  %v1049_v7 = vmax.f32 %v957_v27, %v961_v63  ;;  %v1062_v8 = vpack.c.bf16 %v1046_v0, %v1046_v0  ;;  %v802_v18 = vunpack.c.l.bf16 %v1781_v52 }
 0x1bc   : > { %v1227_v9 = vsel %vm666_vm8, %v1226_v49, %v1225_v1  ;;  %v1063_v13 = vpack.c.bf16 %v1047_v5, %v1047_v5  ;;  %v1064_v14 = vpack.c.bf16 %v1048_v6, %v1048_v6  ;;  %v803_v19 = vunpack.c.l.bf16 %v711_v2 }
 0x1bd   : > { %v1065_v15 = vpack.c.bf16 %v1049_v7, %v1049_v7  ;;  %v1094_v16 = vrot.slane %v1062_v8, 2  ;;  %v1246_v17 = vpack.c.b16 %v1227_v9, %v1227_v9  ;;  %v635_v20 = vpack.c.bf16 %v627_v43, %v627_v43 }
 0x1be   : > { %v1095_v22 = vrot.slane %v1063_v13, 2  ;;  %v1096_v23 = vrot.slane %v1064_v14, 2  ;;  %v804_v27 = vunpack.c.l.bf16 %v714_v10  ;;  %v805_v21 = vunpack.c.l.bf16 %v717_v11 }
 0x1bf   : > { %v1097_v24 = vrot.slane %v1065_v15, 2  ;;  %v1121_v25 = vsel %vm1106_vm10, %v1062_v8, %v1094_v16  ;;  %v1250_v26 = vrot.slane %v1246_v17, 2  ;;  %v1442_v35 = vrot.slane %v802_v18, 9 }
 0x1c0   : > { %1170 = vst [vmem:[#allocation1] ss:$2 sm:$0xff] %v1121_v25  ;;  %v1124_v31 = vsel %vm1106_vm10, %v1063_v13, %v1095_v22  ;;  %v1127_v32 = vsel %vm1106_vm10, %v1064_v14, %v1096_v23  ;;  %v1443_v37 = vrot.slane %v803_v19, 9  ;;  %v651_v38 = vrot.slane %v635_v20, 3 }
 0x1c1   : > { %v1130_v33 = vsel %vm1106_vm10, %v1065_v15, %v1097_v24  ;;  %1173 = vst [vmem:[#allocation1 + $0x10] ss:$2 sm:$0xff] %v1124_v31  ;;  %v1256_v34 = vsel %vm1106_vm10, %v1246_v17, %v1250_v26  ;;  %v628_v30 = vmax.f32 %v618_v12, 0.0  ;;  %v620_v39 = vadd.f32 %v1752_v56, %v619_v28 }
 0x1c2   : > { %1176 = vst [vmem:[#allocation1 + $0x20] ss:$2 sm:$0xff] %v1127_v32  ;;  %v1444_v40 = vrot.slane %v804_v27, 9  ;;  %v1445_v29 = vrot.slane %v805_v21, 9  ;;  %v720_v41 = vsel %vm654_vm9, %v635_v20, %v651_v38  ;;  %v721_v43 = vsel %vm658_vm6, %v635_v20, %v651_v38 }
 0x1c3   : > { %1179 = vst [vmem:[#allocation1 + $0x30] ss:$2 sm:$0xff] %v1130_v33  ;;  %v724_v44 = vsel %vm662_vm7, %v635_v20, %v651_v38  ;;  %v727_v45 = vsel %vm666_vm8, %v635_v20, %v651_v38  ;;  %v723_v46 = vrot.slane %v721_v43, 1  ;;  %v806_v42 = vunpack.c.l.bf16 %v720_v41 }
 0x1c4   : > { %1271 = vst.msk [vmem:[%s1799_s12] sm:$0x3] %vm1270_vm11, %v1256_v34  ;;  %v726_v47 = vrot.slane %v724_v44, 2  ;;  %v729_v48 = vrot.slane %v727_v45, 3  ;;  %v962_v51 = vmax.f32 %v802_v18, %v1442_v35  ;;  %v963_v36 = vmax.f32 %v803_v19, %v1443_v37 }
 0x1c5   : > { %v636_v52 = vpack.c.bf16 %v628_v30, %v628_v30  ;;  %v629_v53 = vmax.f32 %v620_v39, 0.0  ;;  %v807_v54 = vunpack.c.l.bf16 %v723_v46  ;;  %v1446_v57 = vrot.slane %v806_v42, 9 }
 0x1c6   : > { %v808_v55 = vunpack.c.l.bf16 %v726_v47  ;;  %v809_v50 = vunpack.c.l.bf16 %v729_v48  ;;  %v964_v58 = vmax.f32 %v804_v27, %v1444_v40  ;;  %v965_v59 = vmax.f32 %v805_v21, %v1445_v29 }
 0x1c7   : > { %v1171_v56 = vld.sshfl [vmem:[#allocation1] sm:$0xff pattern:$0x75643120]  ;;  %v652_v61 = vrot.slane %v636_v52, 3  ;;  %v1447_v62 = vrot.slane %v807_v54, 9  ;;  %v966_v1 = vmax.f32 %v806_v42, %v1446_v57  ;;  %v637_v7 = vpack.c.bf16 %v629_v53, %v629_v53 }
 0x1c8   : > { %v1174_v49 = vld.sshfl [vmem:[#allocation1 + $0x10] sm:$0xff pattern:$0x75643120]  ;;  %v1210_v60 = vunpack.c.l.b16 %v1171_v56  ;;  %v1448_v63 = vrot.slane %v808_v55, 9  ;;  %v1449_v0 = vrot.slane %v809_v50, 9 }
 0x1c9   : > { %v1177_v2 = vld.sshfl [vmem:[#allocation1 + $0x20] sm:$0xff pattern:$0x75643120]  ;;  %v1211_v4 = vunpack.c.l.b16 %v1174_v49  ;;  %v733_v6 = vsel %vm658_vm6, %v636_v52, %v652_v61  ;;  %v967_v8 = vmax.f32 %v807_v54, %v1447_v62  ;;  %v1050_v11 = vmax.f32 %v962_v51, %v966_v1 }
 0x1ca   : > { %v1180_v3 = vld.sshfl [vmem:[#allocation1 + $0x30] sm:$0xff pattern:$0x75643120]  ;;  %v1212_v5 = vunpack.c.l.b16 %v1177_v2  ;;  %v968_v9 = vmax.f32 %v808_v55, %v1448_v63  ;;  %v969_v10 = vmax.f32 %v809_v50, %v1449_v0  ;;  %v732_v15 = vsel %vm654_vm9, %v636_v52, %v652_v61 }
 0x1cb   : > { %v1213_v12 = vunpack.c.l.b16 %v1180_v3  ;;  %v1228_v13 = vrot.slane %v1211_v4, 7  ;;  %v1051_v16 = vmax.f32 %v963_v36, %v967_v8  ;;  %v1066_v19 = vpack.c.bf16 %v1050_v11, %v1050_v11 }
 0x1cc   : > { %v1230_v14 = vrot.slane %v1212_v5, 6  ;;  %v1052_v17 = vmax.f32 %v964_v58, %v968_v9  ;;  %v1053_v18 = vmax.f32 %v965_v59, %v969_v10  ;;  %v735_v22 = vrot.slane %v733_v6, 1 }
 0x1cd   : > { %v1229_v20 = vsel %vm658_vm6, %v1228_v13, %v1210_v60  ;;  %v736_v23 = vsel %vm662_vm7, %v636_v52, %v652_v61  ;;  %v739_v24 = vsel %vm666_vm8, %v636_v52, %v652_v61  ;;  %v1067_v25 = vpack.c.bf16 %v1051_v16, %v1051_v16 }
 0x1ce   : > { %v1068_v26 = vpack.c.bf16 %v1052_v17, %v1052_v17  ;;  %v1069_v27 = vpack.c.bf16 %v1053_v18, %v1053_v18  ;;  %v1098_v21 = vrot.slane %v1066_v19, 2  ;;  %v1231_v28 = vsel %vm662_vm7, %v1230_v14, %v1229_v20 }
 0x1cf   : > { %v1232_v31 = vrot.slane %v1213_v12, 5  ;;  %v738_v32 = vrot.slane %v736_v23, 2  ;;  %v741_v33 = vrot.slane %v739_v24, 3  ;;  %v1099_v34 = vrot.slane %v1067_v25, 2 }
 0x1d0   : > { %v1100_v35 = vrot.slane %v1068_v26, 2  ;;  %v1101_v37 = vrot.slane %v1069_v27, 2  ;;  %v1133_v38 = vsel %vm1106_vm10, %v1066_v19, %v1098_v21  ;;  %v810_v39 = vunpack.c.l.bf16 %v732_v15 }
 0x1d1   : > { %1182 = vst [vmem:[#allocation1] ss:$2 sm:$0xff] %v1133_v38  ;;  %v1233_v30 = vsel %vm666_vm8, %v1232_v31, %v1231_v28  ;;  %v811_v40 = vunpack.c.l.bf16 %v735_v22  ;;  %v1136_v29 = vsel %vm1106_vm10, %v1067_v25, %v1099_v34  ;;  %v812_v46 = vunpack.c.l.bf16 %v738_v32 }
 0x1d2   : > { %v1139_v41 = vsel %vm1106_vm10, %v1068_v26, %v1100_v35  ;;  %v1142_v43 = vsel %vm1106_vm10, %v1069_v27, %v1101_v37  ;;  %v1247_v44 = vpack.c.b16 %v1233_v30, %v1233_v30  ;;  %1185 = vst [vmem:[#allocation1 + $0x10] ss:$2 sm:$0xff] %v1136_v29  ;;  %v813_v47 = vunpack.c.l.bf16 %v741_v33 }
 0x1d3   : > { %1188 = vst [vmem:[#allocation1 + $0x20] ss:$2 sm:$0xff] %v1139_v41  ;;  %v653_v48 = vrot.slane %v637_v7, 3  ;;  %v1450_v42 = vrot.slane %v810_v39, 9  ;;  %v1451_v51 = vrot.slane %v811_v40, 9  ;;  %v1452_v58 = vrot.slane %v812_v46, 9 }
 0x1d4   : > { %v1251_v45 = vrot.slane %v1247_v44, 2  ;;  %1191 = vst [vmem:[#allocation1 + $0x30] ss:$2 sm:$0xff] %v1142_v43  ;;  %v1453_v59 = vrot.slane %v813_v47, 9 }
 0x1d5   : > { %v744_v56 = vsel %vm654_vm9, %v637_v7, %v653_v48  ;;  %v745_v52 = vsel %vm658_vm6, %v637_v7, %v653_v48  ;;  %v748_v53 = vsel %vm662_vm7, %v637_v7, %v653_v48  ;;  %v751_v50 = vsel %vm666_vm8, %v637_v7, %v653_v48 }
 0x1d6   : > { %v1259_v36 = vsel %vm1106_vm10, %v1247_v44, %v1251_v45  ;;  %v747_v54 = vrot.slane %v745_v52, 1  ;;  %v750_v55 = vrot.slane %v748_v53, 2  ;;  %v814_v57 = vunpack.c.l.bf16 %v744_v56 }
 0x1d7   : > { %1272 = vst.msk [vmem:[%s1799_s12 + $0x2] sm:$0x3] %vm1270_vm11, %v1259_v36  ;;  %v753_v49 = vrot.slane %v751_v50, 3  ;;  %v970_v63 = vmax.f32 %v810_v39, %v1450_v42  ;;  %v971_v0 = vmax.f32 %v811_v40, %v1451_v51  ;;  %v972_v10 = vmax.f32 %v812_v46, %v1452_v58 }
 0x1d8   : > { %v815_v60 = vunpack.c.l.bf16 %v747_v54  ;;  %v816_v61 = vunpack.c.l.bf16 %v750_v55  ;;  %v1454_v62 = vrot.slane %v814_v57, 9  ;;  %v1183_v2 = vld.sshfl [vmem:[#allocation1] sm:$0xff pattern:$0x75643120]  ;;  %v973_v11 = vmax.f32 %v813_v47, %v1453_v59 }
 0x1d9   : > { %v817_v1 = vunpack.c.l.bf16 %v753_v49  ;;  %v1186_v3 = vld.sshfl [vmem:[#allocation1 + $0x10] sm:$0xff pattern:$0x75643120]  ;;  %v1214_v19 = vunpack.c.l.b16 %v1183_v2 }
 0x1da   : > { %v1455_v4 = vrot.slane %v815_v60, 9  ;;  %v1456_v5 = vrot.slane %v816_v61, 9  ;;  %v974_v6 = vmax.f32 %v814_v57, %v1454_v62  ;;  %v1189_v8 = vld.sshfl [vmem:[#allocation1 + $0x20] sm:$0xff pattern:$0x75643120]  ;;  %v1215_v9 = vunpack.c.l.b16 %v1186_v3 }
 0x1db   : > { %v1457_v7 = vrot.slane %v817_v1, 9  ;;  %v1192_v12 = vld.sshfl [vmem:[#allocation1 + $0x30] sm:$0xff pattern:$0x75643120]  ;;  %v1216_v13 = vunpack.c.l.b16 %v1189_v8 }
 0x1dc   : > { %v975_v14 = vmax.f32 %v815_v60, %v1455_v4  ;;  %v976_v15 = vmax.f32 %v816_v61, %v1456_v5  ;;  %v1054_v16 = vmax.f32 %v970_v63, %v974_v6  ;;  %v1217_v17 = vunpack.c.l.b16 %v1192_v12 }
 0x1dd   : > { %v977_v18 = vmax.f32 %v817_v1, %v1457_v7  ;;  %v1234_v20 = vrot.slane %v1215_v9, 7  ;;  %v1236_v22 = vrot.slane %v1216_v13, 6 }
 0x1de   : > { %v1055_v23 = vmax.f32 %v971_v0, %v975_v14  ;;  %v1056_v24 = vmax.f32 %v972_v10, %v976_v15  ;;  %v1070_v25 = vpack.c.bf16 %v1054_v16, %v1054_v16  ;;  %v1238_v21 = vrot.slane %v1217_v17, 5 }
 0x1df   : > { %v1057_v26 = vmax.f32 %v973_v11, %v977_v18  ;;  %v1235_v27 = vsel %vm658_vm6, %v1234_v20, %v1214_v19 }
 0x1e0   : > { %v1071_v28 = vpack.c.bf16 %v1055_v23, %v1055_v23  ;;  %v1072_v31 = vpack.c.bf16 %v1056_v24, %v1056_v24  ;;  %v1102_v32 = vrot.slane %v1070_v25, 2  ;;  %v1237_v33 = vsel %vm662_vm7, %v1236_v22, %v1235_v27 }
 0x1e1   : > { %v1073_v34 = vpack.c.bf16 %v1057_v26, %v1057_v26  ;;  %v1239_v35 = vsel %vm666_vm8, %v1238_v21, %v1237_v33 }
 0x1e2   : > { %v1103_v37 = vrot.slane %v1071_v28, 2  ;;  %v1104_v38 = vrot.slane %v1072_v31, 2  ;;  %v1145_v30 = vsel %vm1106_vm10, %v1070_v25, %v1102_v32  ;;  %v1248_v39 = vpack.c.b16 %v1239_v35, %v1239_v35 }
 0x1e3   : > { %v1105_v40 = vrot.slane %v1073_v34, 2  ;;  %1194 = vst [vmem:[#allocation1] ss:$2 sm:$0xff] %v1145_v30 }
 0x1e4   : > { %v1148_v29 = vsel %vm1106_vm10, %v1071_v28, %v1103_v37  ;;  %v1151_v41 = vsel %vm1106_vm10, %v1072_v31, %v1104_v38  ;;  %v1252_v43 = vrot.slane %v1248_v39, 2 }
 0x1e5   : > { %v1154_v44 = vsel %vm1106_vm10, %v1073_v34, %v1105_v40  ;;  %1197 = vst [vmem:[#allocation1 + $0x10] ss:$2 sm:$0xff] %v1148_v29 }
 0x1e6   : > { %1200 = vst [vmem:[#allocation1 + $0x20] ss:$2 sm:$0xff] %v1151_v41  ;;  %v1262_v45 = vsel %vm1106_vm10, %v1248_v39, %v1252_v43 }
 0x1e7   : > { %1203 = vst [vmem:[#allocation1 + $0x30] ss:$2 sm:$0xff] %v1154_v44 }
 0x1e8   : > { %1273 = vst.msk [vmem:[%s1799_s12 + $0x4] sm:$0x3] %vm1270_vm11, %v1262_v45 }
 0x1ea   : > { %v1195_v46 = vld.sshfl [vmem:[#allocation1] sm:$0xff pattern:$0x75643120] }
 0x1eb   : > { %v1218_v56 = vunpack.c.l.b16 %v1195_v46 }
 0x1ec   : > { %v1198_v47 = vld.sshfl [vmem:[#allocation1 + $0x10] sm:$0xff pattern:$0x75643120] }
 0x1ed   : > { %v1201_v48 = vld.sshfl [vmem:[#allocation1 + $0x20] sm:$0xff pattern:$0x75643120]  ;;  %v1219_v42 = vunpack.c.l.b16 %v1198_v47 }
 0x1ee   : > { %v1204_v51 = vld.sshfl [vmem:[#allocation1 + $0x30] sm:$0xff pattern:$0x75643120]  ;;  %v1220_v36 = vunpack.c.l.b16 %v1201_v48 }
 0x1ef   : > { %v1221_v52 = vunpack.c.l.b16 %v1204_v51  ;;  %v1240_v53 = vrot.slane %v1219_v42, 7 }
 0x1f0   : > { %v1242_v54 = vrot.slane %v1220_v36, 6 }
 0x1f1   : > { %v1241_v55 = vsel %vm658_vm6, %v1240_v53, %v1218_v56  ;;  %v1244_v50 = vrot.slane %v1221_v52, 5 }
 0x1f2   : > { %v1243_v57 = vsel %vm662_vm7, %v1242_v54, %v1241_v55 }
 0x1f3   : > { %v1245_v58 = vsel %vm666_vm8, %v1244_v50, %v1243_v57 }
 0x1f4   : > { %v1249_v59 = vpack.c.b16 %v1245_v58, %v1245_v58 }
 0x1f6   : > { %v1253_v49 = vrot.slane %v1249_v59, 2 }
 0x1f8   : > { %v1265_v60 = vsel %vm1106_vm10, %v1249_v59, %v1253_v49 }
 0x1f9   : > { %1274 = vst.msk [vmem:[%s1799_s12 + $0x6] sm:$0x3] %vm1270_vm11, %v1265_v60 }
 0x1fa PF: > { %s13_s14 = sadd.s32 1, %s1542_s14   ;;  %s1856_s12 = smov %s1538_s13 }
 0x1fb   : > { %p10_p5 = scmp.ge.s32.totalorder %s13_s14, 4   ;;  %s1857_s13 = smov %s1859_s15 }
 0x1fd   :  { %12 = sbr.rel (!%p10_p5) target bundleno = 2 (0x2), region = 66 }

// kernel: vgg_forward.3
= control target key start
LH: loop header
LB: loop body
LE: loop exit
PB: predicated region body
PF: predicated region fallthrough
CT: control target
= control target key end

     0   :  { %s3600_s12 = smov 0   ;;  %s3602_s13 = smov 0   ;;  %s4654_s0 = inlined_call_operand.vmem [shape: bf16[2,18,18,3], index: 0, kind: input, shape index: {}]   ;;  %s4655_s1 = inlined_call_operand.vmem [shape: bf16[27,8], index: 1, kind: input, shape index: {}]   ;;  %s4656_s2 = inlined_call_operand.vmem [shape: f32[1,8], index: 2, kind: input, shape index: {}]   ;;  %s4657_s3 = inlined_call_operand.vmem [shape: bf16[2,8,8,8], index: 3, kind: output, shape index: {}]  }
   0x1   :  { %s3604_s14 = smov 0  }
   0x2 LB: > { %s25_s15 = sadd.s32 1, %s3569_s13  ;;  %p3262_p0 = scmp.ge.s32.totalorder %s3573_s14, 1  ;;  %s3573_s14 = sphi %s3604_s14, %s13_s14   ;;  %s3569_s13 = sphi %s3602_s13, %s4668_s13   ;;  %s3565_s12 = sphi %s3600_s12, %s4667_s12  }
   0x3   : > { %p27_p1 = scmp.ge.s32.totalorder %s25_s15, 2  ;;  %p151_p2 = scmp.lt.s32.totalorder %s3573_s14, 3 }
   0x5   : > { %s4670_s15 = smov (%p27_p1, %s25_s15), 0  ;;  %p152_p3 = pnand %p3262_p0, %p151_p2 }
   0x7   : > { %155 = sbr.rel (%p152_p3) target bundleno = 679 (0x2a7), region = 32 }
   0xc   : > { %p179_p4 = scmp.lt.s32.totalorder %s3565_s12, 1  ;;  %vm650_vm0 = vcmask 1046528   ;;  %vm397_vm1 = vsmask.f32 7424  ;;  %s3575_s20 = smov 6   ;;  %vm741_vm2 = vcmask 23552  }
   0xd   : > { %s3576_s21 = smov 3   ;;  %vm778_vm3 = vcmask 48128   ;;  %s3577_s22 = smov 18   ;;  %vm1014_vm4 = vcmask 1044480   ;;  %vm1015_vm5 = vcmask 1045504   ;;  %vm896_vm6 = vcmask 72704  }
   0xe   : > { %s4672_s12 = smov (!%p179_p4, %s3565_s12), 1  ;;  %s3578_s23 = smov 9   ;;  %vm929_vm7 = vcmask 146432   ;;  %vm981_vm8 = vcmask 220160   ;;  %vm1238_vm9 = vcmask 1040384   ;;  %vm1242_vm10 = vcmask 1041409  }
   0xf   : > { %s3519_s16 = smul.u32 216, %s4672_s12  ;;  %vm1246_vm11 = vcmask 1042434   ;;  %vm1250_vm12 = vcmask 1043459   ;;  %vm3041_vm13 = vcmask 1044484   ;;  %vm3044_vm14 = vcmask 1045509   ;;  %s3492_s5 = sshll.u32 %s4672_s12, 5 }
  0x10   : > { %vm3047_vm15 = vcmask 1046534   ;;  %s4237_s8 = scalar_lea.vmem %s4657_s3, %s3492_s5 }
  0x11   : > { %s3624_s19 = scalar_lea.vmem %s4654_s0, %s3519_s16 }
  0x12   : > { %v3627_v0 = vld [vmem:[%s3624_s19 + $0xa8] sm:$0xff]  ;;  %v243_v1 = vld [vmem:[%s3624_s19 + $0xb0] sm:$0x1]  ;;  %v3631_v2 = vld [vmem:[%s3624_s19 + $0x78] sm:$0xff] }
  0x13   : > { %v375_v3 = vunpack.c.l.b16 %v243_v1  ;;  %v231_v4 = vld [vmem:[%s3624_s19 + $0x80] sm:$0x1]  ;;  %v3635_v5 = vld [vmem:[%s3624_s19 + $0x6c] sm:$0xff]  ;;  %v228_v6 = vld [vmem:[%s3624_s19 + $0x74] sm:$0x1]  ;;  %v693_v7 = vrot.slane %v3627_v0, 1 }
  0x14   : > { %v371_v8 = vunpack.c.l.b16 %v231_v4  ;;  %v681_v10 = vrot.slane %v3631_v2, 1  ;;  %v521_v11 = vshll.u32 %v3631_v2, 16  ;;  %v370_v12 = vunpack.c.l.b16 %v228_v6  ;;  %v3646_v24 = vld [vmem:[%s3624_s19 + $0x9c] sm:$0xff]  ;;  %v240_v25 = vld [vmem:[%s3624_s19 + $0xa4] sm:$0x1]  ;;  %v3672_v58 = vld [vmem:[%s3624_s19 + $0xc] sm:$0xff] }
  0x15   : > { %v393_v9 = vpack.c.b16 %v375_v3, %v375_v3  ;;  %v519_v14 = vshrl.u32 %v3631_v2, 16  ;;  %v509_v15 = vshll.u32 %v3635_v5, 16  ;;  %v569_v16 = vshll.u32 %v3627_v0, 16  ;;  %v216_v36 = vld [vmem:[%s3624_s19 + $0x44] sm:$0x1]  ;;  %v3660_v45 = vld [vmem:[%s3624_s19 + $0x3c] sm:$0xff] }
  0x16   : > { %v389_v13 = vpack.c.b16 %v371_v8, %v371_v8  ;;  %v523_v18 = vrot.slane %v521_v11, 1  ;;  %v388_v19 = vpack.c.b16 %v370_v12, %v370_v12  ;;  %v507_v20 = vshrl.u32 %v3635_v5, 16  ;;  %v207_v41 = vld [vmem:[%s3624_s19 + $0x20] sm:$0x1]  ;;  %v3666_v50 = vld [vmem:[%s3624_s19 + $0x18] sm:$0xff]  ;;  %v3687_v12 = vld [vmem:[%s3624_s19 + $0x48] sm:$0xff] }
  0x17   : > { %v694_v17 = vrot.slane %v393_v9, 1  ;;  %v511_v23 = vrot.slane %v509_v15, 1  ;;  %v567_v29 = vshrl.u32 %v3627_v0, 16  ;;  %v571_v30 = vrot.slane %v569_v16, 1  ;;  %v204_v56 = vld [vmem:[%s3624_s19 + $0x14] sm:$0x1] }
  0x18   : > { %v682_v21 = vrot.slane %v389_v13, 1  ;;  %v526_v22 = vshll.u32 %v389_v13, 16  ;;  %v514_v27 = vshll.u32 %v388_v19, 16  ;;  %v574_v31 = vshll.u32 %v393_v9, 16  ;;  %v219_v1 = vld [vmem:[%s3624_s19 + $0x50] sm:$0x1] }
  0x19   : > { %v695_v26 = vsel %vm650_vm0, %v693_v7, %v694_v17  ;;  %v524_v32 = vor.u32 %v523_v18, %v519_v14  ;;  %v512_v34 = vor.u32 %v511_v23, %v507_v20  ;;  %v374_v35 = vunpack.c.l.b16 %v240_v25 }
  0x1a   : > { %733 = vrot.lane.b32.xlu1 %v695_v26, %s3575_s20  ;;  %v683_v28 = vsel %vm650_vm0, %v681_v10, %v682_v21  ;;  %v528_v33 = vrot.slane %v526_v22, 1  ;;  %v516_v37 = vrot.slane %v514_v27, 1  ;;  %v557_v38 = vshll.u32 %v3646_v24, 16 }
  0x1b   : > { %725 = vrot.lane.b32.xlu0 %v683_v28, %s3575_s20  ;;  %v678_v39 = vrot.slane %v3635_v5, 1  ;;  %v679_v40 = vrot.slane %v388_v19, 1  ;;  %v392_v42 = vpack.c.b16 %v374_v35, %v374_v35  ;;  %v576_v43 = vrot.slane %v574_v31, 1 }
  0x1c   : > { %v366_v46 = vunpack.c.l.b16 %v216_v36  ;;  %v529_v47 = vsel %vm397_vm1, %v524_v32, %v528_v33  ;;  %v572_v48 = vor.u32 %v571_v30, %v567_v29  ;;  %v555_v49 = vshrl.u32 %v3646_v24, 16  ;;  %v234_v32 = vld [vmem:[%s3624_s19 + $0x8c] sm:$0x1] }
  0x1d   : > { %v680_v44 = vsel %vm650_vm0, %v678_v39, %v679_v40  ;;  %v363_v51 = vunpack.c.l.b16 %v207_v41  ;;  %v517_v52 = vsel %vm397_vm1, %v512_v34, %v516_v37  ;;  %v559_v53 = vrot.slane %v557_v38, 1  ;;  %v3705_v37 = vld [vmem:[%s3624_s19 + $0x84] sm:$0xff] }
  0x1e   : > { %723 = vrot.lane.b32.xlu2 %v680_v44, %s3575_s20  ;;  %v562_v54 = vshll.u32 %v392_v42, 16  ;;  %v690_v55 = vrot.slane %v3646_v24, 1  ;;  %v691_v57 = vrot.slane %v392_v42, 1  ;;  %v384_v59 = vpack.c.b16 %v366_v46, %v366_v46 }
  0x1f   : > { %v461_v60 = vshll.u32 %v3660_v45, 16  ;;  %v3677_v61 = vpack.c.b16 %v363_v51, %v363_v51  ;;  %v425_v62 = vshll.u32 %v3666_v50, 16  ;;  %v362_v63 = vunpack.c.l.b16 %v204_v56 }
  0x20   : > { %v577_v3 = vsel %vm397_vm1, %v572_v48, %v576_v43  ;;  %v560_v4 = vor.u32 %v559_v53, %v555_v49  ;;  %v564_v6 = vrot.slane %v562_v54, 1  ;;  %v692_v7 = vsel %vm650_vm0, %v690_v55, %v691_v57 }
  0x21   : > { %v459_v8 = vshrl.u32 %v3660_v45, 16  ;;  %v380_v9 = vpack.c.b16 %v362_v63, %v362_v63  ;;  %v411_v10 = vshrl.u32 %v3672_v58, 16  ;;  %v413_v11 = vshll.u32 %v3672_v58, 16 }
  0x22   : > { %634 = vrot.lane.b32.xlu1 %v529_v47, %s3576_s21  ;;  %v463_v13 = vrot.slane %v461_v60, 1  ;;  %v466_v14 = vshll.u32 %v384_v59, 16  ;;  %v423_v15 = vshrl.u32 %v3666_v50, 16  ;;  %v367_v16 = vunpack.c.l.b16 %v219_v1  ;;  %v246_v47 = vld [vmem:[%s3624_s19 + $0xbc] sm:$0x1] }
  0x23   : > { %632 = vrot.lane.b32.xlu0 %v517_v52, %s3576_s21  ;;  %v427_v17 = vrot.slane %v425_v62, 1  ;;  %v430_v18 = vshll.u32 %v3677_v61, 16  ;;  %v415_v19 = vrot.slane %v413_v11, 1  ;;  %v418_v20 = vshll.u32 %v380_v9, 16  ;;  %v3718_v52 = vld [vmem:[%s3624_s19 + $0xb4] sm:$0xff] }
  0x24   : > { %v565_v21 = vsel %vm397_vm1, %v560_v4, %v564_v6  ;;  %v3693_v22 = vpack.c.b16 %v367_v16, %v367_v16  ;;  %v473_v26 = vshll.u32 %v3687_v12, 16  ;;  %v464_v27 = vor.u32 %v463_v13, %v459_v8  ;;  %v222_v8 = vld [vmem:[%s3624_s19 + $0x5c] sm:$0x1]  ;;  %v3740_v16 = vld [vmem:[%s3624_s19 + $0x24] sm:$0xff] }
  0x25   : > { %v416_v23 = vor.u32 %v415_v19, %v411_v10  ;;  %v420_v25 = vrot.slane %v418_v20, 1  ;;  %v468_v28 = vrot.slane %v466_v14, 1  ;;  %v428_v29 = vor.u32 %v427_v17, %v423_v15  ;;  %v3737_v14 = vld [vmem:[%s3624_s19 + $0x54] sm:$0xff] }
  0x26   : > { %731 = vrot.lane.b32.xlu2 %v692_v7, %s3575_s20  ;;  %v432_v30 = vrot.slane %v430_v18, 1  ;;  %v471_v33 = vshrl.u32 %v3687_v12, 16  ;;  %v475_v34 = vrot.slane %v473_v26, 1  ;;  %v478_v35 = vshll.u32 %v3693_v22, 16 }
  0x27   : > { %v421_v31 = vsel %vm397_vm1, %v416_v23, %v420_v25  ;;  %v372_v38 = vunpack.c.l.b16 %v234_v32  ;;  %v469_v39 = vsel %vm397_vm1, %v464_v27, %v468_v28  ;;  %v666_v42 = vrot.slane %v3660_v45, 1 }
  0x28   : > { %v433_v36 = vsel %vm397_vm1, %v428_v29, %v432_v30  ;;  %v476_v40 = vor.u32 %v475_v34, %v471_v33  ;;  %v480_v41 = vrot.slane %v478_v35, 1  ;;  %v667_v43 = vrot.slane %v384_v59, 1 }
  0x29   : > { %v3711_v44 = vpack.c.b16 %v372_v38, %v372_v38  ;;  %v533_v46 = vshll.u32 %v3705_v37, 16  ;;  %v654_v48 = vrot.slane %v3672_v58, 1  ;;  %v655_v49 = vrot.slane %v380_v9, 1  ;;  %v210_v9 = vld [vmem:[%s3624_s19 + $0x2c] sm:$0x1] }
  0x2a   : > { %642 = vrot.lane.b32.xlu1 %v577_v3, %s3576_s21  ;;  %v481_v51 = vsel %vm397_vm1, %v476_v40, %v480_v41  ;;  %v376_v53 = vunpack.c.l.b16 %v246_v47  ;;  %v668_v54 = vsel %vm650_vm0, %v666_v42, %v667_v43  ;;  %v531_v55 = vshrl.u32 %v3705_v37, 16  ;;  %v3759_v42 = vld [vmem:[%s3624_s19 + $0xc0] sm:$0xff] }
  0x2b   : > { %640 = vrot.lane.b32.xlu0 %v565_v21, %s3576_s21  ;;  %v535_v56 = vrot.slane %v533_v46, 1  ;;  %v538_v57 = vshll.u32 %v3711_v44, 16  ;;  %v656_v59 = vsel %vm650_vm0, %v654_v48, %v655_v49  ;;  %v657_v60 = vrot.slane %v3666_v50, 1  ;;  %v3764_v46 = vld [vmem:[%s3624_s19 + $0x90] sm:$0xff] }
  0x2c   : > { %v658_v62 = vrot.slane %v3677_v61, 1  ;;  %v581_v63 = vshll.u32 %v3718_v52, 16  ;;  %v669_v1 = vrot.slane %v3687_v12, 1  ;;  %v394_v3 = vpack.c.b16 %v376_v53, %v376_v53 }
  0x2d   : > { %v670_v4 = vrot.slane %v3693_v22, 1  ;;  %v536_v6 = vor.u32 %v535_v56, %v531_v55  ;;  %v540_v7 = vrot.slane %v538_v57, 1  ;;  %v579_v61 = vshrl.u32 %v3718_v52, 16 }
  0x2e   : > { %616 = vrot.lane.b32.xlu2 %v421_v31, %s3576_s21  ;;  %v659_v10 = vsel %vm650_vm0, %v657_v60, %v658_v62  ;;  %v583_v11 = vrot.slane %v581_v63, 1  ;;  %v586_v13 = vshll.u32 %v394_v3, 16  ;;  %v368_v15 = vunpack.c.l.b16 %v222_v8  ;;  %v249_v31 = vld [vmem:[%s3624_s19 + $0xc8] sm:$0x1]  ;;  %v213_v62 = vld [vmem:[%s3624_s19 + $0x38] sm:$0x1] }
  0x2f   : > { %v364_v17 = vunpack.c.l.b16 %v210_v9  ;;  %v541_v18 = vsel %vm397_vm1, %v536_v6, %v540_v7  ;;  %v671_v19 = vsel %vm650_vm0, %v669_v1, %v670_v4  ;;  %v437_v22 = vshll.u32 %v3740_v16, 16  ;;  %v3778_v9 = vld [vmem:[%s3624_s19 + $0x30] sm:$0xff] }
  0x30   : > { %v584_v20 = vor.u32 %v583_v11, %v579_v61  ;;  %v588_v21 = vrot.slane %v586_v13, 1  ;;  %v386_v23 = vpack.c.b16 %v368_v15, %v368_v15  ;;  %v485_v25 = vshll.u32 %v3737_v14, 16 }
  0x31   : > { %v382_v26 = vpack.c.b16 %v364_v17, %v364_v17  ;;  %v684_v27 = vrot.slane %v3705_v37, 1  ;;  %v685_v28 = vrot.slane %v3711_v44, 1  ;;  %v696_v29 = vrot.slane %v3718_v52, 1 }
  0x32   : > { %618 = vrot.lane.b32.xlu1 %v433_v36, %s3576_s21  ;;  %v697_v30 = vrot.slane %v394_v3, 1  ;;  %v589_v32 = vsel %vm397_vm1, %v584_v20, %v588_v21  ;;  %v435_v33 = vshrl.u32 %v3740_v16, 16  ;;  %v439_v34 = vrot.slane %v437_v22, 1  ;;  %v237_v36 = vld [vmem:[%s3624_s19 + $0x98] sm:$0x1] }
  0x33   : > { %624 = vrot.lane.b32.xlu0 %v469_v39, %s3576_s21  ;;  %v442_v35 = vshll.u32 %v382_v26, 16  ;;  %v483_v38 = vshrl.u32 %v3737_v14, 16  ;;  %v487_v39 = vrot.slane %v485_v25, 1  ;;  %v490_v40 = vshll.u32 %v386_v23, 16  ;;  %v225_v21 = vld [vmem:[%s3624_s19 + $0x68] sm:$0x1] }
  0x34   : > { %v698_v41 = vsel %vm650_vm0, %v696_v29, %v697_v30  ;;  %v377_v43 = vunpack.c.l.b16 %v249_v31  ;;  %v686_v44 = vsel %vm650_vm0, %v684_v27, %v685_v28  ;;  %v373_v47 = vunpack.c.l.b16 %v237_v36 }
  0x35   : > { %v440_v48 = vor.u32 %v439_v34, %v435_v33  ;;  %v444_v49 = vrot.slane %v442_v35, 1  ;;  %v492_v53 = vrot.slane %v490_v40, 1  ;;  %v661_v55 = vrot.slane %v382_v26, 1  ;;  %v3793_v34 = vld [vmem:[%s3624_s19 + $0x60] sm:$0xff] }
  0x36   : > { %626 = vrot.lane.b32.xlu2 %v481_v51, %s3576_s21  ;;  %v488_v51 = vor.u32 %v487_v39, %v483_v38  ;;  %v395_v56 = vpack.c.b16 %v377_v43, %v377_v43  ;;  %v593_v57 = vshll.u32 %v3759_v42, 16  ;;  %v545_v60 = vshll.u32 %v3764_v46, 16 }
  0x37   : > { %v445_v63 = vsel %vm397_vm1, %v440_v48, %v444_v49  ;;  %v543_v4 = vshrl.u32 %v3764_v46, 16  ;;  %v591_v6 = vshrl.u32 %v3759_v42, 16  ;;  %v672_v13 = vrot.slane %v3737_v14, 1  ;;  %v201_v48 = vld [vmem:[%s3624_s19 + $0x8] sm:$0x1] }
  0x38   : > { %v493_v1 = vsel %vm397_vm1, %v488_v51, %v492_v53  ;;  %v595_v7 = vrot.slane %v593_v57, 1  ;;  %v598_v8 = vshll.u32 %v395_v56, 16  ;;  %v547_v61 = vrot.slane %v545_v60, 1 }
  0x39   : > { %v673_v15 = vrot.slane %v386_v23, 1  ;;  %v449_v20 = vshll.u32 %v3778_v9, 16  ;;  %v369_v27 = vunpack.c.l.b16 %v225_v21  ;;  %v447_v23 = vshrl.u32 %v3778_v9, 16 }
  0x3a   : > { %715 = vrot.lane.b32.xlu1 %v668_v54, %s3575_s20  ;;  %v660_v54 = vrot.slane %v3740_v16, 1  ;;  %v596_v17 = vor.u32 %v595_v7, %v591_v6  ;;  %v548_v22 = vor.u32 %v547_v61, %v543_v4  ;;  %v699_v36 = vrot.slane %v3759_v42, 1  ;;  %v252_v6 = vld [vmem:[%s3624_s19 + $0xd4] sm:$0x1] }
  0x3b   : > { %707 = vrot.lane.b32.xlu0 %v656_v59, %s3575_s20  ;;  %v391_v59 = vpack.c.b16 %v373_v47, %v373_v47  ;;  %v674_v26 = vsel %vm650_vm0, %v672_v13, %v673_v15  ;;  %v451_v29 = vrot.slane %v449_v20, 1  ;;  %v387_v35 = vpack.c.b16 %v369_v27, %v369_v27  ;;  %v3820_v13 = vld [vmem:[%s3624_s19 + $0xcc] sm:$0xff] }
  0x3c   : > { %v662_v3 = vsel %vm650_vm0, %v660_v54, %v661_v55  ;;  %v497_v40 = vshll.u32 %v3793_v34, 16  ;;  %v3806_v54 = vld [vmem:[%s3624_s19] sm:$0xff]  ;;  %v361_v55 = vunpack.c.l.b16 %v201_v48  ;;  %v378_v15 = vunpack.c.l.b16 %v252_v6 }
  0x3d   : > { %v550_v11 = vshll.u32 %v391_v59, 16  ;;  %v688_v33 = vrot.slane %v391_v59, 1  ;;  %v452_v38 = vor.u32 %v451_v29, %v447_v23  ;;  %v502_v47 = vshll.u32 %v387_v35, 16 }
  0x3e   : > { %709 = vrot.lane.b32.xlu2 %v659_v10, %s3575_s20  ;;  %v365_v10 = vunpack.c.l.b16 %v213_v62  ;;  %v499_v49 = vrot.slane %v497_v40, 1  ;;  %v675_v62 = vrot.slane %v3793_v34, 1  ;;  %v396_v21 = vpack.c.b16 %v378_v15, %v378_v15 }
  0x3f   : > { %v552_v25 = vrot.slane %v550_v11, 1  ;;  %v504_v59 = vrot.slane %v502_v47, 1  ;;  %v603_v27 = vshrl.u32 %v3820_v13, 16  ;;  %v702_v29 = vrot.slane %v3820_v13, 1 }
  0x40   : > { %v610_v23 = vshll.u32 %v396_v21, 16 }
  0x41   : > { %v553_v31 = vsel %vm397_vm1, %v548_v22, %v552_v25  ;;  %v605_v22 = vshll.u32 %v3820_v13, 16 }
  0x42   : > { %636 = vrot.lane.b32.xlu1 %v541_v18, %s3576_s21  ;;  %v600_v18 = vrot.slane %v598_v8, 1 }
  0x43   : > { %717 = vrot.lane.b32.xlu0 %v671_v19, %s3575_s20  ;;  %v383_v19 = vpack.c.b16 %v365_v10, %v365_v10  ;;  %v399_v10 = vshrl.u32 %v3806_v54, 16 }
  0x44   : > { %v601_v28 = vsel %vm397_vm1, %v596_v17, %v600_v18  ;;  %v651_v17 = vrot.slane %v3806_v54, 1 }
  0x45   : > { %v454_v30 = vshll.u32 %v383_v19, 16  ;;  %v664_v60 = vrot.slane %v383_v19, 1 }
  0x46   : > { %644 = vrot.lane.b32.xlu2 %v589_v32, %s3576_s21  ;;  %v687_v32 = vrot.slane %v3764_v46, 1 }
  0x47   : > { %v456_v39 = vrot.slane %v454_v30, 1  ;;  %v703_v30 = vrot.slane %v396_v21, 1 }
  0x48   : > { %v689_v43 = vsel %vm650_vm0, %v687_v32, %v688_v33  ;;  %v612_v32 = vrot.slane %v610_v23, 1 }
  0x49   : > { %v457_v51 = vsel %vm397_vm1, %v452_v38, %v456_v39  ;;  %v704_v33 = vsel %vm650_vm0, %v702_v29, %v703_v30 }
  0x4a   : > { %735 = vrot.lane.b32.xlu1 %v698_v41, %s3575_s20  ;;  %v700_v41 = vrot.slane %v395_v56, 1  ;;  %v663_v56 = vrot.slane %v3778_v9, 1 }
  0x4b   : > { %727 = vrot.lane.b32.xlu0 %v686_v44, %s3575_s20  ;;  %v495_v44 = vshrl.u32 %v3793_v34, 16 }
  0x4c   : > { %v701_v53 = vsel %vm650_vm0, %v699_v36, %v700_v41  ;;  %v665_v7 = vsel %vm650_vm0, %v663_v56, %v664_v60 }
  0x4d   : > { %v500_v57 = vor.u32 %v499_v49, %v495_v44 }
  0x4e   : > { %620 = vrot.lane.b32.xlu2 %v445_v63, %s3576_s21  ;;  %v676_v63 = vrot.slane %v387_v35, 1 }
  0x4f   : > { %v505_v4 = vsel %vm397_vm1, %v500_v57, %v504_v59 }
  0x50   : > { %v677_v8 = vsel %vm650_vm0, %v675_v62, %v676_v63 }
  0x52   : > { %711 = vrot.lane.b32.xlu1 %v662_v3, %s3575_s20  ;;  %v401_v3 = vshll.u32 %v3806_v54, 16 }
  0x53   : > { %628 = vrot.lane.b32.xlu0 %v493_v1, %s3576_s21  ;;  %v379_v1 = vpack.c.b16 %v361_v55, %v361_v55 }
  0x54   : > { %v403_v61 = vrot.slane %v401_v3, 1 }
  0x55   : > { %v406_v11 = vshll.u32 %v379_v1, 16  ;;  %v652_v18 = vrot.slane %v379_v1, 1 }
  0x56   : > { %719 = vrot.lane.b32.xlu2 %v674_v26, %s3575_s20  ;;  %v404_v19 = vor.u32 %v403_v61, %v399_v10 }
  0x57   : > { %v408_v20 = vrot.slane %v406_v11, 1  ;;  %v653_v25 = vsel %vm650_vm0, %v651_v17, %v652_v18  ;;  %vm3050_vm0 = vcmask 1047559  }
  0x59   : > { %v409_v26 = vsel %vm397_vm1, %v404_v19, %v408_v20 }
  0x5a   : > { %646 = vrot.lane.b32.xlu1 %v601_v28, %s3576_s21  ;;  %v607_v28 = vrot.slane %v605_v22, 1 }
  0x5b   : > { %638 = vrot.lane.b32.xlu0 %v553_v31, %s3576_s21 }
  0x5c   : > { %v608_v31 = vor.u32 %v607_v28, %v603_v27 }
  0x5e   : > { %729 = vrot.lane.b32.xlu2 %v689_v43, %s3575_s20  ;;  %v613_v35 = vsel %vm397_vm1, %v608_v31, %v612_v32  ;;  %vm3166_vm1 = vcmask 60416  }
  0x62   : > { %622 = vrot.lane.b32.xlu1 %v457_v51, %s3576_s21 }
  0x63   : > { %737 = vrot.lane.b32.xlu0 %v701_v53, %s3575_s20 }
  0x66   : > { %630 = vrot.lane.b32.xlu2 %v505_v4, %s3576_s21 }
  0x6a   : > { %721 = vrot.lane.b32.xlu1 %v677_v8, %s3575_s20 }
  0x6b   : > { %713 = vrot.lane.b32.xlu0 %v665_v7, %s3575_s20 }
  0x72   : > { %705 = vrot.lane.b32.xlu1 %v653_v25, %s3575_s20 }
  0x73   : > { %614 = vrot.lane.b32.xlu0 %v409_v26, %s3576_s21 }
  0x78   : > { %v724_v36 = vpop.permute.xlu2 %723 }
  0x7a   : > { %739 = vrot.lane.b32.xlu1 %v704_v33, %s3575_s20  ;;  %v3344_v33 = vld [vmem:[%s4655_s1 + $0x8] sm:$0xf] }
  0x7b   : > { %648 = vrot.lane.b32.xlu0 %v613_v35, %s3576_s21  ;;  %v3512_v35 = vld [vmem:[%s4655_s1 + $0x8] sm:$0x30] }
  0x80   : > { %v732_v38 = vpop.permute.xlu2 %731 }
  0x88   : > { %v617_v41 = vpop.permute.xlu2 %616 }
  0x89   : > { %v745_v4 = vsel %vm741_vm2, %v3672_v58, %v617_v41 }
  0x8c   : > { %v734_v39 = vpop.permute.xlu1 %733 }
  0x8d   : > { %v726_v40 = vpop.permute.xlu0 %725 }
  0x90   : > { %v627_v53 = vpop.permute.xlu2 %626 }
  0x94   : > { %v635_v43 = vpop.permute.xlu1 %634 }
  0x95   : > { %v763_v44 = vsel %vm741_vm2, %v3631_v2, %v635_v43  ;;  %v633_v47 = vpop.permute.xlu0 %632 }
  0x96   : > { %v761_v48 = vsel %vm741_vm2, %v3635_v5, %v633_v47  ;;  %v3841_v49 = vsel %vm778_vm3, %v763_v44, %v726_v40 }
  0x97   : > { %v3844_v51 = vsel %vm778_vm3, %v761_v48, %v724_v36  ;;  %880 = vrot.lane.b32.xlu1 %v3841_v49, %s3577_s22 }
  0x98   : > { %847 = vrot.lane.b32.xlu2 %v3844_v51, %s3578_s23  ;;  %v710_v60 = vpop.permute.xlu2 %709 }
  0x9c   : > { %v643_v2 = vpop.permute.xlu1 %642 }
  0x9d   : > { %v771_v55 = vsel %vm741_vm2, %v3627_v0, %v643_v2  ;;  %v641_v5 = vpop.permute.xlu0 %640 }
  0x9e   : > { %v769_v57 = vsel %vm741_vm2, %v3646_v24, %v641_v5  ;;  %v3855_v59 = vsel %vm778_vm3, %v771_v55, %v734_v39 }
  0x9f   : > { %v3858_v56 = vsel %vm778_vm3, %v769_v57, %v732_v38  ;;  %v3579_v38 = vmov 65535  }
  0xa0   : > { %888 = vrot.lane.b32.xlu2 %v3855_v59, %s3577_s22  ;;  %855 = vrot.lane.b32.xlu0 %v3858_v56, %s3578_s23  ;;  %v1016_v39 = vsel %vm1014_vm4, 4294967295, %v3579_v38 }
  0xa1   : > { %v1017_v43 = vsel %vm1015_vm5, %v1016_v39, 0 }
  0xa4   : > { %v619_v62 = vpop.permute.xlu1 %618 }
  0xa5   : > { %v625_v63 = vpop.permute.xlu0 %624  ;;  %v747_v0 = vsel %vm741_vm2, %v3666_v50, %v619_v62  ;;  %v645_v50 = vpop.permute.xlu2 %644 }
  0xa6   : > { %v3867_v24 = vsel %vm778_vm3, %v747_v0, %v710_v60  ;;  %v753_v1 = vsel %vm741_vm2, %v3660_v45, %v625_v63  ;;  %v755_v45 = vsel %vm741_vm2, %v3687_v12, %v627_v53  ;;  %v773_v20 = vsel %vm741_vm2, %v3718_v52, %v645_v50  ;;  %v3511_v53 = vld [vmem:[%s4655_s1] sm:$0xff] }
  0xa7   : > { %864 = vrot.lane.b32.xlu1 %v3867_v24, %s3577_s22 }
  0xac   : > { %v716_v3 = vpop.permute.xlu1 %715 }
  0xad   : > { %v708_v6 = vpop.permute.xlu0 %707  ;;  %v3876_v7 = vsel %vm778_vm3, %v753_v1, %v716_v3  ;;  %v621_v11 = vpop.permute.xlu2 %620 }
  0xae   : > { %v3879_v8 = vsel %vm778_vm3, %v745_v4, %v708_v6  ;;  %839 = vrot.lane.b32.xlu0 %v3876_v7, %s3578_s23  ;;  %v749_v52 = vsel %vm741_vm2, %v3740_v16, %v621_v11 }
  0xaf   : > { %831 = vrot.lane.b32.xlu2 %v3879_v8, %s3578_s23 }
  0xb4   : > { %v637_v10 = vpop.permute.xlu1 %636 }
  0xb5   : > { %v718_v61 = vpop.permute.xlu0 %717  ;;  %v765_v17 = vsel %vm741_vm2, %v3705_v37, %v637_v10  ;;  %v720_v12 = vpop.permute.xlu2 %719 }
  0xb6   : > { %v3888_v58 = vsel %vm778_vm3, %v755_v45, %v718_v61  ;;  %857 = vrot.lane.b32.xlu0 %v3855_v59, %s3578_s23 }
  0xb7   : > { %872 = vrot.lane.b32.xlu2 %v3888_v58, %s3577_s22 }
  0xbc   : > { %v736_v15 = vpop.permute.xlu1 %735 }
  0xbd   : > { %v728_v18 = vpop.permute.xlu0 %727  ;;  %v3910_v25 = vsel %vm778_vm3, %v773_v20, %v736_v15 }
  0xbe   : > { %v3897_v19 = vsel %vm778_vm3, %v765_v17, %v728_v18  ;;  %833 = vrot.lane.b32.xlu0 %v3867_v24, %s3578_s23 }
  0xbf   : > { %849 = vrot.lane.b32.xlu2 %v3841_v49, %s3578_s23  ;;  %882 = vrot.lane.b32.xlu1 %v3897_v19, %s3577_s22 }
  0xc4   : > { %v712_v21 = vpop.permute.xlu1 %711 }
  0xc5   : > { %v629_v22 = vpop.permute.xlu0 %628  ;;  %v3926_v29 = vsel %vm778_vm3, %v749_v52, %v712_v21 }
  0xc6   : > { %v757_v37 = vsel %vm741_vm2, %v3737_v14, %v629_v22  ;;  %v730_v14 = vpop.permute.xlu2 %729 }
  0xc7   : > { %890 = vrot.lane.b32.xlu2 %v3910_v25, %s3577_s22  ;;  %841 = vrot.lane.b32.xlu1 %v3888_v58, %s3578_s23  ;;  %v3917_v26 = vsel %vm778_vm3, %v757_v37, %v720_v12 }
  0xc8   : > { %874 = vrot.lane.b32.xlu0 %v3917_v26, %s3577_s22 }
  0xcc   : > { %v647_v27 = vpop.permute.xlu1 %646 }
  0xcd   : > { %v639_v28 = vpop.permute.xlu0 %638  ;;  %v775_v31 = vsel %vm741_vm2, %v3759_v42, %v647_v27  ;;  %v3345_v42 = vor.u32 %v3512_v35, %v3344_v33 }
  0xce   : > { %v767_v23 = vsel %vm741_vm2, %v3764_v46, %v639_v28  ;;  %v631_v48 = vpop.permute.xlu2 %630 }
  0xcf   : > { %866 = vrot.lane.b32.xlu2 %v3926_v29, %s3577_s22  ;;  %851 = vrot.lane.b32.xlu1 %v3897_v19, %s3578_s23  ;;  %v3933_v30 = vsel %vm778_vm3, %v767_v23, %v730_v14  ;;  %v1019_v47 = vand.u32 %v3345_v42, %v1017_v43 }
  0xd0   : > { %884 = vrot.lane.b32.xlu0 %v3933_v30, %s3577_s22 }
  0xd1   : > { %3514 = vmatpush.bf16.msra.mxu2 %v1019_v47  ;;  %3515 = vmatpush.bf16.msra.mxu3 %v1019_v47 }
  0xd2   : > { %1027 = vmatpush.bf16.msra.mxu0 %v1019_v47  ;;  %3513 = vmatpush.bf16.msra.mxu1 %v1019_v47 }
  0xd4   : > { %v623_v16 = vpop.permute.xlu1 %622 }
  0xd5   : > { %v738_v46 = vpop.permute.xlu0 %737  ;;  %v751_v40 = vsel %vm741_vm2, %v3778_v9, %v623_v16  ;;  %v759_v9 = vsel %vm741_vm2, %v3793_v34, %v631_v48  ;;  %3517 = vmatpush.bf16.msra.mxu2 %v3511_v53  ;;  %3518 = vmatpush.bf16.msra.mxu3 %v3511_v53 }
  0xd6   : > { %v812_v32 = vsel %vm778_vm3, %v775_v31, %v738_v46  ;;  %1028 = vmatpush.bf16.msra.mxu0 %v3511_v53  ;;  %3516 = vmatpush.bf16.msra.mxu1 %v3511_v53 }
  0xd7   : > { %859 = vrot.lane.b32.xlu2 %v3910_v25, %s3578_s23  ;;  %892 = vrot.lane.b32.xlu1 %v812_v32, %s3577_s22 }
  0xd8   : > { %843 = vrot.lane.b32.xlu0 %v3917_v26, %s3578_s23 }
  0xdc   : > { %v722_v36 = vpop.permute.xlu1 %721 }
  0xdd   : > { %v714_v41 = vpop.permute.xlu0 %713  ;;  %v796_v5 = vsel %vm778_vm3, %v759_v9, %v722_v36 }
  0xde   : > { %v788_v44 = vsel %vm778_vm3, %v751_v40, %v714_v41 }
  0xdf   : > { %835 = vrot.lane.b32.xlu2 %v3926_v29, %s3578_s23  ;;  %868 = vrot.lane.b32.xlu1 %v788_v44, %s3577_s22 }
  0xe0   : > { %853 = vrot.lane.b32.xlu0 %v3933_v30, %s3578_s23 }
  0xe4   : > { %v706_v2 = vpop.permute.xlu1 %705 }
  0xe5   : > { %v615_v55 = vpop.permute.xlu0 %614 }
  0xe6   : > { %v743_v61 = vsel %vm741_vm2, %v3806_v54, %v615_v55 }
  0xe7   : > { %876 = vrot.lane.b32.xlu2 %v796_v5, %s3577_s22  ;;  %861 = vrot.lane.b32.xlu1 %v812_v32, %s3578_s23  ;;  %v780_v11 = vsel %vm778_vm3, %v743_v61, %v706_v2 }
  0xec   : > { %v740_v57 = vpop.permute.xlu1 %739 }
  0xed   : > { %v649_v60 = vpop.permute.xlu0 %648 }
  0xee   : > { %v777_v62 = vsel %vm741_vm2, %v3820_v13, %v649_v60 }
  0xef   : > { %886 = vrot.lane.b32.xlu2 %v3858_v56, %s3577_s22  ;;  %837 = vrot.lane.b32.xlu1 %v788_v44, %s3578_s23  ;;  %v814_v34 = vsel %vm778_vm3, %v777_v62, %v740_v57 }
  0xf0   : > { %894 = vrot.lane.b32.xlu0 %v814_v34, %s3577_s22 }
  0xf2   : > { %v848_v63 = vpop.permute.xlu2 %847 }
  0xf3   : > { %v914_v13 = vsel %vm896_vm6, %v796_v5, %v848_v63 }
  0xf7   : > { %845 = vrot.lane.b32.xlu2 %v796_v5, %s3578_s23  ;;  %878 = vrot.lane.b32.xlu1 %v3844_v51, %s3577_s22 }
  0xf8   : > { %870 = vrot.lane.b32.xlu0 %v3876_v7, %s3577_s22 }
  0xfa   : > { %v889_v0 = vpop.permute.xlu2 %888 }
 0x109   : > { %v832_v1 = vpop.permute.xlu2 %831  ;;  %v881_v3 = vpop.permute.xlu1 %880 }
 0x10a   : > { %v947_v4 = vsel %vm929_vm7, %v914_v13, %v881_v3  ;;  %v898_v15 = vsel %vm896_vm6, %v780_v11, %v832_v1  ;;  %v4046_v3 = vld [vmem:[%s4656_s2] ss:$0 sm:$0xff] }
 0x10b   : > { %3354 = vmatmul.msk.bf16.vlgmr.msra.gmra.mxu2 %vm981_vm8, %v947_v4 }
 0x111   : > { %v873_v6 = vpop.permute.xlu2 %872 }
 0x112   : > { %v856_v50 = vpop.permute.xlu0 %855 }
 0x113   : > { %v922_v10 = vsel %vm896_vm6, %v3933_v30, %v856_v50 }
 0x114   : > { %v955_v45 = vsel %vm929_vm7, %v922_v10, %v889_v0 }
 0x115   : > { %3358 = vmatmul.msk.bf16.vlgmr.msra.gmra.mxu3 %vm981_vm8, %v955_v45 }
 0x119   : > { %v850_v17 = vpop.permute.xlu2 %849  ;;  %v865_v18 = vpop.permute.xlu1 %864 }
 0x11a   : > { %v931_v12 = vsel %vm929_vm7, %v898_v15, %v865_v18  ;;  %v916_v23 = vsel %vm896_vm6, %v3844_v51, %v850_v17 }
 0x11b   : > { %3346 = vmatmul.msk.bf16.vlgmr.msra.gmra.mxu0 %vm981_vm8, %v931_v12 }
 0x120   : > { %v840_v20 = vpop.permute.xlu0 %839 }
 0x121   : > { %v891_v21 = vpop.permute.xlu2 %890  ;;  %v906_v22 = vsel %vm896_vm6, %v788_v44, %v840_v20 }
 0x122   : > { %v939_v37 = vsel %vm929_vm7, %v906_v22, %v873_v6 }
 0x123   : > { %3350 = vmatmul.msk.bf16.vlgmr.msra.gmra.mxu1 %vm981_vm8, %v939_v37 }
 0x128   : > { %v858_v54 = vpop.permute.xlu0 %857 }
 0x129   : > { %v924_v52 = vsel %vm896_vm6, %v3858_v56, %v858_v54  ;;  %v867_v14 = vpop.permute.xlu2 %866 }
 0x12a   : > { %v957_v27 = vsel %vm929_vm7, %v924_v52, %v891_v21 }
 0x12b   : > { %3359 = vmatmul.msk.bf16.gmra.mxu3 %vm981_vm8, %v957_v27 }
 0x130   : > { %v834_v28 = vpop.permute.xlu0 %833 }
 0x131   : > { %v883_v30 = vpop.permute.xlu1 %882  ;;  %v900_v16 = vsel %vm896_vm6, %v3879_v8, %v834_v28  ;;  %v860_v56 = vpop.permute.xlu2 %859 }
 0x132   : > { %v949_v31 = vsel %vm929_vm7, %v916_v23, %v883_v30  ;;  %v933_v46 = vsel %vm929_vm7, %v900_v16, %v867_v14  ;;  %v926_v40 = vsel %vm896_vm6, %v3855_v59, %v860_v56 }
 0x133   : > { %3355 = vmatmul.msk.bf16.gmra.mxu2 %vm981_vm8, %v949_v31  ;;  %3347 = vmatmul.msk.bf16.gmra.mxu0 %vm981_vm8, %v933_v46 }
 0x139   : > { %v842_v32 = vpop.permute.xlu1 %841  ;;  %v836_v42 = vpop.permute.xlu2 %835 }
 0x13a   : > { %v908_v33 = vsel %vm896_vm6, %v3876_v7, %v842_v32  ;;  %v875_v35 = vpop.permute.xlu0 %874  ;;  %v902_v48 = vsel %vm896_vm6, %v3867_v24, %v836_v42 }
 0x13b   : > { %v941_v51 = vsel %vm929_vm7, %v908_v33, %v875_v35 }
 0x13c   : > { %3351 = vmatmul.msk.bf16.gmra.mxu1 %vm981_vm8, %v941_v51 }
 0x141   : > { %v852_v8 = vpop.permute.xlu1 %851  ;;  %v877_v41 = vpop.permute.xlu2 %876 }
 0x142   : > { %v918_v36 = vsel %vm896_vm6, %v3841_v49, %v852_v8  ;;  %v885_v38 = vpop.permute.xlu0 %884 }
 0x143   : > { %v951_v39 = vsel %vm929_vm7, %v918_v36, %v885_v38 }
 0x144   : > { %3356 = vmatmul.msk.bf16.gmra.mxu2 %vm981_vm8, %v951_v39 }
 0x149   : > { %v893_v7 = vpop.permute.xlu1 %892  ;;  %v887_v2 = vpop.permute.xlu2 %886 }
 0x14a   : > { %v844_v43 = vpop.permute.xlu0 %843  ;;  %v959_v44 = vsel %vm929_vm7, %v926_v40, %v893_v7 }
 0x14b   : > { %v910_v47 = vsel %vm896_vm6, %v3888_v58, %v844_v43  ;;  %3360 = vmatmul.msk.bf16.gmra.mxu3 %vm981_vm8, %v959_v44 }
 0x14c   : > { %v943_v49 = vsel %vm929_vm7, %v910_v47, %v877_v41 }
 0x14d   : > { %3352 = vmatmul.msk.bf16.gmra.mxu1 %vm981_vm8, %v943_v49 }
 0x151   : > { %v869_v53 = vpop.permute.xlu1 %868  ;;  %v846_v34 = vpop.permute.xlu2 %845 }
 0x152   : > { %v854_v9 = vpop.permute.xlu0 %853  ;;  %v935_v59 = vsel %vm929_vm7, %v902_v48, %v869_v53 }
 0x153   : > { %v920_v55 = vsel %vm896_vm6, %v3897_v19, %v854_v9  ;;  %3348 = vmatmul.msk.bf16.gmra.mxu0 %vm981_vm8, %v935_v59  ;;  %v912_v19 = vsel %vm896_vm6, %v3917_v26, %v846_v34 }
 0x154   : > { %v953_v58 = vsel %vm929_vm7, %v920_v55, %v887_v2 }
 0x155   : > { %3357 = vmatmul.msk.bf16.gmra.mxu2 %vm981_vm8, %v953_v58 }
 0x159   : > { %v862_v5 = vpop.permute.xlu1 %861 }
 0x15a   : > { %v928_v60 = vsel %vm896_vm6, %v3910_v25, %v862_v5 }
 0x161   : > { %v838_v57 = vpop.permute.xlu1 %837 }
 0x162   : > { %v895_v24 = vpop.permute.xlu0 %894  ;;  %v904_v0 = vsel %vm896_vm6, %v3926_v29, %v838_v57 }
 0x163   : > { %v961_v62 = vsel %vm929_vm7, %v928_v60, %v895_v24 }
 0x164   : > { %3361 = vmatmul.msk.bf16.gmra.mxu3 %vm981_vm8, %v961_v62 }
 0x169   : > { %v879_v63 = vpop.permute.xlu1 %878 }
 0x16a   : > { %v871_v13 = vpop.permute.xlu0 %870  ;;  %v945_v1 = vsel %vm929_vm7, %v912_v19, %v879_v63 }
 0x16b   : > { %3353 = vmatmul.msk.bf16.gmra.mxu1 %vm981_vm8, %v945_v1  ;;  %v937_v25 = vsel %vm929_vm7, %v904_v0, %v871_v13 }
 0x16c   : > { %3349 = vmatmul.msk.bf16.gmra.mxu0 %vm981_vm8, %v937_v25 }
 0x18e   : > { %v1070_v4 = vpop.f32.mrf.mxu2 }
 0x18f   : > { %v1071_v26 = vadd.f32 %v4046_v3, %v1070_v4 }
 0x191   : > { %v1126_v6 = vmax.f32 %v1071_v26, 0.0 }
 0x193   : > { %v1158_v50 = vpack.c.bf16 %v1126_v6, %v1126_v6 }
 0x195   : > { %v1222_v29 = vrot.slane %v1158_v50, 3 }
 0x196   : > { %v1072_v10 = vpop.f32.mrf.mxu2 }
 0x197   : > { %v1436_v45 = vsel %vm1238_vm9, %v1158_v50, %v1222_v29  ;;  %v1437_v61 = vsel %vm1242_vm10, %v1158_v50, %v1222_v29  ;;  %v1440_v11 = vsel %vm1246_vm11, %v1158_v50, %v1222_v29  ;;  %v1443_v15 = vsel %vm1250_vm12, %v1158_v50, %v1222_v29 }
 0x198   : > { %v1439_v17 = vrot.slane %v1437_v61, 1  ;;  %v1442_v18 = vrot.slane %v1440_v11, 2  ;;  %v1445_v12 = vrot.slane %v1443_v15, 3  ;;  %v1818_v20 = vunpack.c.l.bf16 %v1436_v45  ;;  %v1090_v21 = vpop.f32.mrf.mxu3  ;;  %v1030_v22 = vpop.f32.mrf.mxu0 }
 0x199   : > { %v1073_v37 = vadd.f32 %v4046_v3, %v1072_v10  ;;  %v1091_v54 = vadd.f32 %v4046_v3, %v1090_v21  ;;  %v1031_v52 = vadd.f32 %v4046_v3, %v1030_v22 }
 0x19a   : > { %v1819_v27 = vunpack.c.l.bf16 %v1439_v17  ;;  %v1820_v14 = vunpack.c.l.bf16 %v1442_v18  ;;  %v1821_v16 = vunpack.c.l.bf16 %v1445_v12  ;;  %v3426_v31 = vrot.slane %v1818_v20, 9 }
 0x19b   : > { %v1127_v28 = vmax.f32 %v1073_v37, 0.0  ;;  %v1134_v23 = vmax.f32 %v1091_v54, 0.0  ;;  %v1110_v30 = vmax.f32 %v1031_v52, 0.0 }
 0x19c   : > { %v3427_v46 = vrot.slane %v1819_v27, 9  ;;  %v3428_v35 = vrot.slane %v1820_v14, 9  ;;  %v3429_v8 = vrot.slane %v1821_v16, 9  ;;  %v4056_v36 = vmax.f32 %v1818_v20, %v3426_v31 }
 0x19d   : > { %v1159_v56 = vpack.c.bf16 %v1127_v28, %v1127_v28  ;;  %v1166_v32 = vpack.c.bf16 %v1134_v23, %v1134_v23  ;;  %v1142_v33 = vpack.c.bf16 %v1110_v30, %v1110_v30 }
 0x19e   : > { %v4058_v38 = vmax.f32 %v1819_v27, %v3427_v46  ;;  %v4068_v63 = vmax.f32 %v1820_v14, %v3428_v35  ;;  %v4070_v29 = vmax.f32 %v1821_v16, %v3429_v8 }
 0x19f   : > { %v1223_v51 = vrot.slane %v1159_v56, 3  ;;  %v1230_v42 = vrot.slane %v1166_v32, 3  ;;  %v1206_v39 = vrot.slane %v1142_v33, 3 }
 0x1a0   : > { %v1050_v44 = vpop.f32.mrf.mxu1  ;;  %v1092_v25 = vpop.f32.mrf.mxu3 }
 0x1a1   : > { %v1448_v40 = vsel %vm1238_vm9, %v1159_v56, %v1223_v51  ;;  %v1449_v41 = vsel %vm1242_vm10, %v1159_v56, %v1223_v51  ;;  %v1452_v7 = vsel %vm1246_vm11, %v1159_v56, %v1223_v51  ;;  %v1455_v43 = vsel %vm1250_vm12, %v1159_v56, %v1223_v51  ;;  %v1032_v37 = vpop.f32.mrf.mxu0 }
 0x1a2   : > { %v1451_v47 = vrot.slane %v1449_v41, 1  ;;  %v1454_v49 = vrot.slane %v1452_v7, 2  ;;  %v1457_v48 = vrot.slane %v1455_v43, 3  ;;  %v1822_v53 = vunpack.c.l.bf16 %v1448_v40 }
 0x1a3   : > { %v1532_v9 = vsel %vm1238_vm9, %v1166_v32, %v1230_v42  ;;  %v1533_v59 = vsel %vm1242_vm10, %v1166_v32, %v1230_v42  ;;  %v1536_v2 = vsel %vm1246_vm11, %v1166_v32, %v1230_v42  ;;  %v1539_v55 = vsel %vm1250_vm12, %v1166_v32, %v1230_v42 }
 0x1a4   : > { %v1823_v58 = vunpack.c.l.bf16 %v1451_v47  ;;  %v1824_v5 = vunpack.c.l.bf16 %v1454_v49  ;;  %v1825_v57 = vunpack.c.l.bf16 %v1457_v48  ;;  %v3430_v60 = vrot.slane %v1822_v53, 9 }
 0x1a5   : > { %v1535_v24 = vrot.slane %v1533_v59, 1  ;;  %v1538_v62 = vrot.slane %v1536_v2, 2  ;;  %v1541_v34 = vrot.slane %v1539_v55, 3  ;;  %v1850_v19 = vunpack.c.l.bf16 %v1532_v9 }
 0x1a6   : > { %v3431_v0 = vrot.slane %v1823_v58, 9  ;;  %v3432_v13 = vrot.slane %v1824_v5, 9  ;;  %v3433_v1 = vrot.slane %v1825_v57, 9  ;;  %v4072_v10 = vmax.f32 %v1822_v53, %v3430_v60 }
 0x1a7   : > { %v1851_v4 = vunpack.c.l.bf16 %v1535_v24  ;;  %v1852_v26 = vunpack.c.l.bf16 %v1538_v62  ;;  %v1853_v6 = vunpack.c.l.bf16 %v1541_v34  ;;  %v3458_v50 = vrot.slane %v1850_v19, 9 }
 0x1a8   : > { %v4074_v45 = vmax.f32 %v1823_v58, %v3431_v0  ;;  %v1241_v61 = vsel %vm1238_vm9, %v1142_v33, %v1206_v39  ;;  %v4077_v11 = vmax.f32 %v1824_v5, %v3432_v13  ;;  %v4079_v15 = vmax.f32 %v1825_v57, %v3433_v1  ;;  %v1052_v54 = vpop.f32.mrf.mxu1 }
 0x1a9   : > { %v3459_v17 = vrot.slane %v1851_v4, 9  ;;  %v3460_v18 = vrot.slane %v1852_v26, 9  ;;  %v1243_v12 = vsel %vm1242_vm10, %v1142_v33, %v1206_v39  ;;  %v1247_v20 = vsel %vm1246_vm11, %v1142_v33, %v1206_v39 }
 0x1aa   : > { %v1251_v21 = vsel %vm1250_vm12, %v1142_v33, %v1206_v39  ;;  %v1754_v22 = vunpack.c.l.bf16 %v1241_v61  ;;  %v3461_v52 = vrot.slane %v1853_v6, 9  ;;  %v4084_v27 = vmax.f32 %v1850_v19, %v3458_v50 }
 0x1ab   : > { %v4086_v14 = vmax.f32 %v1851_v4, %v3459_v17  ;;  %v1245_v28 = vrot.slane %v1243_v12, 1  ;;  %v1249_v23 = vrot.slane %v1247_v20, 2  ;;  %v1253_v30 = vrot.slane %v1251_v21, 3 }
 0x1ac   : > { %v3362_v16 = vrot.slane %v1754_v22, 9  ;;  %v1093_v31 = vadd.f32 %v4046_v3, %v1092_v25  ;;  %v1033_v56 = vadd.f32 %v4046_v3, %v1032_v37  ;;  %v1051_v32 = vadd.f32 %v4046_v3, %v1050_v44 }
 0x1ad   : > { %v1755_v46 = vunpack.c.l.bf16 %v1245_v28  ;;  %v1053_v33 = vadd.f32 %v4046_v3, %v1052_v54  ;;  %v4092_v35 = vmax.f32 %v1852_v26, %v3460_v18  ;;  %v1756_v51 = vunpack.c.l.bf16 %v1249_v23 }
 0x1ae   : > { %v1757_v42 = vunpack.c.l.bf16 %v1253_v30  ;;  %v1135_v8 = vmax.f32 %v1093_v31, 0.0  ;;  %v1095_v39 = vpop.f32.mrf.mxu3  ;;  %v1111_v41 = vmax.f32 %v1033_v56, 0.0  ;;  %v1118_v7 = vmax.f32 %v1051_v32, 0.0 }
 0x1af   : > { %v3363_v40 = vrot.slane %v1755_v46, 9  ;;  %v1119_v43 = vmax.f32 %v1053_v33, 0.0  ;;  %v3364_v47 = vrot.slane %v1756_v51, 9  ;;  %v4095_v53 = vadd.f32 %v4046_v3, %v1095_v39 }
 0x1b0   : > { %v3365_v49 = vrot.slane %v1757_v42, 9  ;;  %v1167_v48 = vpack.c.bf16 %v1135_v8, %v1135_v8  ;;  %v4097_v9 = vmax.f32 %v1853_v6, %v3461_v52  ;;  %v4099_v44 = vmax.f32 %v1754_v22, %v3362_v16  ;;  %v1035_v23 = vpop.f32.mrf.mxu0 }
 0x1b1   : > { %v1143_v59 = vpack.c.bf16 %v1111_v41, %v1111_v41  ;;  %v1150_v2 = vpack.c.bf16 %v1118_v7, %v1118_v7  ;;  %v4101_v55 = vmax.f32 %v1755_v46, %v3363_v40  ;;  %v4103_v58 = vmax.f32 %v1756_v51, %v3364_v47 }
 0x1b2   : > { %v1231_v5 = vrot.slane %v1167_v48, 3  ;;  %v1151_v57 = vpack.c.bf16 %v1119_v43, %v1119_v43  ;;  %v4105_v60 = vmax.f32 %v1757_v42, %v3365_v49  ;;  %v1136_v34 = vmax.f32 %v4095_v53, 0.0 }
 0x1b3   : > { %v1207_v24 = vrot.slane %v1143_v59, 3  ;;  %v1214_v62 = vrot.slane %v1150_v2, 3  ;;  %v1036_v40 = vadd.f32 %v4046_v3, %v1035_v23 }
 0x1b4   : > { %v1544_v19 = vsel %vm1238_vm9, %v1167_v48, %v1231_v5  ;;  %v1545_v0 = vsel %vm1242_vm10, %v1167_v48, %v1231_v5  ;;  %v1548_v13 = vsel %vm1246_vm11, %v1167_v48, %v1231_v5  ;;  %v1551_v1 = vsel %vm1250_vm12, %v1167_v48, %v1231_v5 }
 0x1b5   : > { %v1547_v25 = vrot.slane %v1545_v0, 1  ;;  %v1550_v4 = vrot.slane %v1548_v13, 2  ;;  %v1553_v26 = vrot.slane %v1551_v1, 3  ;;  %v1854_v6 = vunpack.c.l.bf16 %v1544_v19 }
 0x1b6   : > { %v1256_v50 = vsel %vm1238_vm9, %v1143_v59, %v1207_v24  ;;  %v1257_v61 = vsel %vm1242_vm10, %v1143_v59, %v1207_v24  ;;  %v1260_v17 = vsel %vm1246_vm11, %v1143_v59, %v1207_v24  ;;  %v1263_v18 = vsel %vm1250_vm12, %v1143_v59, %v1207_v24 }
 0x1b7   : > { %v1855_v12 = vunpack.c.l.bf16 %v1547_v25  ;;  %v1856_v20 = vunpack.c.l.bf16 %v1550_v4  ;;  %v1857_v21 = vunpack.c.l.bf16 %v1553_v26  ;;  %v3462_v22 = vrot.slane %v1854_v6, 9 }
 0x1b8   : > { %v1259_v37 = vrot.slane %v1257_v61, 1  ;;  %v1262_v54 = vrot.slane %v1260_v17, 2  ;;  %v1265_v52 = vrot.slane %v1263_v18, 3  ;;  %v1758_v28 = vunpack.c.l.bf16 %v1256_v50 }
 0x1b9   : > { %v3463_v30 = vrot.slane %v1855_v12, 9  ;;  %v3464_v16 = vrot.slane %v1856_v20, 9  ;;  %v3465_v31 = vrot.slane %v1857_v21, 9  ;;  %v1215_v46 = vrot.slane %v1151_v57, 3 }
 0x1ba   : > { %v1759_v56 = vunpack.c.l.bf16 %v1259_v37  ;;  %v1760_v32 = vunpack.c.l.bf16 %v1262_v54  ;;  %v1761_v33 = vunpack.c.l.bf16 %v1265_v52  ;;  %v3366_v51 = vrot.slane %v1758_v28, 9 }
 0x1bb   : > { %v4116_v42 = vmax.f32 %v1854_v6, %v3462_v22  ;;  %v4118_v8 = vmax.f32 %v1855_v12, %v3463_v30  ;;  %v1340_v39 = vsel %vm1238_vm9, %v1150_v2, %v1214_v62  ;;  %v4122_v41 = vmax.f32 %v1856_v20, %v3464_v16 }
 0x1bc   : > { %v4124_v7 = vmax.f32 %v1857_v21, %v3465_v31  ;;  %v3367_v43 = vrot.slane %v1759_v56, 9  ;;  %v3368_v47 = vrot.slane %v1760_v32, 9  ;;  %v1341_v49 = vsel %vm1242_vm10, %v1150_v2, %v1214_v62 }
 0x1bd   : > { %v1344_v48 = vsel %vm1246_vm11, %v1150_v2, %v1214_v62  ;;  %v1347_v59 = vsel %vm1250_vm12, %v1150_v2, %v1214_v62  ;;  %v1786_v5 = vunpack.c.l.bf16 %v1340_v39  ;;  %v3369_v24 = vrot.slane %v1761_v33, 9 }
 0x1be   : > { %v4129_v19 = vmax.f32 %v1758_v28, %v3366_v51  ;;  %v4131_v0 = vmax.f32 %v1759_v56, %v3367_v43  ;;  %v1343_v13 = vrot.slane %v1341_v49, 1  ;;  %v4133_v1 = vmax.f32 %v1760_v32, %v3368_v47  ;;  %v1075_v49 = vpop.f32.mrf.mxu2 }
 0x1bf   : > { %v1346_v25 = vrot.slane %v1344_v48, 2  ;;  %v1349_v4 = vrot.slane %v1347_v59, 3  ;;  %v1352_v26 = vsel %vm1238_vm9, %v1151_v57, %v1215_v46  ;;  %v1353_v50 = vsel %vm1242_vm10, %v1151_v57, %v1215_v46 }
 0x1c0   : > { %v1787_v6 = vunpack.c.l.bf16 %v1343_v13  ;;  %v1356_v61 = vsel %vm1246_vm11, %v1151_v57, %v1215_v46  ;;  %v1359_v2 = vsel %vm1250_vm12, %v1151_v57, %v1215_v46  ;;  %v3394_v18 = vrot.slane %v1786_v5, 9 }
 0x1c1   : > { %v1788_v62 = vunpack.c.l.bf16 %v1346_v25  ;;  %v1789_v17 = vunpack.c.l.bf16 %v1349_v4  ;;  %v1355_v12 = vrot.slane %v1353_v50, 1  ;;  %v1358_v21 = vrot.slane %v1356_v61, 2 }
 0x1c2   : > { %v3395_v20 = vrot.slane %v1787_v6, 9  ;;  %v1361_v22 = vrot.slane %v1359_v2, 3  ;;  %v1790_v37 = vunpack.c.l.bf16 %v1352_v26  ;;  %v1168_v23 = vpack.c.bf16 %v1136_v34, %v1136_v34 }
 0x1c3   : > { %v3396_v54 = vrot.slane %v1788_v62, 9  ;;  %v3397_v52 = vrot.slane %v1789_v17, 9  ;;  %v1791_v28 = vunpack.c.l.bf16 %v1355_v12  ;;  %v4142_v30 = vmax.f32 %v1761_v33, %v3369_v24 }
 0x1c4   : > { %v1792_v16 = vunpack.c.l.bf16 %v1358_v21  ;;  %v4144_v31 = vunpack.c.l.bf16 %v1361_v22  ;;  %v3398_v57 = vrot.slane %v1790_v37, 9  ;;  %v4146_v46 = vmax.f32 %v1786_v5, %v3394_v18  ;;  %v1097_v5 = vpop.f32.mrf.mxu3 }
 0x1c5   : > { %v4148_v56 = vmax.f32 %v1787_v6, %v3395_v20  ;;  %v3399_v32 = vrot.slane %v1791_v28, 9  ;;  %v1232_v51 = vrot.slane %v1168_v23, 3  ;;  %v4150_v39 = vmax.f32 %v1788_v62, %v3396_v54 }
 0x1c6   : > { %v4152_v43 = vmax.f32 %v1789_v17, %v3397_v52  ;;  %v3400_v47 = vrot.slane %v1792_v16, 9  ;;  %v1112_v53 = vmax.f32 %v1036_v40, 0.0  ;;  %v3401_v34 = vrot.slane %v4144_v31, 9 }
 0x1c7   : > { %v1556_v33 = vsel %vm1238_vm9, %v1168_v23, %v1232_v51  ;;  %v1557_v48 = vsel %vm1242_vm10, %v1168_v23, %v1232_v51  ;;  %v1560_v59 = vsel %vm1246_vm11, %v1168_v23, %v1232_v51  ;;  %v4158_v24 = vmax.f32 %v1790_v37, %v3398_v57 }
 0x1c8   : > { %v4160_v13 = vmax.f32 %v1791_v28, %v3399_v32  ;;  %v1559_v25 = vrot.slane %v1557_v48, 1  ;;  %v1562_v4 = vrot.slane %v1560_v59, 2  ;;  %v1563_v26 = vsel %vm1250_vm12, %v1168_v23, %v1232_v51 }
 0x1c9   : > { %v1858_v6 = vunpack.c.l.bf16 %v1556_v33  ;;  %v1144_v40 = vpack.c.bf16 %v1112_v53, %v1112_v53  ;;  %v1076_v50 = vadd.f32 %v4046_v3, %v1075_v49  ;;  %v1565_v61 = vrot.slane %v1563_v26, 3 }
 0x1ca   : > { %v1859_v2 = vunpack.c.l.bf16 %v1559_v25  ;;  %v1860_v62 = vunpack.c.l.bf16 %v1562_v4  ;;  %v1098_v17 = vadd.f32 %v4046_v3, %v1097_v5  ;;  %v4165_v18 = vmax.f32 %v1792_v16, %v3400_v47 }
 0x1cb   : > { %v3466_v12 = vrot.slane %v1858_v6, 9  ;;  %v1208_v20 = vrot.slane %v1144_v40, 3  ;;  %v1128_v21 = vmax.f32 %v1076_v50, 0.0  ;;  %v1861_v22 = vunpack.c.l.bf16 %v1565_v61 }
 0x1cc   : > { %v3467_v37 = vrot.slane %v1859_v2, 9  ;;  %v3468_v54 = vrot.slane %v1860_v62, 9  ;;  %v1137_v52 = vmax.f32 %v1098_v17, 0.0 }
 0x1cd   : > { %v2498_v28 = vmax.f32 %v1858_v6, %v3466_v12  ;;  %v1268_v23 = vsel %vm1238_vm9, %v1144_v40, %v1208_v20  ;;  %v1269_v57 = vsel %vm1242_vm10, %v1144_v40, %v1208_v20  ;;  %v1272_v32 = vsel %vm1246_vm11, %v1144_v40, %v1208_v20 }
 0x1ce   : > { %v3469_v51 = vrot.slane %v1861_v22, 9  ;;  %v2499_v53 = vmax.f32 %v1859_v2, %v3467_v37  ;;  %v2500_v49 = vmax.f32 %v1860_v62, %v3468_v54  ;;  %v1271_v33 = vrot.slane %v1269_v57, 1 }
 0x1cf   : > { %v2826_v16 = vmax.f32 %v4084_v27, %v2498_v28  ;;  %v1274_v47 = vrot.slane %v1272_v32, 2  ;;  %v1275_v48 = vsel %vm1250_vm12, %v1144_v40, %v1208_v20  ;;  %v1762_v59 = vunpack.c.l.bf16 %v1268_v23 }
 0x1d0   : > { %v2501_v5 = vmax.f32 %v1861_v22, %v3469_v51  ;;  %v2827_v25 = vmax.f32 %v4086_v14, %v2499_v53  ;;  %v2828_v4 = vmax.f32 %v4092_v35, %v2500_v49  ;;  %v1277_v26 = vrot.slane %v1275_v48, 3 }
 0x1d1   : > { %v2890_v6 = vpack.c.bf16 %v2826_v16, %v2826_v16  ;;  %v1763_v50 = vunpack.c.l.bf16 %v1271_v33  ;;  %v1764_v61 = vunpack.c.l.bf16 %v1274_v47  ;;  %v3370_v17 = vrot.slane %v1762_v59, 9 }
 0x1d2   : > { %v2829_v2 = vmax.f32 %v4097_v9, %v2501_v5  ;;  %v2891_v62 = vpack.c.bf16 %v2827_v25, %v2827_v25  ;;  %v2892_v12 = vpack.c.bf16 %v2828_v4, %v2828_v4  ;;  %v1765_v37 = vunpack.c.l.bf16 %v1277_v26 }
 0x1d3   : > { %v3018_v27 = vunpack.c.l.b16 %v2890_v6  ;;  %v3371_v54 = vrot.slane %v1763_v50, 9  ;;  %v3372_v28 = vrot.slane %v1764_v61, 9  ;;  %v2402_v40 = vmax.f32 %v1762_v59, %v3370_v17 }
 0x1d4   : > { %v2893_v20 = vpack.c.bf16 %v2829_v2, %v2829_v2  ;;  %v3019_v22 = vunpack.c.l.b16 %v2891_v62  ;;  %v3020_v23 = vunpack.c.l.b16 %v2892_v12  ;;  %v3373_v14 = vrot.slane %v1765_v37, 9  ;;  %v1037_v12 = vpop.f32.mrf.mxu0 }
 0x1d5   : > { %v2403_v57 = vmax.f32 %v1763_v50, %v3371_v54  ;;  %v2404_v35 = vmax.f32 %v1764_v61, %v3372_v28  ;;  %v2778_v32 = vmax.f32 %v4099_v44, %v2402_v40  ;;  %v1160_v51 = vpack.c.bf16 %v1128_v21, %v1128_v21 }
 0x1d6   : > { %v3021_v53 = vunpack.c.l.b16 %v2893_v20  ;;  %v3122_v49 = vrot.slane %v3019_v22, 7  ;;  %v3124_v33 = vrot.slane %v3020_v23, 6  ;;  %v2405_v9 = vmax.f32 %v1765_v37, %v3373_v14 }
 0x1d7   : > { %v2779_v16 = vmax.f32 %v4101_v55, %v2403_v57  ;;  %v2780_v47 = vmax.f32 %v4103_v58, %v2404_v35  ;;  %v2842_v48 = vpack.c.bf16 %v2778_v32, %v2778_v32  ;;  %v1224_v5 = vrot.slane %v1160_v51, 3 }
 0x1d8   : > { %v4181_v59 = vmax.f32 %v4144_v31, %v3401_v34  ;;  %v3123_v25 = vsel %vm1242_vm10, %v3122_v49, %v3018_v27  ;;  %v3126_v4 = vrot.slane %v3021_v53, 5  ;;  %v2781_v44 = vmax.f32 %v4105_v60, %v2405_v9 }
 0x1d9   : > { %v3125_v21 = vsel %vm1246_vm11, %v3124_v33, %v3123_v25  ;;  %v2843_v26 = vpack.c.bf16 %v2779_v16, %v2779_v16  ;;  %v2844_v6 = vpack.c.bf16 %v2780_v47, %v2780_v47  ;;  %v1169_v50 = vpack.c.bf16 %v1137_v52, %v1137_v52 }
 0x1da   : > { %v2845_v55 = vpack.c.bf16 %v2781_v44, %v2781_v44  ;;  %v2970_v61 = vunpack.c.l.b16 %v2842_v48  ;;  %v1460_v58 = vsel %vm1238_vm9, %v1160_v51, %v1224_v5  ;;  %v1461_v17 = vsel %vm1242_vm10, %v1160_v51, %v1224_v5 }
 0x1db   : > { %v2971_v2 = vunpack.c.l.b16 %v2843_v26  ;;  %v2972_v62 = vunpack.c.l.b16 %v2844_v6  ;;  %v1463_v31 = vrot.slane %v1461_v17, 1  ;;  %v1464_v34 = vsel %vm1246_vm11, %v1160_v51, %v1224_v5  ;;  %v1055_v6 = vpop.f32.mrf.mxu1 }
 0x1dc   : > { %v2973_v37 = vunpack.c.l.b16 %v2845_v55  ;;  %v1466_v27 = vrot.slane %v1464_v34, 2  ;;  %v1467_v60 = vsel %vm1250_vm12, %v1160_v51, %v1224_v5  ;;  %v1826_v54 = vunpack.c.l.bf16 %v1460_v58 }
 0x1dd   : > { %v3034_v28 = vrot.slane %v2971_v2, 7  ;;  %v3036_v40 = vrot.slane %v2972_v62, 6  ;;  %v1469_v52 = vrot.slane %v1467_v60, 3  ;;  %v1827_v20 = vunpack.c.l.bf16 %v1463_v31 }
 0x1de   : > { %v1828_v22 = vunpack.c.l.bf16 %v1466_v27  ;;  %v3434_v23 = vrot.slane %v1826_v54, 9  ;;  %v1233_v14 = vrot.slane %v1169_v50, 3  ;;  %v4191_v57 = vadd.f32 %v4046_v3, %v1037_v12 }
 0x1df   : > { %v4194_v35 = vsel %vm1250_vm12, %v3126_v4, %v3125_v21  ;;  %v3035_v32 = vsel %vm1242_vm10, %v3034_v28, %v2970_v61  ;;  %v1829_v53 = vunpack.c.l.bf16 %v1469_v52  ;;  %v3435_v49 = vrot.slane %v1827_v20, 9 }
 0x1e0   : > { %v3037_v51 = vsel %vm1246_vm11, %v3036_v40, %v3035_v32  ;;  %v3038_v33 = vrot.slane %v2973_v37, 5  ;;  %v3436_v9 = vrot.slane %v1828_v22, 9  ;;  %v2466_v16 = vmax.f32 %v1826_v54, %v3434_v23 }
 0x1e1   : > { %v3437_v47 = vrot.slane %v1829_v53, 9  ;;  %v2467_v48 = vmax.f32 %v1827_v20, %v3435_v49  ;;  %v1568_v5 = vsel %vm1238_vm9, %v1169_v50, %v1233_v14  ;;  %v1569_v25 = vsel %vm1242_vm10, %v1169_v50, %v1233_v14 }
 0x1e2   : > { %v2468_v44 = vmax.f32 %v1828_v22, %v3436_v9  ;;  %v2810_v26 = vmax.f32 %v4056_v36, %v2466_v16  ;;  %v1571_v4 = vrot.slane %v1569_v25, 1  ;;  %v1572_v21 = vsel %vm1246_vm11, %v1169_v50, %v1233_v14 }
 0x1e3   : > { %v2469_v55 = vmax.f32 %v1829_v53, %v3437_v47  ;;  %v2811_v61 = vmax.f32 %v4058_v38, %v2467_v48  ;;  %v1574_v58 = vrot.slane %v1572_v21, 2  ;;  %v1575_v17 = vsel %vm1250_vm12, %v1169_v50, %v1233_v14  ;;  %v1057_v21 = vpop.f32.mrf.mxu1 }
 0x1e4   : > { %v2812_v2 = vmax.f32 %v4068_v63, %v2468_v44  ;;  %v2874_v62 = vpack.c.bf16 %v2810_v26, %v2810_v26  ;;  %v1577_v31 = vrot.slane %v1575_v17, 3  ;;  %v1862_v34 = vunpack.c.l.bf16 %v1568_v5 }
 0x1e5   : > { %v2813_v12 = vmax.f32 %v4070_v29, %v2469_v55  ;;  %v2875_v37 = vpack.c.bf16 %v2811_v61, %v2811_v61  ;;  %v1863_v27 = vunpack.c.l.bf16 %v1571_v4  ;;  %v1864_v36 = vunpack.c.l.bf16 %v1574_v58  ;;  %v1077_v4 = vpop.f32.mrf.mxu2 }
 0x1e6   : > { %v4207_v60 = vsel %vm1250_vm12, %v3038_v33, %v3037_v51  ;;  %v2876_v54 = vpack.c.bf16 %v2812_v2, %v2812_v2  ;;  %v1865_v28 = vunpack.c.l.bf16 %v1577_v31  ;;  %v3470_v40 = vrot.slane %v1862_v34, 9 }
 0x1e7   : > { %v2877_v38 = vpack.c.bf16 %v2813_v12, %v2813_v12  ;;  %v3003_v52 = vunpack.c.l.b16 %v2875_v37  ;;  %v3471_v20 = vrot.slane %v1863_v27, 9  ;;  %v3472_v50 = vrot.slane %v1864_v36, 9 }
 0x1e8   : > { %v3002_v63 = vunpack.c.l.b16 %v2874_v62  ;;  %v3004_v22 = vunpack.c.l.b16 %v2876_v54  ;;  %v3473_v23 = vrot.slane %v1865_v28, 9  ;;  %v2502_v14 = vmax.f32 %v1862_v34, %v3470_v40 }
 0x1e9   : > { %v3005_v32 = vunpack.c.l.b16 %v2877_v38  ;;  %v3094_v29 = vrot.slane %v3003_v52, 7  ;;  %v2503_v53 = vmax.f32 %v1863_v27, %v3471_v20  ;;  %v2504_v49 = vmax.f32 %v1864_v36, %v3472_v50 }
 0x1ea   : > { %v3096_v9 = vrot.slane %v3004_v22, 6  ;;  %v2505_v16 = vmax.f32 %v1865_v28, %v3473_v23  ;;  %v2830_v51 = vmax.f32 %v4116_v42, %v2502_v14  ;;  %v1058_v31 = vadd.f32 %v4046_v3, %v1057_v21 }
 0x1eb   : > { %v3095_v33 = vsel %vm1242_vm10, %v3094_v29, %v3002_v63  ;;  %v3098_v47 = vrot.slane %v3005_v32, 5  ;;  %v2831_v48 = vmax.f32 %v4118_v8, %v2503_v53  ;;  %v2832_v5 = vmax.f32 %v4122_v41, %v2504_v49 }
 0x1ec   : > { %v3097_v25 = vsel %vm1246_vm11, %v3096_v9, %v3095_v33  ;;  %v2833_v44 = vmax.f32 %v4124_v7, %v2505_v16  ;;  %v2894_v26 = vpack.c.bf16 %v2830_v51, %v2830_v51  ;;  %v1113_v8 = vmax.f32 %v4191_v57, 0.0 }
 0x1ed   : > { %v4216_v55 = vsel %vm1250_vm12, %v3098_v47, %v3097_v25  ;;  %v2895_v42 = vpack.c.bf16 %v2831_v48, %v2831_v48  ;;  %v2896_v61 = vpack.c.bf16 %v2832_v5, %v2832_v5  ;;  %v1056_v41 = vadd.f32 %v4046_v3, %v1055_v6 }
 0x1ee   : > { %v2897_v58 = vpack.c.bf16 %v2833_v44, %v2833_v44  ;;  %v3022_v17 = vunpack.c.l.b16 %v2894_v26  ;;  %v1078_v7 = vadd.f32 %v4046_v3, %v1077_v4  ;;  %v1145_v37 = vpack.c.bf16 %v1113_v8, %v1113_v8 }
 0x1ef   : > { %v3023_v2 = vunpack.c.l.b16 %v2895_v42  ;;  %v3024_v62 = vunpack.c.l.b16 %v2896_v61  ;;  %v1120_v27 = vmax.f32 %v1056_v41, 0.0  ;;  %v1121_v40 = vmax.f32 %v1058_v31, 0.0 }
 0x1f0   : > { %v3025_v34 = vunpack.c.l.b16 %v2897_v58  ;;  %v3128_v12 = vrot.slane %v3022_v17, 4  ;;  %v1129_v28 = vmax.f32 %v1078_v7, 0.0  ;;  %v1209_v6 = vrot.slane %v1145_v37, 3 }
 0x1f1   : > { %v3130_v36 = vrot.slane %v3023_v2, 3  ;;  %v3132_v54 = vrot.slane %v3024_v62, 2  ;;  %v1152_v38 = vpack.c.bf16 %v1120_v27, %v1120_v27  ;;  %v4228_v63 = vpack.c.bf16 %v1121_v40, %v1121_v40 }
 0x1f2   : > { %v3129_v57 = vsel %vm3041_vm13, %v3128_v12, %v4194_v35  ;;  %v3134_v20 = vrot.slane %v3025_v34, 1  ;;  %v4226_v50 = vpack.c.bf16 %v1129_v28, %v1129_v28  ;;  %v1280_v23 = vsel %vm1238_vm9, %v1145_v37, %v1209_v6 }
 0x1f3   : > { %v3131_v52 = vsel %vm3044_vm14, %v3130_v36, %v3129_v57  ;;  %v1281_v14 = vsel %vm1242_vm10, %v1145_v37, %v1209_v6  ;;  %v1284_v32 = vsel %vm1246_vm11, %v1145_v37, %v1209_v6  ;;  %v1287_v49 = vsel %vm1250_vm12, %v1145_v37, %v1209_v6 }
 0x1f4   : > { %v3133_v22 = vsel %vm3047_vm15, %v3132_v54, %v3131_v52  ;;  %v1283_v29 = vrot.slane %v1281_v14, 1  ;;  %v1286_v53 = vrot.slane %v1284_v32, 2  ;;  %v1289_v16 = vrot.slane %v1287_v49, 3 }
 0x1f5   : > { %v3135_v35 = vsel %vm3050_vm0, %v3134_v20, %v3133_v22  ;;  %v1766_v51 = vunpack.c.l.bf16 %v1280_v23  ;;  %v1216_v33 = vrot.slane %v1152_v38, 3  ;;  %v4242_v5 = vrot.slane %v4226_v50, 3 }
 0x1f6   : > { %v3156_v9 = vpack.c.b16 %v3135_v35, %v3135_v35  ;;  %v1767_v47 = vunpack.c.l.bf16 %v1283_v29  ;;  %v1768_v48 = vunpack.c.l.bf16 %v1286_v53  ;;  %v4245_v25 = vrot.slane %v4228_v63, 3 }
 0x1f7   : > { %v1769_v44 = vunpack.c.l.bf16 %v1289_v16  ;;  %v3374_v26 = vrot.slane %v1766_v51, 9  ;;  %v1364_v4 = vsel %vm1238_vm9, %v1152_v38, %v1216_v33  ;;  %v1365_v21 = vsel %vm1242_vm10, %v1152_v38, %v1216_v33 }
 0x1f8   : > { %3173 = vst.msk [vmem:[%s4237_s8 + $0x18] sm:$0xf] %vm3166_vm1, %v3156_v9  ;;  %v3375_v42 = vrot.slane %v1767_v47, 9  ;;  %v3376_v61 = vrot.slane %v1768_v48, 9  ;;  %v1367_v58 = vrot.slane %v1365_v21, 1  ;;  %v1368_v17 = vsel %vm1246_vm11, %v1152_v38, %v1216_v33 }
 0x1f9   : > { %v3377_v8 = vrot.slane %v1769_v44, 9  ;;  %v2406_v41 = vmax.f32 %v1766_v51, %v3374_v26  ;;  %v1370_v2 = vrot.slane %v1368_v17, 2  ;;  %v1371_v62 = vsel %vm1250_vm12, %v1152_v38, %v1216_v33 }
 0x1fa   : > { %v2407_v7 = vmax.f32 %v1767_v47, %v3375_v42  ;;  %v2408_v31 = vmax.f32 %v1768_v48, %v3376_v61  ;;  %v1373_v34 = vrot.slane %v1371_v62, 3  ;;  %v1794_v12 = vunpack.c.l.bf16 %v1364_v4 }
 0x1fb   : > { %v2409_v37 = vmax.f32 %v1769_v44, %v3377_v8  ;;  %v2782_v27 = vmax.f32 %v4129_v19, %v2406_v41  ;;  %v1795_v36 = vunpack.c.l.bf16 %v1367_v58  ;;  %v1796_v54 = vunpack.c.l.bf16 %v1370_v2  ;;  %v1080_v2 = vpop.f32.mrf.mxu2 }
 0x1fc   : > { %v2783_v28 = vmax.f32 %v4131_v0, %v2407_v7  ;;  %v2784_v40 = vmax.f32 %v4133_v1, %v2408_v31  ;;  %v1797_v57 = vunpack.c.l.bf16 %v1373_v34  ;;  %v3402_v6 = vrot.slane %v1794_v12, 9 }
 0x1fd   : > { %v2785_v52 = vmax.f32 %v4142_v30, %v2409_v37  ;;  %v2846_v20 = vpack.c.bf16 %v2782_v27, %v2782_v27  ;;  %v3403_v22 = vrot.slane %v1795_v36, 9  ;;  %v3404_v38 = vrot.slane %v1796_v54, 9 }
 0x1fe   : > { %v2847_v23 = vpack.c.bf16 %v2783_v28, %v2783_v28  ;;  %v2848_v14 = vpack.c.bf16 %v2784_v40, %v2784_v40  ;;  %v3405_v32 = vrot.slane %v1797_v57, 9  ;;  %v2434_v35 = vmax.f32 %v1794_v12, %v3402_v6 }
 0x1ff   : > { %v2849_v29 = vpack.c.bf16 %v2785_v52, %v2785_v52  ;;  %v2974_v53 = vunpack.c.l.b16 %v2846_v20  ;;  %v2435_v19 = vmax.f32 %v1795_v36, %v3403_v22  ;;  %v2436_v49 = vmax.f32 %v1796_v54, %v3404_v38 }
 0x200   : > { %v2975_v9 = vunpack.c.l.b16 %v2847_v23  ;;  %v2976_v16 = vunpack.c.l.b16 %v2848_v14  ;;  %v2437_v0 = vmax.f32 %v1797_v57, %v3405_v32  ;;  %v2794_v1 = vmax.f32 %v4146_v46, %v2434_v35 }
 0x201   : > { %v2977_v51 = vunpack.c.l.b16 %v2849_v29  ;;  %v3040_v33 = vrot.slane %v2974_v53, 4  ;;  %v2795_v30 = vmax.f32 %v4148_v56, %v2435_v19  ;;  %v2796_v47 = vmax.f32 %v4150_v39, %v2436_v49 }
 0x202   : > { %v3043_v48 = vrot.slane %v2975_v9, 3  ;;  %v3046_v44 = vrot.slane %v2976_v16, 2  ;;  %v2797_v26 = vmax.f32 %v4152_v43, %v2437_v0  ;;  %v2858_v4 = vpack.c.bf16 %v2794_v1, %v2794_v1 }
 0x203   : > { %v3042_v21 = vsel %vm3041_vm13, %v3040_v33, %v4207_v60  ;;  %v3049_v42 = vrot.slane %v2977_v51, 1  ;;  %v2859_v61 = vpack.c.bf16 %v2795_v30, %v2795_v30  ;;  %v2860_v58 = vpack.c.bf16 %v2796_v47, %v2796_v47 }
 0x204   : > { %v3045_v17 = vsel %vm3044_vm14, %v3043_v48, %v3042_v21  ;;  %v2861_v46 = vpack.c.bf16 %v2797_v26, %v2797_v26  ;;  %v2986_v8 = vunpack.c.l.b16 %v2858_v4  ;;  %v1472_v56 = vsel %vm1238_vm9, %v4226_v50, %v4242_v5 }
 0x205   : > { %v3048_v39 = vsel %vm3047_vm15, %v3046_v44, %v3045_v17  ;;  %v2987_v41 = vunpack.c.l.b16 %v2859_v61  ;;  %v2988_v43 = vunpack.c.l.b16 %v2860_v58  ;;  %v1473_v60 = vsel %vm1242_vm10, %v4226_v50, %v4242_v5 }
 0x206   : > { %v3051_v62 = vsel %vm3050_vm0, %v3049_v42, %v3048_v39  ;;  %v4272_v7 = vunpack.c.l.b16 %v2861_v46  ;;  %v1475_v31 = vrot.slane %v1473_v60, 1  ;;  %v1476_v34 = vsel %vm1246_vm11, %v4226_v50, %v4242_v5 }
 0x207   : > { %v3150_v12 = vpack.c.b16 %v3051_v62, %v3051_v62  ;;  %v3066_v37 = vrot.slane %v2987_v41, 7  ;;  %v3068_v27 = vrot.slane %v2988_v43, 6  ;;  %v1478_v36 = vrot.slane %v1476_v34, 2 }
 0x208   : > { %v1479_v54 = vsel %vm1250_vm12, %v4226_v50, %v4242_v5  ;;  %v1830_v28 = vunpack.c.l.bf16 %v1472_v56  ;;  %v1831_v40 = vunpack.c.l.bf16 %v1475_v31  ;;  %v4281_v57 = vadd.f32 %v4046_v3, %v1080_v2 }
 0x209   : > { %3167 = vst.msk [vmem:[%s4237_s8] sm:$0xf] %vm3166_vm1, %v3150_v12  ;;  %v3067_v6 = vsel %vm1242_vm10, %v3066_v37, %v2986_v8  ;;  %v3070_v52 = vrot.slane %v4272_v7, 5  ;;  %v1481_v20 = vrot.slane %v1479_v54, 3  ;;  %v1832_v22 = vunpack.c.l.bf16 %v1478_v36 }
 0x20a   : > { %v3438_v38 = vrot.slane %v1830_v28, 9  ;;  %v3439_v23 = vrot.slane %v1831_v40, 9  ;;  %v1376_v14 = vsel %vm1238_vm9, %v4228_v63, %v4245_v25  ;;  %v1377_v50 = vsel %vm1242_vm10, %v4228_v63, %v4245_v25 }
 0x20b   : > { %v4294_v3 = vsel %vm1246_vm11, %v3068_v27, %v3067_v6  ;;  %v1833_v5 = vunpack.c.l.bf16 %v1481_v20  ;;  %v3440_v32 = vrot.slane %v1832_v22, 9  ;;  %v1379_v35 = vrot.slane %v1377_v50, 1 }
 0x20c   : > { %v2470_v29 = vmax.f32 %v1830_v28, %v3438_v38  ;;  %v2471_v53 = vmax.f32 %v1831_v40, %v3439_v23  ;;  %v1380_v19 = vsel %vm1246_vm11, %v4228_v63, %v4245_v25  ;;  %v1383_v49 = vsel %vm1250_vm12, %v4228_v63, %v4245_v25  ;;  %v1060_v40 = vpop.f32.mrf.mxu1 }
 0x20d   : > { %v3441_v9 = vrot.slane %v1833_v5, 9  ;;  %v2472_v16 = vmax.f32 %v1832_v22, %v3440_v32  ;;  %v1382_v0 = vrot.slane %v1380_v19, 2  ;;  %v1385_v1 = vrot.slane %v1383_v49, 3 }
 0x20e   : > { %v2814_v51 = vmax.f32 %v4072_v10, %v2470_v29  ;;  %v2815_v33 = vmax.f32 %v4074_v45, %v2471_v53  ;;  %v1798_v30 = vunpack.c.l.bf16 %v1376_v14  ;;  %v1799_v47 = vunpack.c.l.bf16 %v1379_v35 }
 0x20f   : > { %v2473_v48 = vmax.f32 %v1833_v5, %v3441_v9  ;;  %v2816_v44 = vmax.f32 %v4077_v11, %v2472_v16  ;;  %v1800_v26 = vunpack.c.l.bf16 %v1382_v0  ;;  %v1801_v4 = vunpack.c.l.bf16 %v1385_v1 }
 0x210   : > { %v2878_v21 = vpack.c.bf16 %v2814_v51, %v2814_v51  ;;  %v2879_v42 = vpack.c.bf16 %v2815_v33, %v2815_v33  ;;  %v3406_v61 = vrot.slane %v1798_v30, 9  ;;  %v3407_v58 = vrot.slane %v1799_v47, 9 }
 0x211   : > { %v2817_v63 = vmax.f32 %v4079_v15, %v2473_v48  ;;  %v2880_v25 = vpack.c.bf16 %v2816_v44, %v2816_v44  ;;  %v3408_v17 = vrot.slane %v1800_v26, 9  ;;  %v3409_v46 = vrot.slane %v1801_v4, 9 }
 0x212   : > { %v3006_v8 = vunpack.c.l.b16 %v2878_v21  ;;  %v3007_v10 = vunpack.c.l.b16 %v2879_v42  ;;  %v2438_v56 = vmax.f32 %v1798_v30, %v3406_v61  ;;  %v2439_v45 = vmax.f32 %v1799_v47, %v3407_v58 }
 0x213   : > { %v2881_v39 = vpack.c.bf16 %v2817_v63, %v2817_v63  ;;  %v3008_v41 = vunpack.c.l.b16 %v2880_v25  ;;  %v2440_v43 = vmax.f32 %v1800_v26, %v3408_v17  ;;  %v2441_v60 = vmax.f32 %v1801_v4, %v3409_v46  ;;  %v1082_v26 = vpop.f32.mrf.mxu2  ;;  %v1040_v46 = vpop.f32.mrf.mxu0 }
 0x214   : > { %v3100_v11 = vrot.slane %v3006_v8, 4  ;;  %v3102_v2 = vrot.slane %v3007_v10, 3  ;;  %v2798_v62 = vmax.f32 %v4158_v24, %v2438_v56  ;;  %v2799_v31 = vmax.f32 %v4160_v13, %v2439_v45 }
 0x215   : > { %v3009_v34 = vunpack.c.l.b16 %v2881_v39  ;;  %v3104_v12 = vrot.slane %v3008_v41, 2  ;;  %v2800_v15 = vmax.f32 %v4165_v18, %v2440_v43  ;;  %v2801_v37 = vmax.f32 %v4181_v59, %v2441_v60  ;;  %v1100_v59 = vpop.f32.mrf.mxu3  ;;  %v1062_v60 = vpop.f32.mrf.mxu1 }
 0x216   : > { %v3101_v27 = vsel %vm3041_vm13, %v3100_v11, %v4216_v55  ;;  %v2862_v36 = vpack.c.bf16 %v2798_v62, %v2798_v62  ;;  %v2863_v54 = vpack.c.bf16 %v2799_v31, %v2799_v31  ;;  %v1130_v28 = vmax.f32 %v4281_v57, 0.0  ;;  %v4319_v57 = vld [vmem:[%s4656_s2] ss:$0 sm:$0xff] }
 0x217   : > { %v3103_v6 = vsel %vm3044_vm14, %v3102_v2, %v3101_v27  ;;  %v3106_v20 = vrot.slane %v3009_v34, 1  ;;  %v2864_v24 = vpack.c.bf16 %v2800_v15, %v2800_v15  ;;  %v2865_v22 = vpack.c.bf16 %v2801_v37, %v2801_v37 }
 0x218   : > { %v3105_v13 = vsel %vm3047_vm15, %v3104_v12, %v3103_v6  ;;  %v2990_v38 = vunpack.c.l.b16 %v2862_v36  ;;  %v2991_v23 = vunpack.c.l.b16 %v2863_v54  ;;  %v1162_v18 = vpack.c.bf16 %v1130_v28, %v1130_v28 }
 0x219   : > { %v3107_v14 = vsel %vm3050_vm0, %v3106_v20, %v3105_v13  ;;  %v2992_v55 = vunpack.c.l.b16 %v2864_v24  ;;  %v2993_v50 = vunpack.c.l.b16 %v2865_v22  ;;  %v1061_v5 = vadd.f32 %v4319_v57, %v1060_v40 }
 0x21a   : > { %v3154_v32 = vpack.c.b16 %v3107_v14, %v3107_v14  ;;  %v3072_v35 = vrot.slane %v2990_v38, 4  ;;  %v3074_v29 = vrot.slane %v2991_v23, 3  ;;  %v1226_v53 = vrot.slane %v1162_v18, 3 }
 0x21b   : > { %v3071_v19 = vsel %vm1250_vm12, %v3070_v52, %v4294_v3  ;;  %v3076_v49 = vrot.slane %v2992_v55, 2  ;;  %v1122_v9 = vmax.f32 %v1061_v5, 0.0  ;;  %v1101_v16 = vadd.f32 %v4319_v57, %v1100_v59 }
 0x21c   : > { %3171 = vst.msk [vmem:[%s4237_s8 + $0x10] sm:$0xf] %vm3166_vm1, %v3154_v32  ;;  %v3073_v0 = vsel %vm3041_vm13, %v3072_v35, %v3071_v19  ;;  %v3078_v51 = vrot.slane %v2993_v50, 1  ;;  %v1485_v30 = vsel %vm1242_vm10, %v1162_v18, %v1226_v53  ;;  %v1488_v52 = vsel %vm1246_vm11, %v1162_v18, %v1226_v53 }
 0x21d   : > { %v3075_v1 = vsel %vm3044_vm14, %v3074_v29, %v3073_v0  ;;  %v1154_v47 = vpack.c.bf16 %v1122_v9, %v1122_v9  ;;  %v1491_v3 = vsel %vm1250_vm12, %v1162_v18, %v1226_v53  ;;  %v1138_v48 = vmax.f32 %v1101_v16, 0.0 }
 0x21e   : > { %v3077_v33 = vsel %vm3047_vm15, %v3076_v49, %v3075_v1  ;;  %v1484_v4 = vsel %vm1238_vm9, %v1162_v18, %v1226_v53  ;;  %v1487_v21 = vrot.slane %v1485_v30, 1  ;;  %v1490_v58 = vrot.slane %v1488_v52, 2 }
 0x21f   : > { %v3079_v7 = vsel %vm3050_vm0, %v3078_v51, %v3077_v33  ;;  %v1218_v42 = vrot.slane %v1154_v47, 3  ;;  %v1170_v61 = vpack.c.bf16 %v1138_v48, %v1138_v48  ;;  %v1493_v63 = vrot.slane %v1491_v3, 3  ;;  %v1102_v48 = vpop.f32.mrf.mxu3 }
 0x220   : > { %v3152_v44 = vpack.c.b16 %v3079_v7, %v3079_v7  ;;  %v1083_v25 = vadd.f32 %v4319_v57, %v1082_v26  ;;  %v1834_v17 = vunpack.c.l.bf16 %v1484_v4  ;;  %v1835_v8 = vunpack.c.l.bf16 %v1487_v21 }
 0x221   : > { %v1389_v10 = vsel %vm1242_vm10, %v1154_v47, %v1218_v42  ;;  %v1234_v56 = vrot.slane %v1170_v61, 3  ;;  %v1836_v45 = vunpack.c.l.bf16 %v1490_v58  ;;  %v1837_v39 = vunpack.c.l.bf16 %v1493_v63 }
 0x222   : > { %3169 = vst.msk [vmem:[%s4237_s8 + $0x8] sm:$0xf] %vm3166_vm1, %v3152_v44  ;;  %v1392_v41 = vsel %vm1246_vm11, %v1154_v47, %v1218_v42  ;;  %v1395_v43 = vsel %vm1250_vm12, %v1154_v47, %v1218_v42  ;;  %v1131_v2 = vmax.f32 %v1083_v25, 0.0  ;;  %v1041_v62 = vadd.f32 %v4319_v57, %v1040_v46 }
 0x223   : > { %v1581_v11 = vsel %vm1242_vm10, %v1170_v61, %v1234_v56  ;;  %v3442_v31 = vrot.slane %v1834_v17, 9  ;;  %v1388_v34 = vsel %vm1238_vm9, %v1154_v47, %v1218_v42  ;;  %v1391_v12 = vrot.slane %v1389_v10, 1 }
 0x224   : > { %v1584_v15 = vsel %vm1246_vm11, %v1170_v61, %v1234_v56  ;;  %v1394_v37 = vrot.slane %v1392_v41, 2  ;;  %v1397_v27 = vrot.slane %v1395_v43, 3  ;;  %v1587_v36 = vsel %vm1250_vm12, %v1170_v61, %v1234_v56  ;;  %v1085_v43 = vpop.f32.mrf.mxu2 }
 0x225   : > { %v1063_v54 = vadd.f32 %v4319_v57, %v1062_v60  ;;  %v3443_v28 = vrot.slane %v1835_v8, 9  ;;  %v3444_v40 = vrot.slane %v1836_v45, 9  ;;  %v3445_v6 = vrot.slane %v1837_v39, 9 }
 0x226   : > { %v1583_v20 = vrot.slane %v1581_v11, 1  ;;  %v1580_v24 = vsel %vm1238_vm9, %v1170_v61, %v1234_v56  ;;  %v1586_v22 = vrot.slane %v1584_v15, 2  ;;  %v1163_v13 = vpack.c.bf16 %v1131_v2, %v1131_v2 }
 0x227   : > { %v1114_v38 = vmax.f32 %v1041_v62, 0.0  ;;  %v4350_v23 = vmax.f32 %v1834_v17, %v3442_v31  ;;  %v1802_v18 = vunpack.c.l.bf16 %v1388_v34  ;;  %v1803_v59 = vunpack.c.l.bf16 %v1391_v12  ;;  %v1042_v62 = vpop.f32.mrf.mxu0 }
 0x228   : > { %v1589_v14 = vrot.slane %v1587_v36, 3  ;;  %v1804_v55 = vunpack.c.l.bf16 %v1394_v37  ;;  %v1805_v50 = vunpack.c.l.bf16 %v1397_v27  ;;  %v1227_v5 = vrot.slane %v1163_v13, 3 }
 0x229   : > { %v1123_v32 = vmax.f32 %v1063_v54, 0.0  ;;  %v4352_v35 = vmax.f32 %v1835_v8, %v3443_v28  ;;  %v4354_v29 = vmax.f32 %v1836_v45, %v3444_v40  ;;  %v1866_v53 = vunpack.c.l.bf16 %v1580_v24 }
 0x22a   : > { %v1867_v19 = vunpack.c.l.bf16 %v1583_v20  ;;  %v1868_v49 = vunpack.c.l.bf16 %v1586_v22  ;;  %v1497_v9 = vsel %vm1242_vm10, %v1163_v13, %v1227_v5  ;;  %v1500_v16 = vsel %vm1246_vm11, %v1163_v13, %v1227_v5 }
 0x22b   : > { %v1146_v0 = vpack.c.bf16 %v1114_v38, %v1114_v38  ;;  %v3410_v1 = vrot.slane %v1802_v18, 9  ;;  %v1869_v51 = vunpack.c.l.bf16 %v1589_v14  ;;  %v1496_v33 = vsel %vm1238_vm9, %v1163_v13, %v1227_v5 }
 0x22c   : > { %v1503_v30 = vsel %vm1250_vm12, %v1163_v13, %v1227_v5  ;;  %v3411_v47 = vrot.slane %v1803_v59, 9  ;;  %v3412_v7 = vrot.slane %v1804_v55, 9  ;;  %v3413_v52 = vrot.slane %v1805_v50, 9 }
 0x22d   : > { %v1155_v3 = vpack.c.bf16 %v1123_v32, %v1123_v32  ;;  %v3474_v44 = vrot.slane %v1866_v53, 9  ;;  %v3475_v26 = vrot.slane %v1867_v19, 9  ;;  %v1499_v4 = vrot.slane %v1497_v9, 1 }
 0x22e   : > { %v1502_v21 = vrot.slane %v1500_v16, 2  ;;  %v3476_v42 = vrot.slane %v1868_v49, 9  ;;  %v1505_v61 = vrot.slane %v1503_v30, 3  ;;  %v1838_v58 = vunpack.c.l.bf16 %v1496_v33 }
 0x22f   : > { %v1210_v63 = vrot.slane %v1146_v0, 3  ;;  %v4360_v25 = vmax.f32 %v1837_v39, %v3445_v6  ;;  %v4362_v17 = vmax.f32 %v1802_v18, %v3410_v1  ;;  %v3477_v46 = vrot.slane %v1869_v51, 9 }
 0x230   : > { %v1103_v8 = vadd.f32 %v4319_v57, %v1102_v48  ;;  %v4365_v10 = vmax.f32 %v1803_v59, %v3411_v47  ;;  %v4367_v56 = vmax.f32 %v1804_v55, %v3412_v7  ;;  %v4369_v45 = vmax.f32 %v1805_v50, %v3413_v52 }
 0x231   : > { %v1219_v41 = vrot.slane %v1155_v3, 3  ;;  %v4371_v60 = vmax.f32 %v1866_v53, %v3474_v44  ;;  %v4373_v11 = vmax.f32 %v1867_v19, %v3475_v26  ;;  %v1839_v2 = vunpack.c.l.bf16 %v1499_v4 }
 0x232   : > { %v1840_v39 = vunpack.c.l.bf16 %v1502_v21  ;;  %v4375_v31 = vmax.f32 %v1868_v49, %v3476_v42  ;;  %v1841_v34 = vunpack.c.l.bf16 %v1505_v61  ;;  %v3446_v12 = vrot.slane %v1838_v58, 9 }
 0x233   : > { %v1293_v15 = vsel %vm1242_vm10, %v1146_v0, %v1210_v63  ;;  %v4378_v37 = vmax.f32 %v1869_v51, %v3477_v46  ;;  %v1296_v27 = vsel %vm1246_vm11, %v1146_v0, %v1210_v63  ;;  %v1299_v36 = vsel %vm1250_vm12, %v1146_v0, %v1210_v63 }
 0x234   : > { %v1139_v54 = vmax.f32 %v1103_v8, 0.0  ;;  %v1292_v28 = vsel %vm1238_vm9, %v1146_v0, %v1210_v63  ;;  %v1401_v40 = vsel %vm1242_vm10, %v1155_v3, %v1219_v41  ;;  %v1404_v6 = vsel %vm1246_vm11, %v1155_v3, %v1219_v41 }
 0x235   : > { %v1043_v20 = vadd.f32 %v4319_v57, %v1042_v62  ;;  %v3447_v24 = vrot.slane %v1839_v2, 9  ;;  %v3448_v22 = vrot.slane %v1840_v39, 9  ;;  %v1295_v13 = vrot.slane %v1293_v15, 1 }
 0x236   : > { %v1407_v38 = vsel %vm1250_vm12, %v1155_v3, %v1219_v41  ;;  %v3449_v18 = vrot.slane %v1841_v34, 9  ;;  %v4387_v59 = vmax.f32 %v1838_v58, %v3446_v12  ;;  %v1298_v14 = vrot.slane %v1296_v27, 2 }
 0x237   : > { %v1301_v55 = vrot.slane %v1299_v36, 3  ;;  %v1400_v50 = vsel %vm1238_vm9, %v1155_v3, %v1219_v41  ;;  %v1403_v5 = vrot.slane %v1401_v40, 1  ;;  %v1406_v32 = vrot.slane %v1404_v6, 2  ;;  %v1087_v3 = vpop.f32.mrf.mxu2 }
 0x238   : > { %v1171_v53 = vpack.c.bf16 %v1139_v54, %v1139_v54  ;;  %v1770_v19 = vunpack.c.l.bf16 %v1292_v28  ;;  %v1409_v49 = vrot.slane %v1407_v38, 3  ;;  %v1115_v9 = vmax.f32 %v1043_v20, 0.0 }
 0x239   : > { %v1086_v16 = vadd.f32 %v4319_v57, %v1085_v43  ;;  %v4391_v0 = vmax.f32 %v1839_v2, %v3447_v24  ;;  %v4393_v1 = vmax.f32 %v1840_v39, %v3448_v22  ;;  %v1771_v51 = vunpack.c.l.bf16 %v1295_v13 }
 0x23a   : > { %v1235_v33 = vrot.slane %v1171_v53, 3  ;;  %v4395_v30 = vmax.f32 %v1841_v34, %v3449_v18  ;;  %v1772_v47 = vunpack.c.l.bf16 %v1298_v14  ;;  %v1773_v7 = vunpack.c.l.bf16 %v1301_v55  ;;  %v1105_v34 = vpop.f32.mrf.mxu3 }
 0x23b   : > { %v1806_v52 = vunpack.c.l.bf16 %v1400_v50  ;;  %v1807_v48 = vunpack.c.l.bf16 %v1403_v5  ;;  %v1808_v44 = vunpack.c.l.bf16 %v1406_v32  ;;  %v1132_v4 = vmax.f32 %v1086_v16, 0.0 }
 0x23c   : > { %v1593_v26 = vsel %vm1242_vm10, %v1171_v53, %v1235_v33  ;;  %v3378_v21 = vrot.slane %v1770_v19, 9  ;;  %v1809_v42 = vunpack.c.l.bf16 %v1409_v49  ;;  %v1596_v61 = vsel %vm1246_vm11, %v1171_v53, %v1235_v33 }
 0x23d   : > { %v4399_v58 = vpack.c.bf16 %v1115_v9, %v1115_v9  ;;  %v3379_v63 = vrot.slane %v1771_v51, 9  ;;  %v4402_v46 = vsel %vm1238_vm9, %v1171_v53, %v1235_v33  ;;  %v1599_v8 = vsel %vm1250_vm12, %v1171_v53, %v1235_v33 }
 0x23e   : > { %v1088_v41 = vadd.f32 %v4319_v57, %v1087_v3  ;;  %v3380_v43 = vrot.slane %v1772_v47, 9  ;;  %v3381_v2 = vrot.slane %v1773_v7, 9  ;;  %v3414_v39 = vrot.slane %v1806_v52, 9 }
 0x23f   : > { %v1595_v62 = vrot.slane %v1593_v26, 1  ;;  %v3415_v12 = vrot.slane %v1807_v48, 9  ;;  %v3416_v15 = vrot.slane %v1808_v44, 9  ;;  %v1598_v27 = vrot.slane %v1596_v61, 2  ;;  %v1065_v26 = vpop.f32.mrf.mxu1 }
 0x240   : > { %v1164_v36 = vpack.c.bf16 %v1132_v4, %v1132_v4  ;;  %v3417_v54 = vrot.slane %v1809_v42, 9  ;;  %v1601_v28 = vrot.slane %v1599_v8, 3  ;;  %v4658_v40 = vunpack.c.l.bf16 %v4402_v46 }
 0x241   : > { %v4408_v6 = vrot.slane %v4399_v58, 3  ;;  %v4410_v20 = vmax.f32 %v1770_v19, %v3378_v21  ;;  %v4412_v24 = vmax.f32 %v1771_v51, %v3379_v63  ;;  %v1133_v22 = vmax.f32 %v1088_v41, 0.0  ;;  %v1045_v63 = vpop.f32.mrf.mxu0 }
 0x242   : > { %v1106_v13 = vadd.f32 %v4319_v57, %v1105_v34  ;;  %v4415_v38 = vmax.f32 %v1772_v47, %v3380_v43  ;;  %v4417_v18 = vmax.f32 %v1773_v7, %v3381_v2  ;;  %v4419_v14 = vmax.f32 %v1806_v52, %v3414_v39 }
 0x243   : > { %v4421_v55 = vunpack.c.l.bf16 %v1595_v62  ;;  %v4423_v50 = vmax.f32 %v1807_v48, %v3415_v12  ;;  %v4425_v5 = vmax.f32 %v1808_v44, %v3416_v15  ;;  %v4427_v32 = vunpack.c.l.bf16 %v1598_v27 }
 0x244   : > { %4659 = vst [vmem:[#allocation2_spill] sm:$0xff] %v4417_v18  ;;  %v1228_v53 = vrot.slane %v1164_v36, 3  ;;  %v4429_v19 = vmax.f32 %v1809_v42, %v3417_v54  ;;  %v4431_v49 = vunpack.c.l.bf16 %v1601_v28  ;;  %v4435_v9 = vrot.slane %v4658_v40, 9 }
 0x245   : > { %v4440_v16 = vsel %vm1242_vm10, %v4399_v58, %v4408_v6  ;;  %v1165_v47 = vpack.c.bf16 %v1133_v22, %v1133_v22  ;;  %v1140_v7 = vmax.f32 %v1106_v13, 0.0  ;;  %v4448_v3 = vsel %vm1238_vm9, %v4399_v58, %v4408_v6 }
 0x246   : > { %4660 = vst [vmem:[#allocation3_spill] sm:$0xff] %v4429_v19  ;;  %v1508_v51 = vsel %vm1238_vm9, %v1164_v36, %v1228_v53  ;;  %v1509_v33 = vsel %vm1242_vm10, %v1164_v36, %v1228_v53  ;;  %v1512_v44 = vsel %vm1246_vm11, %v1164_v36, %v1228_v53  ;;  %v1515_v61 = vsel %vm1250_vm12, %v1164_v36, %v1228_v53 }
 0x247   : > { %v1511_v48 = vrot.slane %v1509_v33, 1  ;;  %v1514_v42 = vrot.slane %v1512_v44, 2  ;;  %v4457_v8 = vsel %vm1246_vm11, %v4399_v58, %v4408_v6  ;;  %v1517_v41 = vrot.slane %v1515_v61, 3 }
 0x248   : > { %v1842_v43 = vunpack.c.l.bf16 %v1508_v51  ;;  %v1229_v62 = vrot.slane %v1165_v47, 3  ;;  %v4459_v34 = vpack.c.bf16 %v1140_v7, %v1140_v7  ;;  %v4462_v12 = vadd.f32 %v4319_v57, %v1065_v26 }
 0x249   : > { %v1843_v2 = vunpack.c.l.bf16 %v1511_v48  ;;  %v1844_v39 = vunpack.c.l.bf16 %v1514_v42  ;;  %v1845_v15 = vunpack.c.l.bf16 %v1517_v41  ;;  %v4465_v36 = vadd.f32 %v4319_v57, %v1045_v63 }
 0x24a   : > { %v3450_v27 = vrot.slane %v1842_v43, 9  ;;  %v1520_v22 = vsel %vm1238_vm9, %v1165_v47, %v1229_v62  ;;  %v1521_v13 = vsel %vm1242_vm10, %v1165_v47, %v1229_v62  ;;  %v1524_v53 = vsel %vm1246_vm11, %v1165_v47, %v1229_v62 }
 0x24b   : > { %v3451_v54 = vrot.slane %v1843_v2, 9  ;;  %v3452_v28 = vrot.slane %v1844_v39, 9  ;;  %v3453_v51 = vrot.slane %v1845_v15, 9  ;;  %v1523_v48 = vrot.slane %v1521_v13, 1 }
 0x24c   : > { %v2482_v33 = vmax.f32 %v1842_v43, %v3450_v27  ;;  %v1526_v26 = vrot.slane %v1524_v53, 2  ;;  %v1527_v42 = vsel %vm1250_vm12, %v1165_v47, %v1229_v62  ;;  %v1846_v61 = vunpack.c.l.bf16 %v1520_v22 }
 0x24d   : > { %v2483_v7 = vmax.f32 %v1843_v2, %v3451_v54  ;;  %v2484_v44 = vmax.f32 %v1844_v39, %v3452_v28  ;;  %v2485_v41 = vmax.f32 %v1845_v15, %v3453_v51  ;;  %v1529_v4 = vrot.slane %v1527_v42, 3 }
 0x24e   : > { %v2818_v63 = vmax.f32 %v4350_v23, %v2482_v33  ;;  %v1847_v40 = vunpack.c.l.bf16 %v1523_v48  ;;  %v1848_v18 = vunpack.c.l.bf16 %v1526_v26  ;;  %v3454_v19 = vrot.slane %v1846_v61, 9 }
 0x24f   : > { %v2819_v21 = vmax.f32 %v4352_v35, %v2483_v7  ;;  %v2820_v52 = vmax.f32 %v4354_v29, %v2484_v44  ;;  %v2821_v43 = vmax.f32 %v4360_v25, %v2485_v41  ;;  %v1849_v39 = vunpack.c.l.bf16 %v1529_v4 }
 0x250   : > { %v2882_v2 = vpack.c.bf16 %v2818_v63, %v2818_v63  ;;  %v3455_v28 = vrot.slane %v1847_v40, 9  ;;  %v3456_v47 = vrot.slane %v1848_v18, 9  ;;  %v2486_v62 = vmax.f32 %v1846_v61, %v3454_v19 }
 0x251   : > { %v2883_v27 = vpack.c.bf16 %v2819_v21, %v2819_v21  ;;  %v2884_v54 = vpack.c.bf16 %v2820_v52, %v2820_v52  ;;  %v2885_v15 = vpack.c.bf16 %v2821_v43, %v2821_v43  ;;  %v3457_v13 = vrot.slane %v1849_v39, 9 }
 0x252   : > { %v3010_v22 = vunpack.c.l.b16 %v2882_v2  ;;  %v2487_v53 = vmax.f32 %v1847_v40, %v3455_v28  ;;  %v2488_v51 = vmax.f32 %v1848_v18, %v3456_v47  ;;  %v2822_v29 = vmax.f32 %v4387_v59, %v2486_v62 }
 0x253   : > { %v3011_v23 = vunpack.c.l.b16 %v2883_v27  ;;  %v3012_v35 = vunpack.c.l.b16 %v2884_v54  ;;  %v3013_v33 = vunpack.c.l.b16 %v2885_v15  ;;  %v2489_v48 = vmax.f32 %v1849_v39, %v3457_v13 }
 0x254   : > { %v1236_v25 = vrot.slane %v4459_v34, 3  ;;  %v2823_v52 = vmax.f32 %v4391_v0, %v2487_v53  ;;  %v2824_v4 = vmax.f32 %v4393_v1, %v2488_v51  ;;  %v2886_v19 = vpack.c.bf16 %v2822_v29, %v2822_v29 }
 0x255   : > { %v3108_v7 = vrot.slane %v3011_v23, 7  ;;  %v3110_v21 = vrot.slane %v3012_v35, 6  ;;  %v3112_v26 = vrot.slane %v3013_v33, 5  ;;  %v2825_v42 = vmax.f32 %v4395_v30, %v2489_v48 }
 0x256   : > { %v1604_v40 = vsel %vm1238_vm9, %v4459_v34, %v1236_v25  ;;  %v2887_v18 = vpack.c.bf16 %v2823_v52, %v2823_v52  ;;  %v2888_v61 = vpack.c.bf16 %v2824_v4, %v2824_v4  ;;  %v3014_v41 = vunpack.c.l.b16 %v2886_v19 }
 0x257   : > { %v3109_v44 = vsel %vm1242_vm10, %v3108_v7, %v3010_v22  ;;  %v2889_v43 = vpack.c.bf16 %v2825_v42, %v2825_v42  ;;  %v1605_v0 = vsel %vm1242_vm10, %v4459_v34, %v1236_v25  ;;  %v1608_v1 = vsel %vm1246_vm11, %v4459_v34, %v1236_v25 }
 0x258   : > { %v3111_v59 = vsel %vm1246_vm11, %v3110_v21, %v3109_v44  ;;  %v3015_v2 = vunpack.c.l.b16 %v2887_v18  ;;  %v3016_v27 = vunpack.c.l.b16 %v2888_v61  ;;  %v3114_v30 = vrot.slane %v3014_v41, 4 }
 0x259   : > { %v3113_v63 = vsel %vm1250_vm12, %v3112_v26, %v3111_v59  ;;  %v1607_v39 = vrot.slane %v1605_v0, 1  ;;  %v3017_v54 = vunpack.c.l.b16 %v2889_v43  ;;  %v1610_v28 = vrot.slane %v1608_v1, 2 }
 0x25a   : > { %v1611_v47 = vsel %vm1250_vm12, %v4459_v34, %v1236_v25  ;;  %v1874_v62 = vunpack.c.l.bf16 %v1604_v40  ;;  %v3115_v15 = vsel %vm3041_vm13, %v3114_v30, %v3113_v63  ;;  %v3116_v22 = vrot.slane %v3015_v2, 3 }
 0x25b   : > { %v3118_v23 = vrot.slane %v3016_v27, 2  ;;  %v1613_v13 = vrot.slane %v1611_v47, 3  ;;  %v3120_v35 = vrot.slane %v3017_v54, 1  ;;  %v1875_v53 = vunpack.c.l.bf16 %v1607_v39 }
 0x25c   : > { %v1876_v51 = vunpack.c.l.bf16 %v1610_v28  ;;  %v3482_v29 = vrot.slane %v1874_v62, 9  ;;  %v3117_v33 = vsel %vm3044_vm14, %v3116_v22, %v3115_v15  ;;  %v1124_v48 = vmax.f32 %v4462_v12, 0.0 }
 0x25d   : > { %v1877_v7 = vunpack.c.l.bf16 %v1613_v13  ;;  %v1116_v21 = vmax.f32 %v4465_v36, 0.0  ;;  %v3119_v52 = vsel %vm3047_vm15, %v3118_v23, %v3117_v33  ;;  %v3483_v34 = vrot.slane %v1875_v53, 9  ;;  %v1107_v13 = vpop.f32.mrf.mxu3 }
 0x25e   : > { %v3484_v25 = vrot.slane %v1876_v51, 9  ;;  %v2514_v4 = vmax.f32 %v1874_v62, %v3482_v29  ;;  %v3481_v19 = vrot.slane %v4431_v49, 9  ;;  %v3121_v44 = vsel %vm3050_vm0, %v3120_v35, %v3119_v52 }
 0x25f   : > { %v3485_v26 = vrot.slane %v1877_v7, 9  ;;  %v1156_v42 = vpack.c.bf16 %v1124_v48, %v1124_v48  ;;  %v4661_v40 = vunpack.c.l.bf16 %v4402_v46  ;;  %v3155_v12 = vpack.c.b16 %v3121_v44, %v3121_v44 }
 0x260   : > { %v2515_v18 = vmax.f32 %v1875_v53, %v3483_v34  ;;  %v2516_v36 = vmax.f32 %v1876_v51, %v3484_v25  ;;  %v1310_v61 = vrot.slane %v4457_v8, 2  ;;  %v1311_v41 = vsel %vm1250_vm12, %v4399_v58, %v4408_v6 }
 0x261   : > { %v4501_v59 = vmax.f32 %v4661_v40, %v4435_v9  ;;  %v1220_v63 = vrot.slane %v1156_v42, 3  ;;  %v1148_v43 = vpack.c.bf16 %v1116_v21, %v1116_v21  ;;  %v4662_v0 = vrot.slane %v4421_v55, 9  ;;  %3172 = vst.msk [vmem:[%s4237_s8 + $0x14] sm:$0xf] %vm3166_vm1, %v3155_v12 }
 0x262   : > { %v2834_v46 = vmax.f32 %v4371_v60, %v2514_v4  ;;  %v2835_v9 = vmax.f32 %v4373_v11, %v2515_v18  ;;  %v2836_v2 = vmax.f32 %v4375_v31, %v2516_v36  ;;  %v2517_v8 = vmax.f32 %v1877_v7, %v3485_v26 }
 0x263   : > { %v4510_v1 = vmax.f32 %v4421_v55, %v4662_v0  ;;  %v1412_v27 = vsel %vm1238_vm9, %v1156_v42, %v1220_v63  ;;  %v1413_v58 = vsel %vm1242_vm10, %v1156_v42, %v1220_v63  ;;  %v1416_v6 = vsel %vm1246_vm11, %v1156_v42, %v1220_v63 }
 0x264   : > { %v4663_v30 = vrot.slane %v4427_v32, 9  ;;  %v2899_v39 = vpack.c.bf16 %v2835_v9, %v2835_v9  ;;  %v2900_v54 = vpack.c.bf16 %v2836_v2, %v2836_v2  ;;  %v1415_v28 = vrot.slane %v1413_v58, 1 }
 0x265   : > { %v1418_v60 = vrot.slane %v1416_v6, 2  ;;  %v1419_v11 = vsel %vm1250_vm12, %v1156_v42, %v1220_v63  ;;  %v1810_v47 = vunpack.c.l.bf16 %v1412_v27  ;;  %v1212_v31 = vrot.slane %v1148_v43, 3 }
 0x266   : > { %v4523_v55 = vmax.f32 %v4427_v32, %v4663_v30  ;;  %v2898_v62 = vpack.c.bf16 %v2834_v46, %v2834_v46  ;;  %v3027_v15 = vunpack.c.l.b16 %v2899_v39  ;;  %v1421_v22 = vrot.slane %v1419_v11, 3 }
 0x267   : > { %v1811_v23 = vunpack.c.l.bf16 %v1415_v28  ;;  %v1313_v35 = vrot.slane %v1311_v41, 3  ;;  %v2837_v53 = vmax.f32 %v4378_v37, %v2517_v8  ;;  %v1812_v51 = vunpack.c.l.bf16 %v1418_v60 }
 0x268   : > { %v3418_v29 = vrot.slane %v1810_v47, 9  ;;  %v1774_v32 = vunpack.c.l.bf16 %v4448_v3  ;;  %v3028_v33 = vunpack.c.l.b16 %v2900_v54  ;;  %v1813_v7 = vunpack.c.l.bf16 %v1421_v22 }
 0x269   : > { %v3419_v48 = vrot.slane %v1811_v23, 9  ;;  %v3136_v21 = vrot.slane %v3027_v15, 7  ;;  %v3420_v52 = vrot.slane %v1812_v51, 9  ;;  %v1317_v34 = vsel %vm1242_vm10, %v1148_v43, %v1212_v31 }
 0x26a   : > { %v1108_v25 = vadd.f32 %v4319_v57, %v1107_v13  ;;  %v3026_v4 = vunpack.c.l.b16 %v2898_v62  ;;  %v3421_v44 = vrot.slane %v1813_v7, 9  ;;  %v2450_v26 = vmax.f32 %v1810_v47, %v3418_v29 }
 0x26b   : > { %v2451_v42 = vmax.f32 %v1811_v23, %v3419_v48  ;;  %v2901_v40 = vpack.c.bf16 %v2837_v53, %v2837_v53  ;;  %v2452_v12 = vmax.f32 %v1812_v51, %v3420_v52  ;;  %v1316_v37 = vsel %vm1238_vm9, %v1148_v43, %v1212_v31 }
 0x26c   : > { %v1320_v18 = vsel %vm1246_vm11, %v1148_v43, %v1212_v31  ;;  %v3138_v36 = vrot.slane %v3028_v33, 6  ;;  %v2453_v41 = vmax.f32 %v1813_v7, %v3421_v44  ;;  %v1319_v0 = vrot.slane %v1317_v34, 1 }
 0x26d   : > { %v2803_v63 = vmax.f32 %v4365_v10, %v2451_v42  ;;  %v3137_v46 = vsel %vm1242_vm10, %v3136_v21, %v3026_v4  ;;  %v2804_v9 = vmax.f32 %v4367_v56, %v2452_v12  ;;  %v1322_v2 = vrot.slane %v1320_v18, 2 }
 0x26e   : > { %v1323_v8 = vsel %vm1250_vm12, %v1148_v43, %v1212_v31  ;;  %v2802_v27 = vmax.f32 %v4362_v17, %v2450_v26  ;;  %v2805_v58 = vmax.f32 %v4369_v45, %v2453_v41  ;;  %v1778_v30 = vunpack.c.l.bf16 %v1316_v37  ;;  %v1067_v45 = vpop.f32.mrf.mxu1 }
 0x26f   : > { %v2867_v6 = vpack.c.bf16 %v2803_v63, %v2803_v63  ;;  %v4541_v39 = vmax.f32 %v4431_v49, %v3481_v19  ;;  %v4664_v10 = vrot.slane %v4440_v16, 1  ;;  %v3029_v28 = vunpack.c.l.b16 %v2901_v40 }
 0x270   : > { %v1325_v56 = vrot.slane %v1323_v8, 3  ;;  %v4547_v60 = vunpack.c.l.bf16 %v1310_v61  ;;  %v4549_v43 = vunpack.c.l.bf16 %v1313_v35  ;;  %v2868_v17 = vpack.c.bf16 %v2804_v9, %v2804_v9 }
 0x271   : > { %v4545_v54 = vunpack.c.l.bf16 %v4664_v10  ;;  %v1779_v11 = vunpack.c.l.bf16 %v1319_v0  ;;  %v4553_v47 = vrot.slane %v1774_v32, 9  ;;  %v3139_v49 = vsel %vm1246_vm11, %v3138_v36, %v3137_v46 }
 0x272   : > { %v1780_v19 = vunpack.c.l.bf16 %v1322_v2  ;;  %v1141_v31 = vmax.f32 %v1108_v25, 0.0  ;;  %v2866_v16 = vpack.c.bf16 %v2802_v27, %v2802_v27  ;;  %v2869_v62 = vpack.c.bf16 %v2805_v58, %v2805_v58 }
 0x273   : > { %v2995_v15 = vunpack.c.l.b16 %v2867_v6  ;;  %v3386_v22 = vrot.slane %v1778_v30, 9  ;;  %v3140_v23 = vrot.slane %v3029_v28, 5  ;;  %v1781_v61 = vunpack.c.l.bf16 %v1325_v56  ;;  %v1047_v56 = vpop.f32.mrf.mxu0 }
 0x274   : > { %v1173_v13 = vpack.c.bf16 %v1141_v31, %v1141_v31  ;;  %v1068_v35 = vadd.f32 %v4319_v57, %v1067_v45  ;;  %v3383_v53 = vrot.slane %v4545_v54, 9  ;;  %v3384_v51 = vrot.slane %v4547_v60, 9 }
 0x275   : > { %v2996_v29 = vunpack.c.l.b16 %v2868_v17  ;;  %v3387_v33 = vrot.slane %v1779_v11, 9  ;;  %v3385_v7 = vrot.slane %v4549_v43, 9  ;;  %v4561_v48 = vsel %vm1250_vm12, %v3140_v23, %v3139_v49 }
 0x276   : > { %v3388_v21 = vrot.slane %v1780_v19, 9  ;;  %v1237_v52 = vrot.slane %v1173_v13, 3  ;;  %v2994_v34 = vunpack.c.l.b16 %v2866_v16  ;;  %v4563_v25 = vunpack.c.l.b16 %v2869_v62 }
 0x277   : > { %v3080_v4 = vrot.slane %v2995_v15, 7  ;;  %v2418_v44 = vmax.f32 %v1778_v30, %v3386_v22  ;;  %v3389_v26 = vrot.slane %v1781_v61, 9  ;;  %v1125_v12 = vmax.f32 %v1068_v35, 0.0 }
 0x278   : > { %v1616_v42 = vsel %vm1238_vm9, %v1173_v13, %v1237_v52  ;;  %v1617_v40 = vsel %vm1242_vm10, %v1173_v13, %v1237_v52  ;;  %v3082_v37 = vrot.slane %v2996_v29, 6  ;;  %v2419_v18 = vmax.f32 %v1779_v11, %v3387_v33 }
 0x279   : > { %v1619_v36 = vrot.slane %v1617_v40, 1  ;;  %v1620_v41 = vsel %vm1246_vm11, %v1173_v13, %v1237_v52  ;;  %v2420_v63 = vmax.f32 %v1780_v19, %v3388_v21  ;;  %v1623_v46 = vsel %vm1250_vm12, %v1173_v13, %v1237_v52 }
 0x27a   : > { %v1622_v0 = vrot.slane %v1620_v41, 2  ;;  %v1878_v9 = vunpack.c.l.bf16 %v1616_v42  ;;  %v3081_v2 = vsel %vm1242_vm10, %v3080_v4, %v2994_v34  ;;  %v4571_v8 = vmax.f32 %v4410_v20, %v2418_v44 }
 0x27b   : > { %v1625_v27 = vrot.slane %v1623_v46, 3  ;;  %v1879_v58 = vunpack.c.l.bf16 %v1619_v36  ;;  %v3084_v6 = vrot.slane %v4563_v25, 5  ;;  %v1157_v28 = vpack.c.bf16 %v1125_v12, %v1125_v12 }
 0x27c   : > { %v1880_v30 = vunpack.c.l.bf16 %v1622_v0  ;;  %v3486_v10 = vrot.slane %v1878_v9, 9  ;;  %v4574_v17 = vmax.f32 %v1781_v61, %v3389_v26  ;;  %v4577_v11 = vmax.f32 %v4412_v24, %v2419_v18 }
 0x27d   : > { %v1881_v45 = vunpack.c.l.bf16 %v1625_v27  ;;  %v3487_v49 = vrot.slane %v1879_v58, 9  ;;  %v3083_v19 = vsel %vm1246_vm11, %v3082_v37, %v3081_v2  ;;  %v1221_v16 = vrot.slane %v1157_v28, 3 }
 0x27e   : > { %v3488_v31 = vrot.slane %v1880_v30, 9  ;;  %v2518_v20 = vmax.f32 %v1878_v9, %v3486_v10  ;;  %v4581_v62 = vmax.f32 %v4415_v38, %v2420_v63  ;;  %v1048_v23 = vadd.f32 %v4319_v57, %v1047_v56 }
 0x27f   : > { %v3489_v15 = vrot.slane %v1881_v45, 9  ;;  %v2519_v22 = vmax.f32 %v1879_v58, %v3487_v49  ;;  %v1424_v24 = vsel %vm1238_vm9, %v1157_v28, %v1221_v16  ;;  %v1425_v35 = vsel %vm1242_vm10, %v1157_v28, %v1221_v16 }
 0x280   : > { %v2520_v13 = vmax.f32 %v1880_v30, %v3488_v31  ;;  %v2838_v61 = vmax.f32 %v4501_v59, %v2518_v20  ;;  %v1427_v21 = vrot.slane %v1425_v35, 1  ;;  %v1428_v52 = vsel %vm1246_vm11, %v1157_v28, %v1221_v16 }
 0x281   : > { %v2521_v29 = vmax.f32 %v1881_v45, %v3489_v15  ;;  %v2839_v33 = vmax.f32 %v4510_v1, %v2519_v22  ;;  %v1430_v4 = vrot.slane %v1428_v52, 2  ;;  %v1431_v44 = vsel %vm1250_vm12, %v1157_v28, %v1221_v16 }
 0x282   : > { %v2840_v38 = vmax.f32 %v4523_v55, %v2520_v13  ;;  %v2902_v34 = vpack.c.bf16 %v2838_v61, %v2838_v61  ;;  %v1433_v59 = vrot.slane %v1431_v44, 3  ;;  %v1814_v42 = vunpack.c.l.bf16 %v1424_v24  ;;  %v4665_v24 = vld [vmem:[#allocation3_spill] sm:$0xff] }
 0x283   : > { %v2841_v57 = vmax.f32 %v4541_v39, %v2521_v29  ;;  %v2903_v26 = vpack.c.bf16 %v2839_v33, %v2839_v33  ;;  %v1815_v37 = vunpack.c.l.bf16 %v1427_v21  ;;  %v1816_v18 = vunpack.c.l.bf16 %v1430_v4 }
 0x284   : > { %v2904_v40 = vpack.c.bf16 %v2840_v38, %v2840_v38  ;;  %v3030_v12 = vunpack.c.l.b16 %v2902_v34  ;;  %v1817_v41 = vunpack.c.l.bf16 %v1433_v59  ;;  %v3422_v63 = vrot.slane %v1814_v42, 9 }
 0x285   : > { %v2905_v36 = vpack.c.bf16 %v2841_v57, %v2841_v57  ;;  %v3031_v1 = vunpack.c.l.b16 %v2903_v26  ;;  %v3423_v55 = vrot.slane %v1815_v37, 9  ;;  %v3424_v9 = vrot.slane %v1816_v18, 9 }
 0x286   : > { %v3032_v0 = vunpack.c.l.b16 %v2904_v40  ;;  %v3142_v46 = vrot.slane %v3030_v12, 4  ;;  %v3425_v58 = vrot.slane %v1817_v41, 9  ;;  %v2454_v30 = vmax.f32 %v1814_v42, %v3422_v63 }
 0x287   : > { %v3033_v2 = vunpack.c.l.b16 %v2905_v36  ;;  %v3144_v27 = vrot.slane %v3031_v1, 3  ;;  %v2455_v28 = vmax.f32 %v1815_v37, %v3423_v55  ;;  %v2456_v56 = vmax.f32 %v1816_v18, %v3424_v9 }
 0x288   : > { %v3143_v39 = vsel %vm3041_vm13, %v3142_v46, %v4561_v48  ;;  %v3146_v10 = vrot.slane %v3032_v0, 2  ;;  %v2457_v31 = vmax.f32 %v1817_v41, %v3425_v58  ;;  %v2806_v20 = vmax.f32 %v4419_v14, %v2454_v30 }
 0x289   : > { %v3145_v45 = vsel %vm3044_vm14, %v3144_v27, %v3143_v39  ;;  %v3148_v49 = vrot.slane %v3033_v2, 1  ;;  %v2807_v15 = vmax.f32 %v4423_v50, %v2455_v28  ;;  %v2808_v22 = vmax.f32 %v4425_v5, %v2456_v56 }
 0x28a   : > { %v3147_v16 = vsel %vm3047_vm15, %v3146_v10, %v3145_v45  ;;  %v1117_v13 = vmax.f32 %v1048_v23, 0.0  ;;  %v2851_v48 = vpack.c.bf16 %v4577_v11, %v4577_v11  ;;  %v2809_v35 = vmax.f32 %v4665_v24, %v2457_v31  ;;  %v4666_v11 = vld [vmem:[#allocation2_spill] sm:$0xff] }
 0x28b   : > { %v3149_v61 = vsel %vm3050_vm0, %v3148_v49, %v3147_v16  ;;  %v2870_v29 = vpack.c.bf16 %v2806_v20, %v2806_v20  ;;  %v2871_v21 = vpack.c.bf16 %v2807_v15, %v2807_v15  ;;  %v2872_v52 = vpack.c.bf16 %v2808_v22, %v2808_v22 }
 0x28c   : > { %v3157_v33 = vpack.c.b16 %v3149_v61, %v3149_v61  ;;  %v1149_v14 = vpack.c.bf16 %v1117_v13, %v1117_v13  ;;  %v3085_v50 = vsel %vm1250_vm12, %v3084_v6, %v3083_v19  ;;  %v2850_v5 = vpack.c.bf16 %v4571_v8, %v4571_v8 }
 0x28d   : > { %v2873_v23 = vpack.c.bf16 %v2809_v35, %v2809_v35  ;;  %v2998_v38 = vunpack.c.l.b16 %v2870_v29  ;;  %v2789_v34 = vmax.f32 %v4666_v11, %v4574_v17  ;;  %v2999_v4 = vunpack.c.l.b16 %v2871_v21 }
 0x28e   : > { %3174 = vst.msk [vmem:[%s4237_s8 + $0x1c] sm:$0xf] %vm3166_vm1, %v3157_v33  ;;  %v3000_v44 = vunpack.c.l.b16 %v2872_v52  ;;  %v1213_v57 = vrot.slane %v1149_v14, 3  ;;  %v2852_v26 = vpack.c.bf16 %v4581_v62, %v4581_v62  ;;  %v2979_v59 = vunpack.c.l.b16 %v2851_v48 }
 0x28f   : > { %v3001_v25 = vunpack.c.l.b16 %v2873_v23  ;;  %v3086_v42 = vrot.slane %v2998_v38, 4  ;;  %v3088_v6 = vrot.slane %v2999_v4, 3  ;;  %v2853_v63 = vpack.c.bf16 %v2789_v34, %v2789_v34 }
 0x290   : > { %v3090_v19 = vrot.slane %v3000_v44, 2  ;;  %v1328_v8 = vsel %vm1238_vm9, %v1149_v14, %v1213_v57  ;;  %v1329_v40 = vsel %vm1242_vm10, %v1149_v14, %v1213_v57  ;;  %v1332_v18 = vsel %vm1246_vm11, %v1149_v14, %v1213_v57 }
 0x291   : > { %v3087_v12 = vsel %vm3041_vm13, %v3086_v42, %v3085_v50  ;;  %v3092_v17 = vrot.slane %v3001_v25, 1  ;;  %v1331_v37 = vrot.slane %v1329_v40, 1  ;;  %v1334_v1 = vrot.slane %v1332_v18, 2 }
 0x292   : > { %v3089_v36 = vsel %vm3044_vm14, %v3088_v6, %v3087_v12  ;;  %v1335_v62 = vsel %vm1250_vm12, %v1149_v14, %v1213_v57  ;;  %v1782_v41 = vunpack.c.l.bf16 %v1328_v8  ;;  %v2980_v9 = vunpack.c.l.b16 %v2852_v26 }
 0x293   : > { %v3091_v0 = vsel %vm3047_vm15, %v3090_v19, %v3089_v36  ;;  %v1337_v46 = vrot.slane %v1335_v62, 3  ;;  %v1783_v55 = vunpack.c.l.bf16 %v1331_v37  ;;  %v1784_v27 = vunpack.c.l.bf16 %v1334_v1 }
 0x294   : > { %v3093_v2 = vsel %vm3050_vm0, %v3092_v17, %v3091_v0  ;;  %v3390_v58 = vrot.slane %v1782_v41, 9  ;;  %v3052_v30 = vrot.slane %v2979_v59, 7  ;;  %v2414_v56 = vmax.f32 %v1774_v32, %v4553_v47 }
 0x295   : > { %v3153_v39 = vpack.c.b16 %v3093_v2, %v3093_v2  ;;  %v1785_v10 = vunpack.c.l.bf16 %v1337_v46  ;;  %v3391_v28 = vrot.slane %v1783_v55, 9  ;;  %v2415_v45 = vmax.f32 %v4545_v54, %v3383_v53 }
 0x296   : > { %v3392_v49 = vrot.slane %v1784_v27, 9  ;;  %v2422_v31 = vmax.f32 %v1782_v41, %v3390_v58  ;;  %v2416_v20 = vmax.f32 %v4547_v60, %v3384_v51  ;;  %v2978_v16 = vunpack.c.l.b16 %v2850_v5 }
 0x297   : > { %3170 = vst.msk [vmem:[%s4237_s8 + $0xc] sm:$0xf] %vm3166_vm1, %v3153_v39  ;;  %v3393_v15 = vrot.slane %v1785_v10, 9  ;;  %v2423_v22 = vmax.f32 %v1783_v55, %v3391_v28  ;;  %v2417_v3 = vmax.f32 %v4549_v43, %v3385_v7  ;;  %v3054_v32 = vrot.slane %v2980_v9, 6 }
 0x298   : > { %v2424_v47 = vmax.f32 %v1784_v27, %v3392_v49  ;;  %v2790_v13 = vmax.f32 %v2414_v56, %v2422_v31  ;;  %v2981_v48 = vunpack.c.l.b16 %v2853_v63  ;;  %v3053_v54 = vsel %vm1242_vm10, %v3052_v30, %v2978_v16 }
 0x299   : > { %v2425_v53 = vmax.f32 %v1785_v10, %v3393_v15  ;;  %v2791_v61 = vmax.f32 %v2415_v45, %v2423_v22  ;;  %v3055_v29 = vsel %vm1246_vm11, %v3054_v32, %v3053_v54 }
 0x29a   : > { %v2792_v24 = vmax.f32 %v2416_v20, %v2424_v47  ;;  %v2854_v35 = vpack.c.bf16 %v2790_v13, %v2790_v13  ;;  %v3056_v52 = vrot.slane %v2981_v48, 5 }
 0x29b   : > { %v2793_v60 = vmax.f32 %v2417_v3, %v2425_v53  ;;  %v2855_v51 = vpack.c.bf16 %v2791_v61, %v2791_v61 }
 0x29c   : > { %v2856_v33 = vpack.c.bf16 %v2792_v24, %v2792_v24  ;;  %v2982_v21 = vunpack.c.l.b16 %v2854_v35  ;;  %v3057_v5 = vsel %vm1250_vm12, %v3056_v52, %v3055_v29 }
 0x29d   : > { %v2857_v14 = vpack.c.bf16 %v2793_v60, %v2793_v60  ;;  %v2983_v43 = vunpack.c.l.b16 %v2855_v51 }
 0x29e   : > { %v2984_v7 = vunpack.c.l.b16 %v2856_v33  ;;  %v3058_v50 = vrot.slane %v2982_v21, 4 }
 0x29f   : > { %v2985_v23 = vunpack.c.l.b16 %v2857_v14  ;;  %v3060_v38 = vrot.slane %v2983_v43, 3 }
 0x2a0   : > { %v3059_v11 = vsel %vm3041_vm13, %v3058_v50, %v3057_v5  ;;  %v3062_v34 = vrot.slane %v2984_v7, 2 }
 0x2a1   : > { %v3061_v4 = vsel %vm3044_vm14, %v3060_v38, %v3059_v11  ;;  %v3064_v44 = vrot.slane %v2985_v23, 1 }
 0x2a2   : > { %v3063_v57 = vsel %vm3047_vm15, %v3062_v34, %v3061_v4 }
 0x2a3   : > { %v3065_v26 = vsel %vm3050_vm0, %v3064_v44, %v3063_v57 }
 0x2a4   : > { %v3151_v59 = vpack.c.b16 %v3065_v26, %v3065_v26 }
 0x2a6   : > { %3168 = vst.msk [vmem:[%s4237_s8 + $0x4] sm:$0xf] %vm3166_vm1, %v3151_v59 }
 0x2a7 PF: > { %s13_s14 = sadd.s32 1, %s3573_s14   ;;  %s4667_s12 = smov %s3569_s13 }
 0x2a8   : > { %p10_p5 = scmp.ge.s32.totalorder %s13_s14, 4   ;;  %s4668_s13 = smov %s4670_s15 }
 0x2aa   :  { %12 = sbr.rel (!%p10_p5) target bundleno = 2 (0x2), region = 63 }

</bundles_post_ra>
